<compile_context>
chip_gen: v6e
topology: v6e:2x2x1
jax: 0.10.0
libtpu: 0.0.40
codegen_flags: <defaults>
</compile_context>

<pallas_src>
import functools

import jax
import jax.numpy as jnp
from jax.experimental import pallas as pl
from jax.experimental.pallas import tpu as pltpu


def _dncnn_fused_kernel(x_ref, w_ref, b_ref, o_ref, *, Hp, Wp, n_layers, matmul_dtype):
    # x_ref: (1, C_pad, HW)   input image, channels on sublanes, flat spatial on lanes
    # w_ref: (nb, C_pad, 9*C_pad)   per-layer weights, tap-major contraction dim
    # b_ref: (nb, C_pad, 1)
    # o_ref: (1, C_pad, HW)   residual output x - model(x)
    HW = Hp * Wp
    x0 = x_ref[0].astype(jnp.float32)                      # (C_pad, HW)

    # Tap validity masks (zero 'same' padding), computed once, reused by every layer.
    hw = jax.lax.broadcasted_iota(jnp.int32, (1, HW), 1)
    col = hw % Wp
    taps = [(dy, dx) for dy in (-1, 0, 1) for dx in (-1, 0, 1)]
    masks = []
    for dy, dx in taps:
        conds = []
        if dy == -1:
            conds.append(hw >= Wp)                         # row - 1 >= 0
        elif dy == 1:
            conds.append(hw < HW - Wp)                     # row + 1 <  Hp
        if dx == -1:
            conds.append(col >= 1)                         # col - 1 >= 0
        elif dx == 1:
            conds.append(col < Wp - 1)                     # col + 1 <  Wp
        m = None
        for c in conds:
            m = c if m is None else jnp.logical_and(m, c)
        masks.append(m)

    a = x0
    for l in range(n_layers):                              # statically unrolled layers
        w = w_ref[l].astype(matmul_dtype)                  # (C_pad, 9*C_pad)
        b = b_ref[l].astype(jnp.float32)                   # (C_pad, 1)
        parts = []
        for t, (dy, dx) in enumerate(taps):
            off = dy * Wp + dx                             # shifted[hw] = a[hw + off]
            s = a if off == 0 else pltpu.roll(a, shift=(-off) % HW, axis=1)
            if masks[t] is not None:
                s = jnp.where(masks[t], s, 0.0)
            parts.append(s)
        xcat = jnp.concatenate(parts, axis=0).astype(matmul_dtype)   # (9*C_pad, HW)
        # One MXU push per layer: K = 9*C_pad, N = HW (lane-dense), f32 accumulation.
        a = jnp.dot(w, xcat, preferred_element_type=jnp.float32) + b
        if l != n_layers - 1:
            a = jnp.maximum(a, 0.0)                        # f32 epilogue (v5e fast path)

    o_ref[0] = (x0 - a).astype(o_ref.dtype)                # DnCNN residual: x - model(x)


def _pack_dncnn_params(params, c_pad):
    """PyTorch-layout (Cout,Cin,3,3) weights -> stacked (nb, C_pad, 9*C_pad) tap-major."""
    ws, bs = [], []
    for (w, b) in params:
        co, ci, kh, kw = w.shape
        assert (kh, kw) == (3, 3)
        wf = jnp.transpose(w, (0, 2, 3, 1))                               # (co,3,3,ci)
        wf = jnp.pad(wf, ((0, c_pad - co), (0, 0), (0, 0), (0, c_pad - ci)))
        ws.append(wf.reshape(c_pad, 9 * c_pad))
        bs.append(jnp.pad(b, (0, c_pad - co)).reshape(c_pad, 1))
    return jnp.stack(ws), jnp.stack(bs)          # (nb, C_pad, 9*C_pad), (nb, C_pad, 1)


def dncnn_prior_pallas(x_nchw, params, *, matmul_dtype=jnp.float32):
    """Fused DnCNN residual denoiser x - model(x): one pallas_call for all layers."""
    N, C, Hp, Wp = x_nchw.shape
    HW = Hp * Wp
    assert HW % 128 == 0, "padded spatial size must be lane-tileable"
    c_all = [C] + [w.shape[0] for (w, _) in params]
    c_pad = max(8, -(-max(c_all) // 8) * 8)                # channels padded to sublanes
    nb = len(params)
    w_stack, b_stack = _pack_dncnn_params(params, c_pad)

    x = x_nchw.reshape(N, C, HW)                           # row-major reshape (free)
    if C < c_pad:
        x = jnp.pad(x, ((0, 0), (0, c_pad - C), (0, 0)))

    kern = functools.partial(_dncnn_fused_kernel, Hp=Hp, Wp=Wp,
                             n_layers=nb, matmul_dtype=matmul_dtype)
    out = pl.pallas_call(
        kern,
        out_shape=jax.ShapeDtypeStruct((N, c_pad, HW), x_nchw.dtype),
        grid_spec=pltpu.PrefetchScalarGridSpec(
            num_scalar_prefetch=0,
            grid=(N,),
            in_specs=[
                pl.BlockSpec((1, c_pad, HW), lambda n: (n, 0, 0)),
                pl.BlockSpec((nb, c_pad, 9 * c_pad), lambda n: (0, 0, 0)),
                pl.BlockSpec((nb, c_pad, 1), lambda n: (0, 0, 0)),
            ],
            out_specs=pl.BlockSpec((1, c_pad, HW), lambda n: (n, 0, 0)),
        ),
        compiler_params=pltpu.CompilerParams(
            dimension_semantics=("parallel",),
            vmem_limit_bytes=64 * 1024 * 1024,
        ),
    )(x, w_stack, b_stack)
    return out[:, :C, :].reshape(N, C, Hp, Wp)


def init_dncnn_params(key, in_nc, out_nc, nc, nb):
    """Deterministic synthetic DnCNN weights. Layers: in->nc, (nb-2)x nc->nc, nc->out."""
    dims = [(in_nc, nc)] + [(nc, nc)] * (nb - 2) + [(nc, out_nc)]
    params = []
    for (ci, co) in dims:
        key, kw = jax.random.split(key)
        fan_in = ci * 9
        w = jax.random.normal(kw, (co, ci, 3, 3), jnp.float32) * (2.0 / fan_in) ** 0.5
        b = jnp.zeros((co,), jnp.float32)
        params.append((w, b))
    return params


def ihr_forward(y_nchw, appendix_nchw, params, *, matmul_dtype=jnp.float32):
    """IHR.forward: func_0 -> reflect pad to 32-multiple -> DnCNN prior -> crop."""
    _, _, H, W = y_nchw.shape
    x = y_nchw - appendix_nchw                              # func_0 (chosen elementwise)
    hb, wb = 32, 32
    H_pad = (hb - H % hb) % hb
    W_pad = (wb - W % wb) % wb
    assert H_pad < H and W_pad < W, "reflect padding requires pad < spatial dim"
    if H_pad or W_pad:
        # F.pad(x, (0, W_pad, 0, H_pad), mode='reflect') — right/bottom reflect padding
        x = jnp.pad(x, ((0, 0), (0, 0), (0, H_pad), (0, W_pad)), mode="reflect")
    x = dncnn_prior_pallas(x, params, matmul_dtype=matmul_dtype)
    return x[..., :H, :W]


# ---------------------------- pure-JAX reference ----------------------------

def _dncnn_reference(x, params):
    n = x
    last = len(params) - 1
    for i, (w, b) in enumerate(params):
        n = jax.lax.conv_general_dilated(
            n, w, window_strides=(1, 1), padding="SAME",
            dimension_numbers=("NCHW", "OIHW", "NCHW"))
        n = n + b[None, :, None, None]
        if i != last:
            n = jnp.maximum(n, 0.0)
    return x - n


def ihr_reference(y, appendix, params):
    _, _, H, W = y.shape
    x = y - appendix
    H_pad = (32 - H % 32) % 32
    W_pad = (32 - W % 32) % 32
    if H_pad or W_pad:
        x = jnp.pad(x, ((0, 0), (0, 0), (0, H_pad), (0, W_pad)), mode="reflect")
    x = _dncnn_reference(x, params)
    return x[..., :H, :W]


if __name__ == "__main__":
    # Small shapes: batch=2, channels=4, spatial=24 (reflect pad 8 < 24 -> padded 32).
    # prior_nc=8, prior_nb=4.
    N, C, H, W = 2, 4, 24, 24
    prior_nc, prior_nb = 8, 4

    key = jax.random.PRNGKey(0)
    k_y, k_a, k_p = jax.random.split(key, 3)
    y = jax.random.normal(k_y, (N, C, H, W), jnp.float32)
    appendix = jax.random.normal(k_a, (N, C, H, W), jnp.float32)
    params = init_dncnn_params(k_p, C, C, prior_nc, prior_nb)

    out = jax.jit(ihr_forward)(y, appendix, params)
    out = jax.block_until_ready(out)
    assert out.shape == (N, C, H, W), out.shape
    assert bool(jnp.all(jnp.isfinite(out)))

    ref = jax.block_until_ready(jax.jit(ihr_reference)(y, appendix, params))
    max_err = float(jnp.max(jnp.abs(out - ref)))
    assert bool(jnp.allclose(out, ref, atol=1e-3, rtol=1e-3)), max_err

    print("KERNEL_OK")
</pallas_src>

<mosaic_0001>
module attributes {stable_mosaic.version = 11 : i64} {
  func.func @_dncnn_fused_kernel(%arg0: i32, %arg1: memref<1x8x1024xf32, #tpu.memory_space<vmem>>, %arg2: memref<4x8x72xf32, #tpu.memory_space<vmem>>, %arg3: memref<4x8x1xf32, #tpu.memory_space<vmem>>, %arg4: memref<1x8x1024xf32, #tpu.memory_space<vmem>>) attributes {dimension_semantics = [#tpu.dimension_semantics<parallel>], iteration_bounds = array<i64: 2>, scalar_prefetch = 0 : i64, scratch_operands = 0 : i64, tpu.core_type = #tpu.core_type<tc>, window_params = [{transform_indices = @transform_0, window_bounds = array<i64: 1, 8, 1024>}, {pipeline_mode = #tpu.pipeline_mode<synchronous>, transform_indices = @transform_1, window_bounds = array<i64: 4, 8, 72>}, {pipeline_mode = #tpu.pipeline_mode<synchronous>, transform_indices = @transform_2, window_bounds = array<i64: 4, 8, 1>}, {transform_indices = @transform_3, window_bounds = array<i64: 1, 8, 1024>}]} {
    %c0 = arith.constant 0 : index
    %c0_0 = arith.constant 0 : index
    %c0_1 = arith.constant 0 : index
    %0 = vector.load %arg1[%c0, %c0_0, %c0_1] : memref<1x8x1024xf32, #tpu.memory_space<vmem>>, vector<1x8x1024xf32>
    %1 = vector.shape_cast %0 : vector<1x8x1024xf32> to vector<8x1024xf32>
    %2 = tpu.iota {dimensions = array<i32: 1>} : vector<1x1024xi32>
    %c32_i32 = arith.constant 32 : i32
    %c0_i32 = arith.constant 0 : i32
    %3 = arith.cmpi eq, %c32_i32, %c0_i32 : i32
    %c1_i32 = arith.constant 1 : i32
    %4 = arith.select %3, %c1_i32, %c32_i32 : i32
    %5 = vector.broadcast %4 : i32 to vector<1x1024xi32>
    %6 = arith.remsi %2, %5 : vector<1x1024xi32>
    %c0_i32_2 = arith.constant 0 : i32
    %7 = vector.broadcast %c0_i32_2 : i32 to vector<1x1024xi32>
    %8 = arith.cmpi ne, %6, %7 : vector<1x1024xi32>
    %c0_i32_3 = arith.constant 0 : i32
    %9 = vector.broadcast %c0_i32_3 : i32 to vector<1x1024xi32>
    %10 = arith.cmpi slt, %6, %9 : vector<1x1024xi32>
    %c0_i32_4 = arith.constant 0 : i32
    %11 = arith.cmpi slt, %4, %c0_i32_4 : i32
    %12 = vector.broadcast %11 : i1 to vector<1x1024xi1>
    %13 = vector.broadcast %12 : vector<1x1024xi1> to vector<1x1024xi1>
    %14 = arith.xori %10, %13 : vector<1x1024xi1>
    %15 = arith.andi %14, %8 : vector<1x1024xi1>
    %16 = vector.broadcast %4 : i32 to vector<1x1024xi32>
    %17 = arith.addi %6, %16 : vector<1x1024xi32>
    %18 = arith.select %15, %17, %6 : vector<1x1024xi1>, vector<1x1024xi32>
    %c32_i32_5 = arith.constant 32 : i32
    %19 = vector.broadcast %c32_i32_5 : i32 to vector<1x1024xi32>
    %20 = arith.cmpi sge, %2, %19 : vector<1x1024xi32>
    %c1_i32_6 = arith.constant 1 : i32
    %21 = vector.broadcast %c1_i32_6 : i32 to vector<1x1024xi32>
    %22 = arith.cmpi sge, %18, %21 : vector<1x1024xi32>
    %23 = arith.andi %20, %22 : vector<1x1024xi1>
    %c32_i32_7 = arith.constant 32 : i32
    %24 = vector.broadcast %c32_i32_7 : i32 to vector<1x1024xi32>
    %25 = arith.cmpi sge, %2, %24 : vector<1x1024xi32>
    %c32_i32_8 = arith.constant 32 : i32
    %26 = vector.broadcast %c32_i32_8 : i32 to vector<1x1024xi32>
    %27 = arith.cmpi sge, %2, %26 : vector<1x1024xi32>
    %c31_i32 = arith.constant 31 : i32
    %28 = vector.broadcast %c31_i32 : i32 to vector<1x1024xi32>
    %29 = arith.cmpi slt, %18, %28 : vector<1x1024xi32>
    %30 = arith.andi %27, %29 : vector<1x1024xi1>
    %c1_i32_9 = arith.constant 1 : i32
    %31 = vector.broadcast %c1_i32_9 : i32 to vector<1x1024xi32>
    %32 = arith.cmpi sge, %18, %31 : vector<1x1024xi32>
    %c31_i32_10 = arith.constant 31 : i32
    %33 = vector.broadcast %c31_i32_10 : i32 to vector<1x1024xi32>
    %34 = arith.cmpi slt, %18, %33 : vector<1x1024xi32>
    %c992_i32 = arith.constant 992 : i32
    %35 = vector.broadcast %c992_i32 : i32 to vector<1x1024xi32>
    %36 = arith.cmpi slt, %2, %35 : vector<1x1024xi32>
    %c1_i32_11 = arith.constant 1 : i32
    %37 = vector.broadcast %c1_i32_11 : i32 to vector<1x1024xi32>
    %38 = arith.cmpi sge, %18, %37 : vector<1x1024xi32>
    %39 = arith.andi %36, %38 : vector<1x1024xi1>
    %c992_i32_12 = arith.constant 992 : i32
    %40 = vector.broadcast %c992_i32_12 : i32 to vector<1x1024xi32>
    %41 = arith.cmpi slt, %2, %40 : vector<1x1024xi32>
    %c992_i32_13 = arith.constant 992 : i32
    %42 = vector.broadcast %c992_i32_13 : i32 to vector<1x1024xi32>
    %43 = arith.cmpi slt, %2, %42 : vector<1x1024xi32>
    %c31_i32_14 = arith.constant 31 : i32
    %44 = vector.broadcast %c31_i32_14 : i32 to vector<1x1024xi32>
    %45 = arith.cmpi slt, %18, %44 : vector<1x1024xi32>
    %46 = arith.andi %43, %45 : vector<1x1024xi1>
    %c0_15 = arith.constant 0 : index
    %c0_16 = arith.constant 0 : index
    %c0_17 = arith.constant 0 : index
    %47 = vector.load %arg2[%c0_15, %c0_16, %c0_17] : memref<4x8x72xf32, #tpu.memory_space<vmem>>, vector<1x8x72xf32>
    %48 = vector.shape_cast %47 : vector<1x8x72xf32> to vector<8x72xf32>
    %c0_18 = arith.constant 0 : index
    %c0_19 = arith.constant 0 : index
    %c0_20 = arith.constant 0 : index
    %49 = vector.load %arg3[%c0_18, %c0_19, %c0_20] : memref<4x8x1xf32, #tpu.memory_space<vmem>>, vector<1x8x1xf32>
    %50 = vector.shape_cast %49 : vector<1x8x1xf32> to vector<8x1xf32>
    %c33_i32 = arith.constant 33 : i32
    %51 = tpu.dynamic_rotate %1 by %c33_i32 dim 1 : vector<8x1024xf32>, i32 -> vector<8x1024xf32>
    %cst = arith.constant 0.000000e+00 : f32
    %52 = vector.shape_cast %23 : vector<1x1024xi1> to vector<1x1024xi1>
    %53 = vector.broadcast %52 : vector<1x1024xi1> to vector<8x1024xi1>
    %54 = vector.broadcast %cst : f32 to vector<8x1024xf32>
    %55 = arith.select %53, %51, %54 : vector<8x1024xi1>, vector<8x1024xf32>
    %c32_i32_21 = arith.constant 32 : i32
    %56 = tpu.dynamic_rotate %1 by %c32_i32_21 dim 1 : vector<8x1024xf32>, i32 -> vector<8x1024xf32>
    %cst_22 = arith.constant 0.000000e+00 : f32
    %57 = vector.shape_cast %25 : vector<1x1024xi1> to vector<1x1024xi1>
    %58 = vector.broadcast %57 : vector<1x1024xi1> to vector<8x1024xi1>
    %59 = vector.broadcast %cst_22 : f32 to vector<8x1024xf32>
    %60 = arith.select %58, %56, %59 : vector<8x1024xi1>, vector<8x1024xf32>
    %c31_i32_23 = arith.constant 31 : i32
    %61 = tpu.dynamic_rotate %1 by %c31_i32_23 dim 1 : vector<8x1024xf32>, i32 -> vector<8x1024xf32>
    %cst_24 = arith.constant 0.000000e+00 : f32
    %62 = vector.shape_cast %30 : vector<1x1024xi1> to vector<1x1024xi1>
    %63 = vector.broadcast %62 : vector<1x1024xi1> to vector<8x1024xi1>
    %64 = vector.broadcast %cst_24 : f32 to vector<8x1024xf32>
    %65 = arith.select %63, %61, %64 : vector<8x1024xi1>, vector<8x1024xf32>
    %c1_i32_25 = arith.constant 1 : i32
    %66 = tpu.dynamic_rotate %1 by %c1_i32_25 dim 1 : vector<8x1024xf32>, i32 -> vector<8x1024xf32>
    %cst_26 = arith.constant 0.000000e+00 : f32
    %67 = vector.shape_cast %32 : vector<1x1024xi1> to vector<1x1024xi1>
    %68 = vector.broadcast %67 : vector<1x1024xi1> to vector<8x1024xi1>
    %69 = vector.broadcast %cst_26 : f32 to vector<8x1024xf32>
    %70 = arith.select %68, %66, %69 : vector<8x1024xi1>, vector<8x1024xf32>
    %c1023_i32 = arith.constant 1023 : i32
    %71 = tpu.dynamic_rotate %1 by %c1023_i32 dim 1 : vector<8x1024xf32>, i32 -> vector<8x1024xf32>
    %cst_27 = arith.constant 0.000000e+00 : f32
    %72 = vector.shape_cast %34 : vector<1x1024xi1> to vector<1x1024xi1>
    %73 = vector.broadcast %72 : vector<1x1024xi1> to vector<8x1024xi1>
    %74 = vector.broadcast %cst_27 : f32 to vector<8x1024xf32>
    %75 = arith.select %73, %71, %74 : vector<8x1024xi1>, vector<8x1024xf32>
    %c993_i32 = arith.constant 993 : i32
    %76 = tpu.dynamic_rotate %1 by %c993_i32 dim 1 : vector<8x1024xf32>, i32 -> vector<8x1024xf32>
    %cst_28 = arith.constant 0.000000e+00 : f32
    %77 = vector.shape_cast %39 : vector<1x1024xi1> to vector<1x1024xi1>
    %78 = vector.broadcast %77 : vector<1x1024xi1> to vector<8x1024xi1>
    %79 = vector.broadcast %cst_28 : f32 to vector<8x1024xf32>
    %80 = arith.select %78, %76, %79 : vector<8x1024xi1>, vector<8x1024xf32>
    %c992_i32_29 = arith.constant 992 : i32
    %81 = tpu.dynamic_rotate %1 by %c992_i32_29 dim 1 : vector<8x1024xf32>, i32 -> vector<8x1024xf32>
    %cst_30 = arith.constant 0.000000e+00 : f32
    %82 = vector.shape_cast %41 : vector<1x1024xi1> to vector<1x1024xi1>
    %83 = vector.broadcast %82 : vector<1x1024xi1> to vector<8x1024xi1>
    %84 = vector.broadcast %cst_30 : f32 to vector<8x1024xf32>
    %85 = arith.select %83, %81, %84 : vector<8x1024xi1>, vector<8x1024xf32>
    %c991_i32 = arith.constant 991 : i32
    %86 = tpu.dynamic_rotate %1 by %c991_i32 dim 1 : vector<8x1024xf32>, i32 -> vector<8x1024xf32>
    %cst_31 = arith.constant 0.000000e+00 : f32
    %87 = vector.shape_cast %46 : vector<1x1024xi1> to vector<1x1024xi1>
    %88 = vector.broadcast %87 : vector<1x1024xi1> to vector<8x1024xi1>
    %89 = vector.broadcast %cst_31 : f32 to vector<8x1024xf32>
    %90 = arith.select %88, %86, %89 : vector<8x1024xi1>, vector<8x1024xf32>
    %91 = tpu.concatenate %55, %60, %65, %70, %1, %75, %80, %85, %90 in 0 : vector<8x1024xf32>, vector<8x1024xf32>, vector<8x1024xf32>, vector<8x1024xf32>, vector<8x1024xf32>, vector<8x1024xf32>, vector<8x1024xf32>, vector<8x1024xf32>, vector<8x1024xf32> -> vector<72x1024xf32>
    %cst_32 = arith.constant dense<0.000000e+00> : vector<8x1024xf32>
    %92 = tpu.matmul %48, %91, %cst_32 {dimension_numbers = #tpu.dot_dimension_numbers<[1], [0], [0], [1], [0, 0, 1, 1], [], []>} : vector<8x72xf32>, vector<72x1024xf32>, vector<8x1024xf32> -> vector<8x1024xf32>
    %93 = vector.broadcast %50 : vector<8x1xf32> to vector<8x1024xf32>
    %94 = arith.addf %92, %93 : vector<8x1024xf32>
    %cst_33 = arith.constant 0.000000e+00 : f32
    %95 = vector.broadcast %cst_33 : f32 to vector<8x1024xf32>
    %96 = arith.maximumf %94, %95 : vector<8x1024xf32>
    %c1 = arith.constant 1 : index
    %c0_34 = arith.constant 0 : index
    %c0_35 = arith.constant 0 : index
    %97 = vector.load %arg2[%c1, %c0_34, %c0_35] : memref<4x8x72xf32, #tpu.memory_space<vmem>>, vector<1x8x72xf32>
    %98 = vector.shape_cast %97 : vector<1x8x72xf32> to vector<8x72xf32>
    %c1_36 = arith.constant 1 : index
    %c0_37 = arith.constant 0 : index
    %c0_38 = arith.constant 0 : index
    %99 = vector.load %arg3[%c1_36, %c0_37, %c0_38] : memref<4x8x1xf32, #tpu.memory_space<vmem>>, vector<1x8x1xf32>
    %100 = vector.shape_cast %99 : vector<1x8x1xf32> to vector<8x1xf32>
    %c33_i32_39 = arith.constant 33 : i32
    %101 = tpu.dynamic_rotate %96 by %c33_i32_39 dim 1 : vector<8x1024xf32>, i32 -> vector<8x1024xf32>
    %cst_40 = arith.constant 0.000000e+00 : f32
    %102 = vector.shape_cast %23 : vector<1x1024xi1> to vector<1x1024xi1>
    %103 = vector.broadcast %102 : vector<1x1024xi1> to vector<8x1024xi1>
    %104 = vector.broadcast %cst_40 : f32 to vector<8x1024xf32>
    %105 = arith.select %103, %101, %104 : vector<8x1024xi1>, vector<8x1024xf32>
    %c32_i32_41 = arith.constant 32 : i32
    %106 = tpu.dynamic_rotate %96 by %c32_i32_41 dim 1 : vector<8x1024xf32>, i32 -> vector<8x1024xf32>
    %cst_42 = arith.constant 0.000000e+00 : f32
    %107 = vector.shape_cast %25 : vector<1x1024xi1> to vector<1x1024xi1>
    %108 = vector.broadcast %107 : vector<1x1024xi1> to vector<8x1024xi1>
    %109 = vector.broadcast %cst_42 : f32 to vector<8x1024xf32>
    %110 = arith.select %108, %106, %109 : vector<8x1024xi1>, vector<8x1024xf32>
    %c31_i32_43 = arith.constant 31 : i32
    %111 = tpu.dynamic_rotate %96 by %c31_i32_43 dim 1 : vector<8x1024xf32>, i32 -> vector<8x1024xf32>
    %cst_44 = arith.constant 0.000000e+00 : f32
    %112 = vector.shape_cast %30 : vector<1x1024xi1> to vector<1x1024xi1>
    %113 = vector.broadcast %112 : vector<1x1024xi1> to vector<8x1024xi1>
    %114 = vector.broadcast %cst_44 : f32 to vector<8x1024xf32>
    %115 = arith.select %113, %111, %114 : vector<8x1024xi1>, vector<8x1024xf32>
    %c1_i32_45 = arith.constant 1 : i32
    %116 = tpu.dynamic_rotate %96 by %c1_i32_45 dim 1 : vector<8x1024xf32>, i32 -> vector<8x1024xf32>
    %cst_46 = arith.constant 0.000000e+00 : f32
    %117 = vector.shape_cast %32 : vector<1x1024xi1> to vector<1x1024xi1>
    %118 = vector.broadcast %117 : vector<1x1024xi1> to vector<8x1024xi1>
    %119 = vector.broadcast %cst_46 : f32 to vector<8x1024xf32>
    %120 = arith.select %118, %116, %119 : vector<8x1024xi1>, vector<8x1024xf32>
    %c1023_i32_47 = arith.constant 1023 : i32
    %121 = tpu.dynamic_rotate %96 by %c1023_i32_47 dim 1 : vector<8x1024xf32>, i32 -> vector<8x1024xf32>
    %cst_48 = arith.constant 0.000000e+00 : f32
    %122 = vector.shape_cast %34 : vector<1x1024xi1> to vector<1x1024xi1>
    %123 = vector.broadcast %122 : vector<1x1024xi1> to vector<8x1024xi1>
    %124 = vector.broadcast %cst_48 : f32 to vector<8x1024xf32>
    %125 = arith.select %123, %121, %124 : vector<8x1024xi1>, vector<8x1024xf32>
    %c993_i32_49 = arith.constant 993 : i32
    %126 = tpu.dynamic_rotate %96 by %c993_i32_49 dim 1 : vector<8x1024xf32>, i32 -> vector<8x1024xf32>
    %cst_50 = arith.constant 0.000000e+00 : f32
    %127 = vector.shape_cast %39 : vector<1x1024xi1> to vector<1x1024xi1>
    %128 = vector.broadcast %127 : vector<1x1024xi1> to vector<8x1024xi1>
    %129 = vector.broadcast %cst_50 : f32 to vector<8x1024xf32>
    %130 = arith.select %128, %126, %129 : vector<8x1024xi1>, vector<8x1024xf32>
    %c992_i32_51 = arith.constant 992 : i32
    %131 = tpu.dynamic_rotate %96 by %c992_i32_51 dim 1 : vector<8x1024xf32>, i32 -> vector<8x1024xf32>
    %cst_52 = arith.constant 0.000000e+00 : f32
    %132 = vector.shape_cast %41 : vector<1x1024xi1> to vector<1x1024xi1>
    %133 = vector.broadcast %132 : vector<1x1024xi1> to vector<8x1024xi1>
    %134 = vector.broadcast %cst_52 : f32 to vector<8x1024xf32>
    %135 = arith.select %133, %131, %134 : vector<8x1024xi1>, vector<8x1024xf32>
    %c991_i32_53 = arith.constant 991 : i32
    %136 = tpu.dynamic_rotate %96 by %c991_i32_53 dim 1 : vector<8x1024xf32>, i32 -> vector<8x1024xf32>
    %cst_54 = arith.constant 0.000000e+00 : f32
    %137 = vector.shape_cast %46 : vector<1x1024xi1> to vector<1x1024xi1>
    %138 = vector.broadcast %137 : vector<1x1024xi1> to vector<8x1024xi1>
    %139 = vector.broadcast %cst_54 : f32 to vector<8x1024xf32>
    %140 = arith.select %138, %136, %139 : vector<8x1024xi1>, vector<8x1024xf32>
    %141 = tpu.concatenate %105, %110, %115, %120, %96, %125, %130, %135, %140 in 0 : vector<8x1024xf32>, vector<8x1024xf32>, vector<8x1024xf32>, vector<8x1024xf32>, vector<8x1024xf32>, vector<8x1024xf32>, vector<8x1024xf32>, vector<8x1024xf32>, vector<8x1024xf32> -> vector<72x1024xf32>
    %cst_55 = arith.constant dense<0.000000e+00> : vector<8x1024xf32>
    %142 = tpu.matmul %98, %141, %cst_55 {dimension_numbers = #tpu.dot_dimension_numbers<[1], [0], [0], [1], [0, 0, 1, 1], [], []>} : vector<8x72xf32>, vector<72x1024xf32>, vector<8x1024xf32> -> vector<8x1024xf32>
    %143 = vector.broadcast %100 : vector<8x1xf32> to vector<8x1024xf32>
    %144 = arith.addf %142, %143 : vector<8x1024xf32>
    %cst_56 = arith.constant 0.000000e+00 : f32
    %145 = vector.broadcast %cst_56 : f32 to vector<8x1024xf32>
    %146 = arith.maximumf %144, %145 : vector<8x1024xf32>
    %c2 = arith.constant 2 : index
    %c0_57 = arith.constant 0 : index
    %c0_58 = arith.constant 0 : index
    %147 = vector.load %arg2[%c2, %c0_57, %c0_58] : memref<4x8x72xf32, #tpu.memory_space<vmem>>, vector<1x8x72xf32>
    %148 = vector.shape_cast %147 : vector<1x8x72xf32> to vector<8x72xf32>
    %c2_59 = arith.constant 2 : index
    %c0_60 = arith.constant 0 : index
    %c0_61 = arith.constant 0 : index
    %149 = vector.load %arg3[%c2_59, %c0_60, %c0_61] : memref<4x8x1xf32, #tpu.memory_space<vmem>>, vector<1x8x1xf32>
    %150 = vector.shape_cast %149 : vector<1x8x1xf32> to vector<8x1xf32>
    %c33_i32_62 = arith.constant 33 : i32
    %151 = tpu.dynamic_rotate %146 by %c33_i32_62 dim 1 : vector<8x1024xf32>, i32 -> vector<8x1024xf32>
    %cst_63 = arith.constant 0.000000e+00 : f32
    %152 = vector.shape_cast %23 : vector<1x1024xi1> to vector<1x1024xi1>
    %153 = vector.broadcast %152 : vector<1x1024xi1> to vector<8x1024xi1>
    %154 = vector.broadcast %cst_63 : f32 to vector<8x1024xf32>
    %155 = arith.select %153, %151, %154 : vector<8x1024xi1>, vector<8x1024xf32>
    %c32_i32_64 = arith.constant 32 : i32
    %156 = tpu.dynamic_rotate %146 by %c32_i32_64 dim 1 : vector<8x1024xf32>, i32 -> vector<8x1024xf32>
    %cst_65 = arith.constant 0.000000e+00 : f32
    %157 = vector.shape_cast %25 : vector<1x1024xi1> to vector<1x1024xi1>
    %158 = vector.broadcast %157 : vector<1x1024xi1> to vector<8x1024xi1>
    %159 = vector.broadcast %cst_65 : f32 to vector<8x1024xf32>
    %160 = arith.select %158, %156, %159 : vector<8x1024xi1>, vector<8x1024xf32>
    %c31_i32_66 = arith.constant 31 : i32
    %161 = tpu.dynamic_rotate %146 by %c31_i32_66 dim 1 : vector<8x1024xf32>, i32 -> vector<8x1024xf32>
    %cst_67 = arith.constant 0.000000e+00 : f32
    %162 = vector.shape_cast %30 : vector<1x1024xi1> to vector<1x1024xi1>
    %163 = vector.broadcast %162 : vector<1x1024xi1> to vector<8x1024xi1>
    %164 = vector.broadcast %cst_67 : f32 to vector<8x1024xf32>
    %165 = arith.select %163, %161, %164 : vector<8x1024xi1>, vector<8x1024xf32>
    %c1_i32_68 = arith.constant 1 : i32
    %166 = tpu.dynamic_rotate %146 by %c1_i32_68 dim 1 : vector<8x1024xf32>, i32 -> vector<8x1024xf32>
    %cst_69 = arith.constant 0.000000e+00 : f32
    %167 = vector.shape_cast %32 : vector<1x1024xi1> to vector<1x1024xi1>
    %168 = vector.broadcast %167 : vector<1x1024xi1> to vector<8x1024xi1>
    %169 = vector.broadcast %cst_69 : f32 to vector<8x1024xf32>
    %170 = arith.select %168, %166, %169 : vector<8x1024xi1>, vector<8x1024xf32>
    %c1023_i32_70 = arith.constant 1023 : i32
    %171 = tpu.dynamic_rotate %146 by %c1023_i32_70 dim 1 : vector<8x1024xf32>, i32 -> vector<8x1024xf32>
    %cst_71 = arith.constant 0.000000e+00 : f32
    %172 = vector.shape_cast %34 : vector<1x1024xi1> to vector<1x1024xi1>
    %173 = vector.broadcast %172 : vector<1x1024xi1> to vector<8x1024xi1>
    %174 = vector.broadcast %cst_71 : f32 to vector<8x1024xf32>
    %175 = arith.select %173, %171, %174 : vector<8x1024xi1>, vector<8x1024xf32>
    %c993_i32_72 = arith.constant 993 : i32
    %176 = tpu.dynamic_rotate %146 by %c993_i32_72 dim 1 : vector<8x1024xf32>, i32 -> vector<8x1024xf32>
    %cst_73 = arith.constant 0.000000e+00 : f32
    %177 = vector.shape_cast %39 : vector<1x1024xi1> to vector<1x1024xi1>
    %178 = vector.broadcast %177 : vector<1x1024xi1> to vector<8x1024xi1>
    %179 = vector.broadcast %cst_73 : f32 to vector<8x1024xf32>
    %180 = arith.select %178, %176, %179 : vector<8x1024xi1>, vector<8x1024xf32>
    %c992_i32_74 = arith.constant 992 : i32
    %181 = tpu.dynamic_rotate %146 by %c992_i32_74 dim 1 : vector<8x1024xf32>, i32 -> vector<8x1024xf32>
    %cst_75 = arith.constant 0.000000e+00 : f32
    %182 = vector.shape_cast %41 : vector<1x1024xi1> to vector<1x1024xi1>
    %183 = vector.broadcast %182 : vector<1x1024xi1> to vector<8x1024xi1>
    %184 = vector.broadcast %cst_75 : f32 to vector<8x1024xf32>
    %185 = arith.select %183, %181, %184 : vector<8x1024xi1>, vector<8x1024xf32>
    %c991_i32_76 = arith.constant 991 : i32
    %186 = tpu.dynamic_rotate %146 by %c991_i32_76 dim 1 : vector<8x1024xf32>, i32 -> vector<8x1024xf32>
    %cst_77 = arith.constant 0.000000e+00 : f32
    %187 = vector.shape_cast %46 : vector<1x1024xi1> to vector<1x1024xi1>
    %188 = vector.broadcast %187 : vector<1x1024xi1> to vector<8x1024xi1>
    %189 = vector.broadcast %cst_77 : f32 to vector<8x1024xf32>
    %190 = arith.select %188, %186, %189 : vector<8x1024xi1>, vector<8x1024xf32>
    %191 = tpu.concatenate %155, %160, %165, %170, %146, %175, %180, %185, %190 in 0 : vector<8x1024xf32>, vector<8x1024xf32>, vector<8x1024xf32>, vector<8x1024xf32>, vector<8x1024xf32>, vector<8x1024xf32>, vector<8x1024xf32>, vector<8x1024xf32>, vector<8x1024xf32> -> vector<72x1024xf32>
    %cst_78 = arith.constant dense<0.000000e+00> : vector<8x1024xf32>
    %192 = tpu.matmul %148, %191, %cst_78 {dimension_numbers = #tpu.dot_dimension_numbers<[1], [0], [0], [1], [0, 0, 1, 1], [], []>} : vector<8x72xf32>, vector<72x1024xf32>, vector<8x1024xf32> -> vector<8x1024xf32>
    %193 = vector.broadcast %150 : vector<8x1xf32> to vector<8x1024xf32>
    %194 = arith.addf %192, %193 : vector<8x1024xf32>
    %cst_79 = arith.constant 0.000000e+00 : f32
    %195 = vector.broadcast %cst_79 : f32 to vector<8x1024xf32>
    %196 = arith.maximumf %194, %195 : vector<8x1024xf32>
    %c3 = arith.constant 3 : index
    %c0_80 = arith.constant 0 : index
    %c0_81 = arith.constant 0 : index
    %197 = vector.load %arg2[%c3, %c0_80, %c0_81] : memref<4x8x72xf32, #tpu.memory_space<vmem>>, vector<1x8x72xf32>
    %198 = vector.shape_cast %197 : vector<1x8x72xf32> to vector<8x72xf32>
    %c3_82 = arith.constant 3 : index
    %c0_83 = arith.constant 0 : index
    %c0_84 = arith.constant 0 : index
    %199 = vector.load %arg3[%c3_82, %c0_83, %c0_84] : memref<4x8x1xf32, #tpu.memory_space<vmem>>, vector<1x8x1xf32>
    %200 = vector.shape_cast %199 : vector<1x8x1xf32> to vector<8x1xf32>
    %c33_i32_85 = arith.constant 33 : i32
    %201 = tpu.dynamic_rotate %196 by %c33_i32_85 dim 1 : vector<8x1024xf32>, i32 -> vector<8x1024xf32>
    %cst_86 = arith.constant 0.000000e+00 : f32
    %202 = vector.shape_cast %23 : vector<1x1024xi1> to vector<1x1024xi1>
    %203 = vector.broadcast %202 : vector<1x1024xi1> to vector<8x1024xi1>
    %204 = vector.broadcast %cst_86 : f32 to vector<8x1024xf32>
    %205 = arith.select %203, %201, %204 : vector<8x1024xi1>, vector<8x1024xf32>
    %c32_i32_87 = arith.constant 32 : i32
    %206 = tpu.dynamic_rotate %196 by %c32_i32_87 dim 1 : vector<8x1024xf32>, i32 -> vector<8x1024xf32>
    %cst_88 = arith.constant 0.000000e+00 : f32
    %207 = vector.shape_cast %25 : vector<1x1024xi1> to vector<1x1024xi1>
    %208 = vector.broadcast %207 : vector<1x1024xi1> to vector<8x1024xi1>
    %209 = vector.broadcast %cst_88 : f32 to vector<8x1024xf32>
    %210 = arith.select %208, %206, %209 : vector<8x1024xi1>, vector<8x1024xf32>
    %c31_i32_89 = arith.constant 31 : i32
    %211 = tpu.dynamic_rotate %196 by %c31_i32_89 dim 1 : vector<8x1024xf32>, i32 -> vector<8x1024xf32>
    %cst_90 = arith.constant 0.000000e+00 : f32
    %212 = vector.shape_cast %30 : vector<1x1024xi1> to vector<1x1024xi1>
    %213 = vector.broadcast %212 : vector<1x1024xi1> to vector<8x1024xi1>
    %214 = vector.broadcast %cst_90 : f32 to vector<8x1024xf32>
    %215 = arith.select %213, %211, %214 : vector<8x1024xi1>, vector<8x1024xf32>
    %c1_i32_91 = arith.constant 1 : i32
    %216 = tpu.dynamic_rotate %196 by %c1_i32_91 dim 1 : vector<8x1024xf32>, i32 -> vector<8x1024xf32>
    %cst_92 = arith.constant 0.000000e+00 : f32
    %217 = vector.shape_cast %32 : vector<1x1024xi1> to vector<1x1024xi1>
    %218 = vector.broadcast %217 : vector<1x1024xi1> to vector<8x1024xi1>
    %219 = vector.broadcast %cst_92 : f32 to vector<8x1024xf32>
    %220 = arith.select %218, %216, %219 : vector<8x1024xi1>, vector<8x1024xf32>
    %c1023_i32_93 = arith.constant 1023 : i32
    %221 = tpu.dynamic_rotate %196 by %c1023_i32_93 dim 1 : vector<8x1024xf32>, i32 -> vector<8x1024xf32>
    %cst_94 = arith.constant 0.000000e+00 : f32
    %222 = vector.shape_cast %34 : vector<1x1024xi1> to vector<1x1024xi1>
    %223 = vector.broadcast %222 : vector<1x1024xi1> to vector<8x1024xi1>
    %224 = vector.broadcast %cst_94 : f32 to vector<8x1024xf32>
    %225 = arith.select %223, %221, %224 : vector<8x1024xi1>, vector<8x1024xf32>
    %c993_i32_95 = arith.constant 993 : i32
    %226 = tpu.dynamic_rotate %196 by %c993_i32_95 dim 1 : vector<8x1024xf32>, i32 -> vector<8x1024xf32>
    %cst_96 = arith.constant 0.000000e+00 : f32
    %227 = vector.shape_cast %39 : vector<1x1024xi1> to vector<1x1024xi1>
    %228 = vector.broadcast %227 : vector<1x1024xi1> to vector<8x1024xi1>
    %229 = vector.broadcast %cst_96 : f32 to vector<8x1024xf32>
    %230 = arith.select %228, %226, %229 : vector<8x1024xi1>, vector<8x1024xf32>
    %c992_i32_97 = arith.constant 992 : i32
    %231 = tpu.dynamic_rotate %196 by %c992_i32_97 dim 1 : vector<8x1024xf32>, i32 -> vector<8x1024xf32>
    %cst_98 = arith.constant 0.000000e+00 : f32
    %232 = vector.shape_cast %41 : vector<1x1024xi1> to vector<1x1024xi1>
    %233 = vector.broadcast %232 : vector<1x1024xi1> to vector<8x1024xi1>
    %234 = vector.broadcast %cst_98 : f32 to vector<8x1024xf32>
    %235 = arith.select %233, %231, %234 : vector<8x1024xi1>, vector<8x1024xf32>
    %c991_i32_99 = arith.constant 991 : i32
    %236 = tpu.dynamic_rotate %196 by %c991_i32_99 dim 1 : vector<8x1024xf32>, i32 -> vector<8x1024xf32>
    %cst_100 = arith.constant 0.000000e+00 : f32
    %237 = vector.shape_cast %46 : vector<1x1024xi1> to vector<1x1024xi1>
    %238 = vector.broadcast %237 : vector<1x1024xi1> to vector<8x1024xi1>
    %239 = vector.broadcast %cst_100 : f32 to vector<8x1024xf32>
    %240 = arith.select %238, %236, %239 : vector<8x1024xi1>, vector<8x1024xf32>
    %241 = tpu.concatenate %205, %210, %215, %220, %196, %225, %230, %235, %240 in 0 : vector<8x1024xf32>, vector<8x1024xf32>, vector<8x1024xf32>, vector<8x1024xf32>, vector<8x1024xf32>, vector<8x1024xf32>, vector<8x1024xf32>, vector<8x1024xf32>, vector<8x1024xf32> -> vector<72x1024xf32>
    %cst_101 = arith.constant dense<0.000000e+00> : vector<8x1024xf32>
    %242 = tpu.matmul %198, %241, %cst_101 {dimension_numbers = #tpu.dot_dimension_numbers<[1], [0], [0], [1], [0, 0, 1, 1], [], []>} : vector<8x72xf32>, vector<72x1024xf32>, vector<8x1024xf32> -> vector<8x1024xf32>
    %243 = vector.broadcast %200 : vector<8x1xf32> to vector<8x1024xf32>
    %244 = arith.addf %242, %243 : vector<8x1024xf32>
    %245 = arith.subf %1, %244 : vector<8x1024xf32>
    %c0_102 = arith.constant 0 : index
    %c0_103 = arith.constant 0 : index
    %c0_104 = arith.constant 0 : index
    %246 = vector.load %arg4[%c0_102, %c0_103, %c0_104] : memref<1x8x1024xf32, #tpu.memory_space<vmem>>, vector<1x8x1024xf32>
    %247 = vector.shape_cast %246 : vector<1x8x1024xf32> to vector<8x1024xf32>
    %248 = vector.shape_cast %245 : vector<8x1024xf32> to vector<1x8x1024xf32>
    tpu.vector_store %arg4[%c0_102, %c0_103, %c0_104], %248 {strides = array<i32>} : memref<1x8x1024xf32, #tpu.memory_space<vmem>>, vector<1x8x1024xf32>,
    return
  }
  func.func @transform_0(%arg0: i32) -> (i32, i32, i32) {
    %c0_i32 = arith.constant 0 : i32
    %c0_i32_0 = arith.constant 0 : i32
    %c0_i32_1 = arith.constant 0 : i32
    return %arg0, %c0_i32, %c0_i32_0 : i32, i32, i32
  }
  func.func @transform_1(%arg0: i32) -> (i32, i32, i32) {
    %c0_i32 = arith.constant 0 : i32
    %c0_i32_0 = arith.constant 0 : i32
    %c0_i32_1 = arith.constant 0 : i32
    %c0_i32_2 = arith.constant 0 : i32
    return %c0_i32, %c0_i32_0, %c0_i32_1 : i32, i32, i32
  }
  func.func @transform_2(%arg0: i32) -> (i32, i32, i32) {
    %c0_i32 = arith.constant 0 : i32
    %c0_i32_0 = arith.constant 0 : i32
    %c0_i32_1 = arith.constant 0 : i32
    %c0_i32_2 = arith.constant 0 : i32
    return %c0_i32, %c0_i32_0, %c0_i32_1 : i32, i32, i32
  }
  func.func @transform_3(%arg0: i32) -> (i32, i32, i32) {
    %c0_i32 = arith.constant 0 : i32
    %c0_i32_0 = arith.constant 0 : i32
    %c0_i32_1 = arith.constant 0 : i32
    return %arg0, %c0_i32, %c0_i32_0 : i32, i32, i32
  }
}

</mosaic_0001>

<bundles_post_ra>
// kernel: sub.1
= control target key start
LH: loop header
LB: loop body
LE: loop exit
PB: predicated region body
PF: predicated region fallthrough
CT: control target
= control target key end

     0   :  { %3 = vsyncpa [#allocation1], 0  ;;  %s434_s0 = inlined_call_operand.hbm [shape: f32[2,4,24,24], index: 0, kind: input, shape index: {}]   ;;  %s435_s1 = inlined_call_operand.hbm [shape: f32[2,4,24,24], index: 1, kind: input, shape index: {}]   ;;  %s436_s2 = inlined_call_operand.vmem [shape: f32[2,4,24,24], index: 2, kind: output, shape index: {}]  }
   0x1   :  { %4 = vsyncpa [#allocation3], 0  ;;  %s337_s9 = smov [#allocation0]  }
   0x2   :  { %s8_s10 = sshll.u32 %s337_s9, 4  ;;  %s9_s10 = int_to_ptr.vmem [resolvable:$true] %s8_s10 }
   0x3   :  { %s301_s11 = scalar_lea.vmem %s9_s10, 3072  ;;  %p306_p1 = scmp.lt.s32.totalorder %s9_s10, %s9_s10 }
   0x4   :  { %p302_p0 = scmp.ne.s32.totalorder %s9_s10, %s301_s11  ;;  %p307_p2 = scmp.lt.s32.totalorder %s301_s11, %s301_s11 }
   0x6   :  { %p308_p3 = por %p307_p2, %p306_p1 }
   0x8   :  { %p309_p4 = pnand %p308_p3, %p302_p0 }
   0xa   :  { %312 = shalt.err (!%p309_p4)
}
   0xb   :  { %s338_s12 = smov 128   ;;  %s339_s13 = smov 8  }
   0xc   :  { %14 = dma.hbm_to_vmem [thread:$0]  %s434_s0, 3072, %s9_s10, [#allocation1], %s338_s12, %s338_s12, %s339_s13  }
   0xd   :  { %s340_s0 = smov [#allocation2]  }
   0xe   :  { %s18_s16 = sshll.u32 %s340_s0, 4  ;;  %s19_s16 = int_to_ptr.vmem [resolvable:$true] %s18_s16 }
   0xf   :  { %s321_s17 = scalar_lea.vmem %s19_s16, 3072  ;;  %p326_p6 = scmp.lt.s32.totalorder %s19_s16, %s19_s16 }
  0x10   :  { %p322_p5 = scmp.ne.s32.totalorder %s19_s16, %s321_s17  ;;  %p327_p7 = scmp.lt.s32.totalorder %s321_s17, %s321_s17 }
  0x12   :  { %p328_p8 = por %p327_p7, %p326_p6 }
  0x14   :  { %p329_p9 = pnand %p328_p8, %p322_p5 }
  0x16   :  { %332 = shalt.err (!%p329_p9)
}
  0x17   :  { %24 = dma.hbm_to_vmem [thread:$0]  %s435_s1, 3072, %s19_s16, [#allocation3], %s338_s12, %s338_s12, %s339_s13  }
  0x18   :  { %333 = dma.done.wait [#allocation1], 3072  }
  0x19   :  { %334 = vsyncadd [#allocation1], 4294964224 }
  0x1a   :  { %335 = dma.done.wait [#allocation3], 3072  }
  0x1b   :  { %336 = vsyncadd [#allocation3], 4294964224  ;;  %v27_v0 = vld [vmem:[#allocation0] sm:$0xff]  ;;  %v45_v5 = vld [vmem:[#allocation0 + $0x18] sm:$0xff] }
  0x1c   :  { %v28_v1 = vld [vmem:[#allocation2] sm:$0xff]  ;;  %v47_v6 = vld [vmem:[#allocation2 + $0x18] sm:$0xff]  ;;  %v65_v11 = vld [vmem:[#allocation0 + $0x30] sm:$0xff] }
  0x1d   :  { %v35_v2 = vld [vmem:[#allocation0 + $0x60] sm:$0xff]  ;;  %v31_v3 = vsub.f32 %v27_v0, %v28_v1  ;;  %v50_v8 = vsub.f32 %v45_v5, %v47_v6  ;;  %v55_v9 = vld [vmem:[#allocation0 + $0x78] sm:$0xff]  ;;  %v67_v13 = vld [vmem:[#allocation2 + $0x30] sm:$0xff] }
  0x1e   :  { %v37_v4 = vld [vmem:[#allocation2 + $0x60] sm:$0xff]  ;;  %v57_v10 = vld [vmem:[#allocation2 + $0x78] sm:$0xff]  ;;  %v75_v14 = vld [vmem:[#allocation0 + $0x90] sm:$0xff]  ;;  %v70_v16 = vsub.f32 %v65_v11, %v67_v13 }
  0x1f   :  { %v40_v7 = vsub.f32 %v35_v2, %v37_v4  ;;  %33 = vst [vmem:[%s436_s2] sm:$0xff] %v31_v3  ;;  %v60_v12 = vsub.f32 %v55_v9, %v57_v10  ;;  %v77_v15 = vld [vmem:[#allocation2 + $0x90] sm:$0xff]  ;;  %267 = vst [vmem:[%s436_s2 + $0x18] sm:$0xff] %v50_v8  ;;  %v85_v18 = vld [vmem:[#allocation0 + $0x48] sm:$0xff] }
  0x20   :  { %v80_v17 = vsub.f32 %v75_v14, %v77_v15  ;;  %v87_v19 = vld [vmem:[#allocation2 + $0x48] sm:$0xff]  ;;  %269 = vst [vmem:[%s436_s2 + $0x30] sm:$0xff] %v70_v16  ;;  %v125_v29 = vld [vmem:[#allocation0 + $0x20] sm:$0xff]  ;;  %v145_v36 = vld [vmem:[#allocation0 + $0x38] sm:$0xff] }
  0x21   :  { %266 = vst [vmem:[%s436_s2 + $0x60] sm:$0xff] %v40_v7  ;;  %v95_v20 = vld [vmem:[#allocation0 + $0xa8] sm:$0xff]  ;;  %268 = vst [vmem:[%s436_s2 + $0x78] sm:$0xff] %v60_v12  ;;  %v90_v21 = vsub.f32 %v85_v18, %v87_v19  ;;  %v127_v31 = vld [vmem:[#allocation2 + $0x20] sm:$0xff] }
  0x22   :  { %v97_v22 = vld [vmem:[#allocation2 + $0xa8] sm:$0xff]  ;;  %270 = vst [vmem:[%s436_s2 + $0x90] sm:$0xff] %v80_v17  ;;  %v135_v32 = vld [vmem:[#allocation0 + $0x80] sm:$0xff]  ;;  %v130_v34 = vsub.f32 %v125_v29, %v127_v31  ;;  %v147_v37 = vld [vmem:[#allocation2 + $0x38] sm:$0xff] }
  0x23   :  { %v105_v23 = vld [vmem:[#allocation0 + $0x8] sm:$0xff]  ;;  %v100_v25 = vsub.f32 %v95_v20, %v97_v22  ;;  %271 = vst [vmem:[%s436_s2 + $0x48] sm:$0xff] %v90_v21  ;;  %v137_v33 = vld [vmem:[#allocation2 + $0x80] sm:$0xff]  ;;  %v155_v38 = vld [vmem:[#allocation0 + $0x98] sm:$0xff]  ;;  %v150_v39 = vsub.f32 %v145_v36, %v147_v37 }
  0x24   :  { %v107_v24 = vld [vmem:[#allocation2 + $0x8] sm:$0xff]  ;;  %v140_v35 = vsub.f32 %v135_v32, %v137_v33  ;;  %v157_v40 = vld [vmem:[#allocation2 + $0x98] sm:$0xff]  ;;  %v165_v41 = vld [vmem:[#allocation0 + $0x50] sm:$0xff]  ;;  %275 = vst [vmem:[%s436_s2 + $0x20] sm:$0xff] %v130_v34 }
  0x25   :  { %v110_v26 = vsub.f32 %v105_v23, %v107_v24  ;;  %v115_v27 = vld [vmem:[#allocation0 + $0x68] sm:$0xff]  ;;  %272 = vst [vmem:[%s436_s2 + $0xa8] sm:$0xff] %v100_v25  ;;  %v167_v42 = vld [vmem:[#allocation2 + $0x50] sm:$0xff]  ;;  %v160_v43 = vsub.f32 %v155_v38, %v157_v40  ;;  %277 = vst [vmem:[%s436_s2 + $0x38] sm:$0xff] %v150_v39 }
  0x26   :  { %v117_v28 = vld [vmem:[#allocation2 + $0x68] sm:$0xff]  ;;  %276 = vst [vmem:[%s436_s2 + $0x80] sm:$0xff] %v140_v35  ;;  %v170_v44 = vsub.f32 %v165_v41, %v167_v42  ;;  %v175_v45 = vld [vmem:[#allocation0 + $0xb0] sm:$0xff]  ;;  %v225_v59 = vld [vmem:[#allocation0 + $0x40] sm:$0xff] }
  0x27   :  { %v120_v30 = vsub.f32 %v115_v27, %v117_v28  ;;  %273 = vst [vmem:[%s436_s2 + $0x8] sm:$0xff] %v110_v26  ;;  %v177_v46 = vld [vmem:[#allocation2 + $0xb0] sm:$0xff]  ;;  %278 = vst [vmem:[%s436_s2 + $0x98] sm:$0xff] %v160_v43  ;;  %v205_v54 = vld [vmem:[#allocation0 + $0x28] sm:$0xff] }
  0x28   :  { %v185_v47 = vld [vmem:[#allocation0 + $0x10] sm:$0xff]  ;;  %v180_v48 = vsub.f32 %v175_v45, %v177_v46  ;;  %279 = vst [vmem:[%s436_s2 + $0x50] sm:$0xff] %v170_v44  ;;  %v207_v55 = vld [vmem:[#allocation2 + $0x28] sm:$0xff]  ;;  %v227_v60 = vld [vmem:[#allocation2 + $0x40] sm:$0xff] }
  0x29   :  { %274 = vst [vmem:[%s436_s2 + $0x68] sm:$0xff] %v120_v30  ;;  %v187_v49 = vld [vmem:[#allocation2 + $0x10] sm:$0xff]  ;;  %v215_v56 = vld [vmem:[#allocation0 + $0x88] sm:$0xff]  ;;  %v210_v57 = vsub.f32 %v205_v54, %v207_v55  ;;  %v230_v62 = vsub.f32 %v225_v59, %v227_v60  ;;  %v235_v63 = vld [vmem:[#allocation0 + $0xa0] sm:$0xff] }
  0x2a   :  { %v195_v50 = vld [vmem:[#allocation0 + $0x70] sm:$0xff]  ;;  %v190_v52 = vsub.f32 %v185_v47, %v187_v49  ;;  %280 = vst [vmem:[%s436_s2 + $0xb0] sm:$0xff] %v180_v48  ;;  %v217_v58 = vld [vmem:[#allocation2 + $0x88] sm:$0xff]  ;;  %v237_v0 = vld [vmem:[#allocation2 + $0xa0] sm:$0xff] }
  0x2b   :  { %v197_v51 = vld [vmem:[#allocation2 + $0x70] sm:$0xff]  ;;  %v220_v61 = vsub.f32 %v215_v56, %v217_v58  ;;  %v245_v1 = vld [vmem:[#allocation0 + $0x58] sm:$0xff]  ;;  %283 = vst [vmem:[%s436_s2 + $0x28] sm:$0xff] %v210_v57  ;;  %v240_v2 = vsub.f32 %v235_v63, %v237_v0  ;;  %285 = vst [vmem:[%s436_s2 + $0x40] sm:$0xff] %v230_v62 }
  0x2c   :  { %v200_v53 = vsub.f32 %v195_v50, %v197_v51  ;;  %281 = vst [vmem:[%s436_s2 + $0x10] sm:$0xff] %v190_v52  ;;  %v247_v3 = vld [vmem:[#allocation2 + $0x58] sm:$0xff] }
  0x2d   :  { %v255_v4 = vld [vmem:[#allocation0 + $0xb8] sm:$0xff]  ;;  %284 = vst [vmem:[%s436_s2 + $0x88] sm:$0xff] %v220_v61  ;;  %v250_v6 = vsub.f32 %v245_v1, %v247_v3  ;;  %286 = vst [vmem:[%s436_s2 + $0xa0] sm:$0xff] %v240_v2 }
  0x2e   :  { %282 = vst [vmem:[%s436_s2 + $0x70] sm:$0xff] %v200_v53  ;;  %v257_v5 = vld [vmem:[#allocation2 + $0xb8] sm:$0xff] }
  0x2f   :  { %v260_v7 = vsub.f32 %v255_v4, %v257_v5  ;;  %287 = vst [vmem:[%s436_s2 + $0x58] sm:$0xff] %v250_v6 }
  0x31   :  { %288 = vst [vmem:[%s436_s2 + $0xb8] sm:$0xff] %v260_v7 }
  0x32   :  { %264 = vsyncpa [#allocation1], 1 }
  0x33   :  { %265 = vsyncpa [#allocation3], 1 }

// kernel: ihr_forward.1
= control target key start
LH: loop header
LB: loop body
LE: loop exit
PB: predicated region body
PF: predicated region fallthrough
CT: control target
= control target key end

     0   :  { %s3087_s12 = smov 0   ;;  %s5412_s0 = inlined_call_operand.vmem [shape: f32[2,8,1024], index: 0, kind: input, shape index: {}]   ;;  %s5413_s1 = inlined_call_operand.vmem [shape: f32[4,8,72], index: 1, kind: input, shape index: {}]   ;;  %s5414_s2 = inlined_call_operand.vmem [shape: f32[4,8,1], index: 2, kind: input, shape index: {}]   ;;  %s5415_s3 = inlined_call_operand.vmem [shape: f32[2,8,1024], index: 3, kind: output, shape index: {}]  }
   0x1 LB: > { %s2786_s13 = sadd.s32 4294967295, %s3055_s12   ;;  %p2790_p0 = scmp.ge.s32.totalorder %s3055_s12, 1  ;;  %s3055_s12 = sphi %s3087_s12, %s13_s12  }
   0x2   : > { %p137_p1 = scmp.lt.s32.totalorder %s3055_s12, 3 }
   0x4   : > { %p138_p2 = pnand %p2790_p0, %p137_p1 }
   0x6   : > { %141 = sbr.rel (%p138_p2) target bundleno = 1689 (0x699), region = 32 }
   0xb   : > { %p161_p3 = scmp.lt.s32.totalorder %s2786_s13, 1  ;;  %s3057_s18 = smov 95   ;;  %v5443_v6 = vmov 0.0   ;;  %v179_v9 = vlaneseq  ;;  %v3066_v17 = vmov 0   ;;  %v5474_v20 = vmov 0  ;;  %v349_v28 = vld [vmem:[%s5414_s2] sm:$0xff] }
   0xc   : > { %s3058_s19 = smov 96   ;;  %s3059_s20 = smov 97   ;;  %815 = vmatprep.mubr.f32.mxu0 %v5443_v6  ;;  %886 = vmatprep.mubr.f32.mxu1 %v5443_v6  ;;  %v5483_v47 = vmov 0  ;;  %v5485_v62 = vmov 0 }
   0xd   : > { %s5794_s13 = smov (!%p161_p3, %s2786_s13), 1  ;;  %s3060_s21 = smov 127   ;;  %v3239_v10 = vand.u32 127, %v179_v9  ;;  %3039 = vset.pattern.permute.xlu0 %v3066_v17  ;;  %3040 = vset.pattern.permute.xlu1 %v3066_v17 }
   0xe   : > { %s3019_s14 = sshll.u32 %s5794_s13, 6  ;;  %s3061_s22 = smov 1  }
   0xf   : > { %s3103_s17 = scalar_lea.vmem %s5412_s0, %s3019_s14  ;;  %s3062_s23 = smov 31   ;;  %v181_v11 = vadd.s32 128, %v3239_v10  ;;  %v192_v15 = vand.u32 31, %v3239_v10  ;;  %vm5423_vm1 = vcmp.lt.s32.totalorder %v3239_v10, 95  ;;  %vm5424_vm3 = vcmp.lt.s32.totalorder %v3239_v10, 96 }
  0x10   : > { %v3106_v0 = vld [vmem:[%s3103_s17 + $0x8] sm:$0xff]  ;;  %v3109_v1 = vld [vmem:[%s3103_s17] sm:$0xff]  ;;  %v3116_v2 = vld [vmem:[%s3103_s17 + $0x10] sm:$0xff]  ;;  %s3063_s24 = smov 32   ;;  %s3065_s25 = smov 33   ;;  %vm5418_vm4 = vcmp.lt.s32.totalorder %v3239_v10, 97 }
  0x11   : > { %695 = vrot.lane.b32.xlu0 %v3106_v0, %s3057_s18  ;;  %693 = vrot.lane.b32.xlu1 %v3109_v1, %s3057_s18  ;;  %v3139_v3 = vld [vmem:[%s3103_s17 + $0x18] sm:$0xff]  ;;  %v3142_v4 = vld [vmem:[%s3103_s17 + $0x20] sm:$0xff]  ;;  %v199_v12 = vand.u32 31, %v181_v11  ;;  %vm3262_vm2 = vcmp.lt.s32.totalorder %v192_v15, 31  ;;  %vm3303_vm6 = vcmp.ge.s32.totalorder %v192_v15, 1  ;;  %v183_v33 = vadd.s32 384, %v3239_v10 }
  0x12   : > { %v3153_v5 = vld [vmem:[%s3103_s17 + $0x38] sm:$0xff]  ;;  %v3190_v7 = vld [vmem:[%s3103_s17 + $0x28] sm:$0xff]  ;;  %v3193_v8 = vld [vmem:[%s3103_s17 + $0x30] sm:$0xff]  ;;  %v5475_v20 = vsel %vm3262_vm2, 4294967295, %v5474_v20  ;;  %v182_v36 = vadd.s32 256, %v3239_v10  ;;  %vm5420_vm7 = vcmp.lt.s32.totalorder %v3239_v10, 127 }
  0x13   : > { %vm3257_vm0 = vcmp.lt.s32.totalorder %v199_v12, 31  ;;  %5476 = vst [vmem:[#allocation2_spill] sm:$0xff] %v5475_v20  ;;  %vm3292_vm5 = vcmp.ge.s32.totalorder %v199_v12, 1  ;;  %v213_v38 = vand.u32 31, %v183_v33  ;;  %vm5422_vm10 = vcmp.lt.s32.totalorder %v3239_v10, 1 }
  0x14   : > { %v206_v41 = vand.u32 31, %v182_v36  ;;  %vm5419_vm11 = vcmp.ge.s32.totalorder %v3239_v10, 32  ;;  %vm5416_vm12 = vcmp.lt.s32.totalorder %v3239_v10, 31  ;;  %v5489_v12 = vmov 0 }
  0x15   : > { %697 = vrot.lane.b32.xlu0 %v3116_v2, %s3057_s18  ;;  %646 = vrot.lane.b32.xlu1 %v3106_v0, %s3058_s19  ;;  %vm3331_vm8 = vcmp.lt.s32.totalorder %v213_v38, 31  ;;  %vm3384_vm13 = vmand %vm5419_vm11, %vm3262_vm2  ;;  %vm3398_vm14 = vcmp.ge.s32.totalorder %v213_v38, 1 }
  0x16   : > { %vm3337_vm9 = vcmp.lt.s32.totalorder %v206_v41, 31  ;;  %v5486_v62 = vsel %vm3384_vm13, 4294967295, %v5485_v62  ;;  %vm3404_vm15 = vcmp.ge.s32.totalorder %v206_v41, 1 }
  0x17   : > { %v5484_v47 = vsel %vm3337_vm9, 4294967295, %v5483_v47  ;;  %v5490_v12 = vsel %vm3404_vm15, 4294967295, %v5489_v12 }
  0x19   : > { %648 = vrot.lane.b32.xlu0 %v3116_v2, %s3058_s19  ;;  %644 = vrot.lane.b32.xlu1 %v3109_v1, %s3058_s19 }
  0x1d   : > { %597 = vrot.lane.b32.xlu0 %v3106_v0, %s3059_s20  ;;  %599 = vrot.lane.b32.xlu1 %v3116_v2, %s3059_s20 }
  0x21   : > { %595 = vrot.lane.b32.xlu0 %v3109_v1, %s3059_s20  ;;  %548 = vrot.lane.b32.xlu1 %v3106_v0, %s3060_s21 }
  0x25   : > { %550 = vrot.lane.b32.xlu0 %v3116_v2, %s3060_s21  ;;  %546 = vrot.lane.b32.xlu1 %v3109_v1, %s3060_s21 }
  0x29   : > { %699 = vrot.lane.b32.xlu0 %v3139_v3, %s3057_s18  ;;  %701 = vrot.lane.b32.xlu1 %v3142_v4, %s3057_s18 }
  0x2d   : > { %497 = vrot.lane.b32.xlu0 %v3109_v1, %s3061_s22  ;;  %499 = vrot.lane.b32.xlu1 %v3106_v0, %s3061_s22 }
  0x31   : > { %511 = vrot.lane.b32.xlu0 %v3153_v5, %s3061_s22  ;;  %650 = vrot.lane.b32.xlu1 %v3139_v3, %s3058_s19 }
  0x35   : > { %652 = vrot.lane.b32.xlu0 %v3142_v4, %s3058_s19  ;;  %448 = vrot.lane.b32.xlu1 %v3109_v1, %s3062_s23 }
  0x39   : > { %450 = vrot.lane.b32.xlu0 %v3106_v0, %s3062_s23  ;;  %462 = vrot.lane.b32.xlu1 %v3153_v5, %s3062_s23 }
  0x3d   : > { %601 = vrot.lane.b32.xlu0 %v3139_v3, %s3059_s20  ;;  %603 = vrot.lane.b32.xlu1 %v3142_v4, %s3059_s20 }
  0x41   : > { %399 = vrot.lane.b32.xlu0 %v3109_v1, %s3063_s24  ;;  %401 = vrot.lane.b32.xlu1 %v3106_v0, %s3063_s24 }
  0x45   : > { %413 = vrot.lane.b32.xlu0 %v3153_v5, %s3063_s24  ;;  %552 = vrot.lane.b32.xlu1 %v3139_v3, %s3060_s21 }
  0x49   : > { %554 = vrot.lane.b32.xlu0 %v3142_v4, %s3060_s21  ;;  %350 = vrot.lane.b32.xlu1 %v3109_v1, %s3065_s25 }
  0x4d   : > { %352 = vrot.lane.b32.xlu0 %v3106_v0, %s3065_s25  ;;  %364 = vrot.lane.b32.xlu1 %v3153_v5, %s3065_s25 }
  0x51   : > { %703 = vrot.lane.b32.xlu0 %v3190_v7, %s3057_s18  ;;  %705 = vrot.lane.b32.xlu1 %v3193_v8, %s3057_s18 }
  0x55   : > { %501 = vrot.lane.b32.xlu0 %v3116_v2, %s3061_s22  ;;  %503 = vrot.lane.b32.xlu1 %v3139_v3, %s3061_s22 }
  0x59   : > { %654 = vrot.lane.b32.xlu0 %v3190_v7, %s3058_s19  ;;  %656 = vrot.lane.b32.xlu1 %v3193_v8, %s3058_s19 }
  0x5d   : > { %452 = vrot.lane.b32.xlu0 %v3116_v2, %s3062_s23  ;;  %454 = vrot.lane.b32.xlu1 %v3139_v3, %s3062_s23 }
  0x61   : > { %605 = vrot.lane.b32.xlu0 %v3190_v7, %s3059_s20  ;;  %607 = vrot.lane.b32.xlu1 %v3193_v8, %s3059_s20 }
  0x65   : > { %403 = vrot.lane.b32.xlu0 %v3116_v2, %s3063_s24  ;;  %405 = vrot.lane.b32.xlu1 %v3139_v3, %s3063_s24 }
  0x69   : > { %556 = vrot.lane.b32.xlu0 %v3190_v7, %s3060_s21  ;;  %558 = vrot.lane.b32.xlu1 %v3193_v8, %s3060_s21 }
  0x6d   : > { %354 = vrot.lane.b32.xlu0 %v3116_v2, %s3065_s25  ;;  %356 = vrot.lane.b32.xlu1 %v3139_v3, %s3065_s25 }
  0x71   : > { %707 = vrot.lane.b32.xlu0 %v3153_v5, %s3057_s18  ;;  %505 = vrot.lane.b32.xlu1 %v3142_v4, %s3061_s22 }
  0x75   : > { %507 = vrot.lane.b32.xlu0 %v3190_v7, %s3061_s22  ;;  %658 = vrot.lane.b32.xlu1 %v3153_v5, %s3058_s19 }
  0x79   : > { %456 = vrot.lane.b32.xlu0 %v3142_v4, %s3062_s23  ;;  %458 = vrot.lane.b32.xlu1 %v3190_v7, %s3062_s23 }
  0x7d   : > { %609 = vrot.lane.b32.xlu0 %v3153_v5, %s3059_s20  ;;  %407 = vrot.lane.b32.xlu1 %v3142_v4, %s3063_s24 }
  0x81   : > { %409 = vrot.lane.b32.xlu0 %v3190_v7, %s3063_s24  ;;  %560 = vrot.lane.b32.xlu1 %v3153_v5, %s3060_s21 }
  0x83   : > { %v696_v13 = vpop.permute.xlu0 %695  ;;  %v3250_v14 = vpop.permute.xlu1 %693 }
  0x84   : > { %v716_v22 = vsel %vm5423_vm1, %v3250_v14, %v696_v13 }
  0x85   : > { %358 = vrot.lane.b32.xlu0 %v3142_v4, %s3065_s25  ;;  %360 = vrot.lane.b32.xlu1 %v3190_v7, %s3065_s25 }
  0x87   : > { %v698_v18 = vpop.permute.xlu0 %697  ;;  %v647_v19 = vpop.permute.xlu1 %646 }
  0x88   : > { %v715_v21 = vsel %vm5423_vm1, %v696_v13, %v698_v18 }
  0x89   : > { %2795 = vmatprep.subr.msk.mxu0 %vm3257_vm0, %v715_v21  ;;  %509 = vrot.lane.b32.xlu0 %v3193_v8, %s3061_s22 }
  0x8a   : > { %460 = vrot.lane.b32.xlu1 %v3193_v8, %s3062_s23  ;;  %2796 = vmatpush1.msk.msra.mxu0 %vm3262_vm2, %v716_v22 }
  0x8b   : > { %v649_v23 = vpop.permute.xlu0 %648  ;;  %v3280_v24 = vpop.permute.xlu1 %644 }
  0x8c   : > { %v666_v25 = vsel %vm5424_vm3, %v647_v19, %v649_v23  ;;  %v667_v26 = vsel %vm5424_vm3, %v3280_v24, %v647_v19 }
  0x8d   : > { %411 = vrot.lane.b32.xlu0 %v3193_v8, %s3063_s24  ;;  %767 = vmatprep.subr.mxu0 %v666_v25  ;;  %v185_v25 = vadd.s32 640, %v3239_v10 }
  0x8e   : > { %362 = vrot.lane.b32.xlu1 %v3193_v8, %s3065_s25  ;;  %768 = vmatpush1.msra.mxu0 %v667_v26 }
  0x8f   : > { %v598_v29 = vpop.permute.xlu0 %597  ;;  %v600_v30 = vpop.permute.xlu1 %599  ;;  %v227_v33 = vand.u32 31, %v185_v25  ;;  %v3549_v25 = vadd.s32 896, %v3239_v10 }
  0x90   : > { %v617_v31 = vsel %vm5418_vm4, %v598_v29, %v600_v30 }
  0x91   : > { %2797 = vmatprep.subr.msk.mxu0 %vm3292_vm5, %v617_v31  ;;  %744 = vperm.xlu0 %3039, %v349_v28  }
  0x93   : > { %v3308_v34 = vpop.permute.xlu0 %595  ;;  %v549_v35 = vpop.permute.xlu1 %548 }
  0x94   : > { %v618_v37 = vsel %vm5418_vm4, %v3308_v34, %v598_v29  ;;  %v184_v29 = vadd.s32 512, %v3239_v10 }
  0x95   : > { %2798 = vmatpush1.msk.msra.mxu0 %vm3303_vm6, %v618_v37  ;;  %v5491_v37 = vmov 0 }
  0x96   : > { %v220_v38 = vand.u32 31, %v184_v29 }
  0x97   : > { %v3317_v39 = vpop.permute.xlu0 %550  ;;  %v3319_v40 = vpop.permute.xlu1 %546 }
  0x98   : > { %v568_v42 = vsel %vm5420_vm7, %v549_v35, %v3317_v39  ;;  %v569_v43 = vsel %vm5420_vm7, %v3319_v40, %v549_v35 }
  0x99   : > { %2799 = vmatprep.subr.msk.mxu0 %vm3257_vm0, %v568_v42  ;;  %v3467_v42 = vld [vmem:[%s5413_s1] sm:$0xff] }
  0x9a   : > { %2800 = vmatpush1.msk.msra.mxu0 %vm3262_vm2, %v569_v43 }
  0x9b   : > { %v700_v45 = vpop.permute.xlu0 %699  ;;  %v3335_v46 = vpop.permute.xlu1 %701  ;;  %773 = vmatprep.subr.mxu0 %v3106_v0 }
  0x9c   : > { %v713_v48 = vsel %vm5423_vm1, %v700_v45, %v3335_v46  ;;  %v714_v49 = vsel %vm5423_vm1, %v698_v18, %v700_v45  ;;  %774 = vmatpush1.msra.mxu0 %v3109_v1  ;;  %v5487_v1 = vmov 0 }
  0x9d   : > { %2809 = vmatprep.subr.msk.mxu1 %vm3331_vm8, %v713_v48  ;;  %v5488_v1 = vsel %vm3398_vm14, 4294967295, %v5487_v1  ;;  %v5495_v48 = vmov 0 }
  0x9e   : > { %2810 = vmatpush1.msk.msra.mxu1 %vm3337_vm9, %v714_v49 }
  0x9f   : > { %v498_v50 = vpop.permute.xlu0 %497  ;;  %v3353_v51 = vpop.permute.xlu1 %499 }
  0xa0   : > { %v520_v52 = vsel %vm5422_vm10, %v498_v50, %v3353_v51 }
  0xa1   : > { %2801 = vmatprep.subr.msk.mxu0 %vm3292_vm5, %v520_v52 }
  0xa3   : > { %v3360_v53 = vpop.permute.xlu0 %511  ;;  %v651_v54 = vpop.permute.xlu1 %650 }
  0xa4   : > { %v521_v55 = vsel %vm5422_vm10, %v3360_v53, %v498_v50  ;;  %v665_v59 = vsel %vm5424_vm3, %v649_v23, %v651_v54 }
  0xa5   : > { %2802 = vmatpush1.msk.msra.mxu0 %vm3303_vm6, %v521_v55 }
  0xa7   : > { %v3367_v56 = vpop.permute.xlu0 %652  ;;  %v449_v57 = vpop.permute.xlu1 %448 }
  0xa8   : > { %v664_v58 = vsel %vm5424_vm3, %v651_v54, %v3367_v56 }
  0xa9   : > { %838 = vmatprep.subr.mxu1 %v664_v58 }
  0xaa   : > { %839 = vmatpush1.msra.mxu1 %v665_v59 }
  0xab   : > { %v3376_v60 = vpop.permute.xlu0 %450  ;;  %v3378_v61 = vpop.permute.xlu1 %462 }
  0xac   : > { %v471_v63 = vsel %vm5416_vm12, %v449_v57, %v3376_v60  ;;  %v472_v0 = vsel %vm5416_vm12, %v3378_v61, %v449_v57  ;;  %vm5417_vm12 = vcmp.lt.s32.totalorder %v3239_v10, 32 }
  0xad   : > { %2803 = vmatprep.subr.msk.mxu0 %vm3257_vm0, %v471_v63 }
  0xae   : > { %2804 = vmatpush1.msk.msra.mxu0 %vm3384_vm13, %v472_v0 }
  0xaf   : > { %v602_v9 = vpop.permute.xlu0 %601  ;;  %v3402_v11 = vpop.permute.xlu1 %603 }
  0xb0   : > { %v615_v13 = vsel %vm5418_vm4, %v602_v9, %v3402_v11  ;;  %v616_v15 = vsel %vm5418_vm4, %v600_v30, %v602_v9  ;;  %vm3453_vm4 = vmand %vm5419_vm11, %vm3303_vm6 }
  0xb1   : > { %2811 = vmatprep.subr.msk.mxu1 %vm3398_vm14, %v615_v13  ;;  %v5492_v37 = vsel %vm3453_vm4, 4294967295, %v5491_v37 }
  0xb2   : > { %2812 = vmatpush1.msk.msra.mxu1 %vm3404_vm15, %v616_v15 }
  0xb3   : > { %v400_v17 = vpop.permute.xlu0 %399  ;;  %v3418_v18 = vpop.permute.xlu1 %401 }
  0xb4   : > { %v422_v19 = vsel %vm5417_vm12, %v400_v17, %v3418_v18 }
  0xb5   : > { %779 = vmatprep.subr.mxu0 %v422_v19 }
  0xb7   : > { %v3423_v21 = vpop.permute.xlu0 %413  ;;  %v553_v22 = vpop.permute.xlu1 %552 }
  0xb8   : > { %v423_v23 = vsel %vm5417_vm12, %v3423_v21, %v400_v17  ;;  %v567_v31 = vsel %vm5420_vm7, %v3317_v39, %v553_v22  ;;  %vm5421_vm12 = vcmp.lt.s32.totalorder %v3239_v10, 33  ;;  %v5501_v17 = vmov 0 }
  0xb9   : > { %2805 = vmatpush1.msk.msra.mxu0 %vm5419_vm11, %v423_v23  ;;  %vm5425_vm11 = vcmask 588800  }
  0xbb   : > { %v3431_v26 = vpop.permute.xlu0 %554  ;;  %v351_v28 = vpop.permute.xlu1 %350 }
  0xbc   : > { %v566_v30 = vsel %vm5420_vm7, %v553_v22, %v3431_v26  ;;  %vm3474_vm7 = vcmp.lt.s32.totalorder %v227_v33, 31 }
  0xbd   : > { %2813 = vmatprep.subr.msk.mxu1 %vm3331_vm8, %v566_v30 }
  0xbe   : > { %2814 = vmatpush1.msk.msra.mxu1 %vm3337_vm9, %v567_v31  ;;  %v241_v31 = vand.u32 31, %v3549_v25 }
  0xbf   : > { %v3445_v35 = vpop.permute.xlu0 %352  ;;  %v3447_v36 = vpop.permute.xlu1 %364  ;;  %844 = vmatprep.subr.mxu1 %v3139_v3  ;;  %v5493_v3 = vmov 0 }
  0xc0   : > { %v373_v39 = vsel %vm5421_vm12, %v351_v28, %v3445_v35  ;;  %v374_v41 = vsel %vm5421_vm12, %v3447_v36, %v351_v28  ;;  %845 = vmatpush1.msra.mxu1 %v3116_v2  ;;  %v5494_v3 = vsel %vm3474_vm7, 4294967295, %v5493_v3  ;;  %vm3482_vm12 = vcmp.lt.s32.totalorder %v220_v38, 31 }
  0xc1   : > { %2806 = vmatprep.subr.msk.mxu0 %vm3292_vm5, %v373_v39  ;;  %v5496_v48 = vsel %vm3482_vm12, 4294967295, %v5495_v48 }
  0xc2   : > { %2807 = vmatpush1.msk.msra.mxu0 %vm3453_vm4, %v374_v41  ;;  %vm5505_vm4 = vcmp.lt.s32.totalorder %v3239_v10, 32 }
  0xc3   : > { %v704_v43 = vpop.permute.xlu0 %703  ;;  %v3478_v45 = vpop.permute.xlu1 %705  ;;  %2808 = vmatmul.mubr.msk.f32.vlgmr.msra.gmra.mxu0 %vm5425_vm11, %v3467_v42  ;;  %vm3532_vm11 = vcmp.ge.s32.totalorder %v220_v38, 1 }
  0xc4   : > { %v712_v2 = vsel %vm5423_vm1, %v3335_v46, %v704_v43  ;;  %v711_v49 = vsel %vm5423_vm1, %v704_v43, %v3478_v45  ;;  %957 = vmatprep.mubr.f32.mxu0 %v5443_v6  ;;  %v5502_v17 = vsel %vm3532_vm11, 4294967295, %v5501_v17  ;;  %v5509_v43 = vmov 0 }
  0xc5   : > { %2822 = vmatprep.subr.msk.mxu0 %vm3474_vm7, %v711_v49 }
  0xc6   : > { %2823 = vmatpush1.msk.msra.mxu0 %vm3482_vm12, %v712_v2 }
  0xc7   : > { %v502_v50 = vpop.permute.xlu0 %501  ;;  %v3497_v52 = vpop.permute.xlu1 %503 }
  0xc8   : > { %v518_v54 = vsel %vm5422_vm10, %v502_v50, %v3497_v52  ;;  %v519_v46 = vsel %vm5422_vm10, %v3353_v51, %v502_v50  ;;  %vm5497_vm10 = vcmp.lt.s32.totalorder %v3239_v10, 31 }
  0xc9   : > { %2815 = vmatprep.subr.msk.mxu1 %vm3398_vm14, %v518_v54  ;;  %vm5498_vm1 = vmmov %vm5497_vm10 }
  0xca   : > { %2816 = vmatpush1.msk.msra.mxu1 %vm3404_vm15, %v519_v46 }
  0xcb   : > { %v655_v55 = vpop.permute.xlu0 %654  ;;  %v657_v57 = vpop.permute.xlu1 %656 }
  0xcc   : > { %v662_v58 = vsel %vm5424_vm3, %v655_v55, %v657_v57  ;;  %v663_v59 = vsel %vm5424_vm3, %v3367_v56, %v655_v55  ;;  %vm3526_vm3 = vcmp.ge.s32.totalorder %v227_v33, 1  ;;  %v186_v33 = vadd.s32 768, %v3239_v10 }
  0xcd   : > { %909 = vmatprep.subr.mxu0 %v662_v58 }
  0xce   : > { %910 = vmatpush1.msra.mxu0 %v663_v59  ;;  %v234_v2 = vand.u32 31, %v186_v33 }
  0xcf   : > { %v453_v63 = vpop.permute.xlu0 %452  ;;  %v3514_v0 = vpop.permute.xlu1 %454 }
  0xd0   : > { %v469_v51 = vsel %vm5497_vm10, %v453_v63, %v3514_v0  ;;  %v470_v9 = vsel %vm5498_vm1, %v3376_v60, %v453_v63  ;;  %vm5503_vm1 = vcmp.lt.s32.totalorder %v3239_v10, 97 }
  0xd1   : > { %2817 = vmatprep.subr.msk.mxu1 %vm3331_vm8, %v469_v51  ;;  %vm5504_vm10 = vmmov %vm5503_vm1  ;;  %v5525_v51 = vmov 0 }
  0xd2   : > { %2818 = vmatpush1.msk.msra.mxu1 %vm3337_vm9, %v470_v9 }
  0xd3   : > { %v606_v13 = vpop.permute.xlu0 %605  ;;  %v3530_v15 = vpop.permute.xlu1 %607 }
  0xd4   : > { %v614_v60 = vsel %vm5503_vm1, %v3402_v11, %v606_v13  ;;  %v613_v19 = vsel %vm5504_vm10, %v606_v13, %v3530_v15  ;;  %vm5506_vm1 = vmmov %vm5505_vm4  ;;  %vm5507_vm10 = vcmp.lt.s32.totalorder %v3239_v10, 127  ;;  %v5530_v13 = vmov 0 }
  0xd5   : > { %2824 = vmatprep.subr.msk.mxu0 %vm3526_vm3, %v613_v19  ;;  %vm5508_vm13 = vmmov %vm5507_vm10 }
  0xd6   : > { %2825 = vmatpush1.msk.msra.mxu0 %vm3532_vm11, %v614_v60 }
  0xd7   : > { %v404_v22 = vpop.permute.xlu0 %403  ;;  %v3546_v23 = vpop.permute.xlu1 %405 }
  0xd8   : > { %v420_v11 = vsel %vm5505_vm4, %v404_v22, %v3546_v23  ;;  %v421_v28 = vsel %vm5506_vm1, %v3418_v18, %v404_v22  ;;  %vm3568_vm4 = vcmp.lt.s32.totalorder %v241_v31, 31  ;;  %vm5436_vm1 = vcmp.lt.s32.totalorder %v3549_v25, 992 }
  0xd9   : > { %850 = vmatprep.subr.mxu1 %v420_v11  ;;  %v5510_v43 = vsel %vm3568_vm4, 4294967295, %v5509_v43  ;;  %vm3588_vm9 = vmand %vm5436_vm1, %vm3568_vm4 }
  0xda   : > { %851 = vmatpush1.msra.mxu1 %v421_v28 }
  0xdb   : > { %v557_v29 = vpop.permute.xlu0 %556  ;;  %v559_v30 = vpop.permute.xlu1 %558 }
  0xdc   : > { %v565_v38 = vsel %vm5507_vm10, %v3431_v26, %v557_v29  ;;  %v564_v39 = vsel %vm5508_vm13, %v557_v29, %v559_v30  ;;  %vm5511_vm10 = vcmp.lt.s32.totalorder %v3239_v10, 33 }
  0xdd   : > { %2826 = vmatprep.subr.msk.mxu0 %vm3474_vm7, %v564_v39  ;;  %vm5512_vm13 = vmmov %vm5511_vm10 }
  0xde   : > { %2827 = vmatpush1.msk.msra.mxu0 %vm3482_vm12, %v565_v38 }
  0xdf   : > { %v355_v18 = vpop.permute.xlu0 %354  ;;  %v357_v41 = vpop.permute.xlu1 %356  ;;  %915 = vmatprep.subr.mxu0 %v3190_v7  ;;  %v5513_v7 = vmov 0 }
  0xe0   : > { %v371_v26 = vsel %vm5511_vm10, %v355_v18, %v357_v41  ;;  %v372_v49 = vsel %vm5512_vm13, %v3445_v35, %v355_v18  ;;  %916 = vmatpush1.msra.mxu0 %v3142_v4  ;;  %v5514_v7 = vsel %vm3588_vm9, 4294967295, %v5513_v7  ;;  %vm5515_vm10 = vcmask 588800  }
  0xe1   : > { %2819 = vmatprep.subr.msk.mxu1 %vm3398_vm14, %v371_v26  ;;  %vm3594_vm13 = vcmp.lt.s32.totalorder %v234_v2, 31 }
  0xe2   : > { %2820 = vmatpush1.msk.msra.mxu1 %vm3404_vm15, %v372_v49  ;;  %vm5518_vm15 = vcmp.lt.s32.totalorder %v3239_v10, 95 }
  0xe3   : > { %v708_v50 = vpop.permute.xlu0 %707  ;;  %2821 = vmatmul.mubr.msk.f32.vlgmr.msra.gmra.mxu1 %vm5515_vm10, %v3467_v42  ;;  %v506_v35 = vpop.permute.xlu1 %505  ;;  %vm5519_vm14 = vmmov %vm5518_vm15  ;;  %vm5520_vm10 = vcmp.lt.s32.totalorder %v3239_v10, 1 }
  0xe4   : > { %v710_v54 = vsel %vm5518_vm15, %v3478_v45, %v708_v50  ;;  %v717_v46 = vsel %vm5519_vm14, %v708_v50, %v3250_v14  ;;  %1028 = vmatprep.mubr.f32.mxu1 %v5443_v6  ;;  %vm5521_vm15 = vcmp.lt.s32.totalorder %v3239_v10, 96  ;;  %vm5523_vm14 = vmmov %vm5520_vm10 }
  0xe5   : > { %2835 = vmatprep.subr.msk.mxu1 %vm3588_vm9, %v717_v46  ;;  %vm5522_vm1 = vmmov %vm5521_vm15  ;;  %v517_v63 = vsel %vm5523_vm14, %v3497_v52, %v506_v35  ;;  %vm5524_vm9 = vcmp.lt.s32.totalorder %v3549_v25, 992 }
  0xe6   : > { %2836 = vmatpush1.msk.msra.mxu1 %vm3594_vm13, %v710_v54 }
  0xe7   : > { %v508_v55 = vpop.permute.xlu0 %507  ;;  %v659_v58 = vpop.permute.xlu1 %658 }
  0xe8   : > { %v516_v59 = vsel %vm5520_vm10, %v506_v35, %v508_v55  ;;  %v668_v45 = vsel %vm5521_vm15, %v659_v58, %v3280_v24  ;;  %v661_v14 = vsel %vm5522_vm1, %v657_v57, %v659_v58  ;;  %vm3625_vm10 = vcmp.ge.s32.totalorder %v241_v31, 1 }
  0xe9   : > { %2828 = vmatprep.subr.msk.mxu0 %vm3526_vm3, %v516_v59  ;;  %2837 = vmatprep.subr.msk.mxu1 %vm5524_vm9, %v668_v45  ;;  %v5526_v51 = vsel %vm3625_vm10, 4294967295, %v5525_v51  ;;  %vm5528_vm1 = vcmp.lt.s32.totalorder %v3239_v10, 31  ;;  %vm3642_vm14 = vmand %vm5524_vm9, %vm3625_vm10  ;;  %vm5536_vm9 = vcmp.lt.s32.totalorder %v3239_v10, 127 }
  0xea   : > { %2829 = vmatpush1.msk.msra.mxu0 %vm3532_vm11, %v517_v63  ;;  %981 = vmatpush1.msra.mxu1 %v661_v14  ;;  %5527 = vst [vmem:[#allocation3_spill] sm:$0xff] %v5526_v51  ;;  %vm5529_vm15 = vmmov %vm5528_vm1  ;;  %v5531_v13 = vsel %vm3642_vm14, 4294967295, %v5530_v13 }
  0xeb   : > { %v457_v24 = vpop.permute.xlu0 %456  ;;  %v459_v57 = vpop.permute.xlu1 %458 }
  0xec   : > { %v468_v52 = vsel %vm5528_vm1, %v3514_v0, %v457_v24  ;;  %v467_v9 = vsel %vm5529_vm15, %v457_v24, %v459_v57  ;;  %vm3646_vm1 = vcmp.ge.s32.totalorder %v234_v2, 1  ;;  %v5532_v0 = vmov 0 }
  0xed   : > { %2830 = vmatprep.subr.msk.mxu0 %vm3474_vm7, %v467_v9  ;;  %v5533_v0 = vsel %vm3646_vm1, 4294967295, %v5532_v0  ;;  %vm5534_vm15 = vcmp.lt.s32.totalorder %v3239_v10, 97  ;;  %vm5537_vm7 = vcmp.lt.s32.totalorder %v3239_v10, 32 }
  0xee   : > { %2831 = vmatpush1.msk.msra.mxu0 %vm3482_vm12, %v468_v52  ;;  %vm5535_vm12 = vmmov %vm5534_vm15 }
  0xef   : > { %v610_v60 = vpop.permute.xlu0 %609  ;;  %v408_v19 = vpop.permute.xlu1 %407 }
  0xf0   : > { %v612_v22 = vsel %vm5534_vm15, %v3530_v15, %v610_v60  ;;  %v619_v11 = vsel %vm5535_vm12, %v610_v60, %v3308_v34  ;;  %vm5538_vm15 = vmmov %vm5536_vm9 }
  0xf1   : > { %2838 = vmatprep.subr.msk.mxu1 %vm3642_vm14, %v619_v11  ;;  %vm5539_vm12 = vmmov %vm5537_vm7 }
  0xf2   : > { %2839 = vmatpush1.msk.msra.mxu1 %vm3646_vm1, %v612_v22  ;;  %v419_v34 = vsel %vm5539_vm12, %v3546_v23, %v408_v19  ;;  %vm5543_vm12 = vcmp.lt.s32.totalorder %v3239_v10, 1 }
  0xf3   : > { %v410_v28 = vpop.permute.xlu0 %409  ;;  %v561_v29 = vpop.permute.xlu1 %560 }
  0xf4   : > { %v563_v31 = vsel %vm5536_vm9, %v559_v30, %v561_v29  ;;  %v418_v33 = vsel %vm5537_vm7, %v408_v19, %v410_v28  ;;  %v570_v15 = vsel %vm5538_vm15, %v561_v29, %v3319_v40  ;;  %vm5540_vm7 = vcmp.lt.s32.totalorder %v3239_v10, 33 }
  0xf5   : > { %921 = vmatprep.subr.mxu0 %v418_v33  ;;  %2840 = vmatprep.subr.msk.mxu1 %vm3568_vm4, %v570_v15  ;;  %vm5541_vm9 = vmmov %vm5540_vm7  ;;  %vm5542_vm15 = vcmask 588800  }
  0xf6   : > { %922 = vmatpush1.msra.mxu0 %v419_v34  ;;  %2841 = vmatpush1.msk.msra.mxu1 %vm3594_vm13, %v563_v31 }
  0xf7   : > { %v359_v30 = vpop.permute.xlu0 %358  ;;  %v361_v38 = vpop.permute.xlu1 %360  ;;  %986 = vmatprep.subr.mxu1 %v3153_v5 }
  0xf8   : > { %v370_v39 = vsel %vm5540_vm7, %v357_v41, %v359_v30  ;;  %v369_v40 = vsel %vm5541_vm9, %v359_v30, %v361_v38  ;;  %987 = vmatpush1.msra.mxu1 %v3193_v8  ;;  %vm5544_vm7 = vmmov %vm5543_vm12  ;;  %vm5545_vm9 = vcmp.lt.s32.totalorder %v3239_v10, 31 }
  0xf9   : > { %2832 = vmatprep.subr.msk.mxu0 %vm3526_vm3, %v369_v40  ;;  %v2850_v40 = vld [vmem:[%s5414_s2 + $0x8] sm:$0xff] }
  0xfa   : > { %2833 = vmatpush1.msk.msra.mxu0 %vm3532_vm11, %v370_v39 }
  0xfb   : > { %v510_v23 = vpop.permute.xlu0 %509  ;;  %2834 = vmatmul.mubr.msk.f32.vlgmr.msra.gmra.mxu0 %vm5542_vm15, %v3467_v42  ;;  %vm5546_vm15 = vmmov %vm5545_vm9 }
  0xfc   : > { %v515_v5 = vsel %vm5543_vm12, %v508_v55, %v510_v23  ;;  %v461_v18 = vpop.permute.xlu1 %460  ;;  %v514_v41 = vsel %vm5544_vm7, %v510_v23, %v3360_v53  ;;  %1375 = vmatprep.mubr.f32.mxu0 %v5443_v6  ;;  %vm5547_vm12 = vcmp.lt.s32.totalorder %v3239_v10, 32 }
  0xfd   : > { %v466_v8 = vsel %vm5545_vm9, %v459_v57, %v461_v18  ;;  %2842 = vmatprep.subr.msk.mxu1 %vm3625_vm10, %v514_v41  ;;  %v465_v2 = vsel %vm5546_vm15, %v461_v18, %v3378_v61  ;;  %vm5548_vm7 = vmmov %vm5547_vm12  ;;  %vm5549_vm9 = vcmp.lt.s32.totalorder %v3239_v10, 33 }
  0xfe   : > { %2843 = vmatpush1.msk.msra.mxu1 %vm3646_vm1, %v515_v5  ;;  %vm5550_vm15 = vmmov %vm5549_vm9 }
  0xff   : > { %v412_v26 = vpop.permute.xlu0 %411  ;;  %2844 = vmatprep.subr.msk.mxu1 %vm3568_vm4, %v465_v2  ;;  %vm5571_vm4 = vcmp.lt.s32.totalorder %v3239_v10, 127 }
 0x100   : > { %v363_v53 = vpop.permute.xlu1 %362  ;;  %2845 = vmatpush1.msk.msra.mxu1 %vm3594_vm13, %v466_v8  ;;  %v416_v49 = vsel %vm5547_vm12, %v412_v26, %v3423_v21  ;;  %v417_v50 = vsel %vm5548_vm7, %v410_v28, %v412_v26  ;;  %vm5551_vm12 = vcmask 588800   ;;  %vm5553_vm7 = vcmp.lt.s32.totalorder %v3239_v10, 95 }
 0x101   : > { %v368_v35 = vsel %vm5549_vm9, %v361_v38, %v363_v53  ;;  %992 = vmatprep.subr.mxu1 %v416_v49  ;;  %v367_v61 = vsel %vm5550_vm15, %v363_v53, %v3447_v36  ;;  %vm5554_vm9 = vmmov %vm5553_vm7  ;;  %vm5555_vm15 = vcmp.lt.s32.totalorder %v3239_v10, 96 }
 0x102   : > { %993 = vmatpush1.msra.mxu1 %v417_v50 }
 0x103   : > { %2846 = vmatprep.subr.msk.mxu1 %vm3625_vm10, %v367_v61  ;;  %vm5570_vm10 = vnez %v5490_v12 }
 0x104   : > { %2847 = vmatpush1.msk.msra.mxu1 %vm3646_vm1, %v368_v35 }
 0x105   : > { %2848 = vmatmul.mubr.msk.f32.vlgmr.msra.gmra.mxu1 %vm5551_vm12, %v3467_v42  ;;  %vm5556_vm12 = vmmov %vm5555_vm15 }
 0x106   : > { %1446 = vmatprep.mubr.f32.mxu1 %v5443_v6 }
 0x10c   : > { %v3722_v21 = vpop.permute.xlu0 %744 }
 0x183   : > { %v817_v54 = vpop.f32.mrf.mxu0 }
 0x184   : > { %v818_v46 = vadd.f32 %v817_v54, %v3722_v21 }
 0x185   : > { %v819_v14 = vpop.f32.mrf.mxu0 }
 0x186   : > { %v3725_v55 = vmax.f32 %v818_v46, 0.0  ;;  %v820_v63 = vadd.f32 %v819_v14, %v3722_v21 }
 0x188   : > { %1271 = vrot.lane.b32.xlu0 %v3725_v55, %s3057_s18  ;;  %v3768_v57 = vmax.f32 %v820_v63, 0.0 }
 0x1a3   : > { %v888_v36 = vpop.f32.mrf.mxu1 }
 0x1a4   : > { %v889_v58 = vadd.f32 %v888_v36, %v3722_v21 }
 0x1a5   : > { %v890_v42 = vpop.f32.mrf.mxu1 }
 0x1a6   : > { %v3730_v59 = vmax.f32 %v889_v58, 0.0  ;;  %v891_v45 = vadd.f32 %v890_v42, %v3722_v21 }
 0x1a8   : > { %1243 = vrot.lane.b32.xlu0 %v3730_v59, %s3058_s19  ;;  %1275 = vrot.lane.b32.xlu1 %v3730_v59, %s3057_s18  ;;  %v3762_v24 = vmax.f32 %v891_v45, 0.0 }
 0x1ac   : > { %1207 = vrot.lane.b32.xlu0 %v3725_v55, %s3059_s20  ;;  %1239 = vrot.lane.b32.xlu1 %v3725_v55, %s3058_s19 }
 0x1b0   : > { %1179 = vrot.lane.b32.xlu0 %v3730_v59, %s3060_s21  ;;  %1211 = vrot.lane.b32.xlu1 %v3730_v59, %s3059_s20 }
 0x1b4   : > { %1143 = vrot.lane.b32.xlu0 %v3725_v55, %s3061_s22  ;;  %1175 = vrot.lane.b32.xlu1 %v3725_v55, %s3060_s21 }
 0x1b8   : > { %1147 = vrot.lane.b32.xlu0 %v3730_v59, %s3061_s22  ;;  %1111 = vrot.lane.b32.xlu1 %v3725_v55, %s3062_s23 }
 0x1bb   : > { %v959_v52 = vpop.f32.mrf.mxu0 }
 0x1bc   : > { %1079 = vrot.lane.b32.xlu0 %v3725_v55, %s3063_s24  ;;  %1115 = vrot.lane.b32.xlu1 %v3730_v59, %s3062_s23  ;;  %v960_v9 = vadd.f32 %v959_v52, %v3722_v21 }
 0x1bd   : > { %v961_v33 = vpop.f32.mrf.mxu0 }
 0x1be   : > { %v3795_v60 = vmax.f32 %v960_v9, 0.0  ;;  %v962_v15 = vadd.f32 %v961_v33, %v3722_v21 }
 0x1c0   : > { %1083 = vrot.lane.b32.xlu0 %v3730_v59, %s3063_s24  ;;  %1047 = vrot.lane.b32.xlu1 %v3725_v55, %s3065_s25  ;;  %v3840_v34 = vmax.f32 %v962_v15, 0.0 }
 0x1c4   : > { %1277 = vrot.lane.b32.xlu0 %v3762_v24, %s3057_s18  ;;  %1051 = vrot.lane.b32.xlu1 %v3730_v59, %s3065_s25 }
 0x1c5   : > { %v1030_v19 = vpop.f32.mrf.mxu1 }
 0x1c6   : > { %v1031_v22 = vadd.f32 %v1030_v19, %v3722_v21 }
 0x1c7   : > { %v1032_v28 = vpop.f32.mrf.mxu1 }
 0x1c8   : > { %1209 = vrot.lane.b32.xlu0 %v3768_v57, %s3059_s20  ;;  %1273 = vrot.lane.b32.xlu1 %v3768_v57, %s3057_s18  ;;  %v3806_v11 = vmax.f32 %v1031_v22, 0.0  ;;  %v1033_v29 = vadd.f32 %v1032_v28, %v3722_v21 }
 0x1ca   : > { %5552 = vst [vmem:[#allocation4_spill] sm:$0xff] %v3806_v11  ;;  %v3829_v31 = vmax.f32 %v1033_v29, 0.0 }
 0x1cc   : > { %1213 = vrot.lane.b32.xlu0 %v3762_v24, %s3059_s20  ;;  %1241 = vrot.lane.b32.xlu1 %v3768_v57, %s3058_s19 }
 0x1d0   : > { %1113 = vrot.lane.b32.xlu0 %v3768_v57, %s3062_s23  ;;  %1245 = vrot.lane.b32.xlu1 %v3762_v24, %s3058_s19 }
 0x1d4   : > { %1117 = vrot.lane.b32.xlu0 %v3762_v24, %s3062_s23  ;;  %1177 = vrot.lane.b32.xlu1 %v3768_v57, %s3060_s21 }
 0x1d8   : > { %1049 = vrot.lane.b32.xlu0 %v3768_v57, %s3065_s25  ;;  %1181 = vrot.lane.b32.xlu1 %v3762_v24, %s3060_s21 }
 0x1dc   : > { %1053 = vrot.lane.b32.xlu0 %v3762_v24, %s3065_s25  ;;  %1145 = vrot.lane.b32.xlu1 %v3768_v57, %s3061_s22 }
 0x1e0   : > { %1149 = vrot.lane.b32.xlu1 %v3762_v24, %s3061_s22  ;;  %1247 = vrot.lane.b32.xlu0 %v3795_v60, %s3058_s19 }
 0x1e4   : > { %1081 = vrot.lane.b32.xlu1 %v3768_v57, %s3063_s24  ;;  %1183 = vrot.lane.b32.xlu0 %v3795_v60, %s3060_s21 }
 0x1e8   : > { %1085 = vrot.lane.b32.xlu1 %v3762_v24, %s3063_s24  ;;  %1251 = vrot.lane.b32.xlu0 %v3806_v11, %s3058_s19 }
 0x1ec   : > { %1279 = vrot.lane.b32.xlu1 %v3795_v60, %s3057_s18  ;;  %1187 = vrot.lane.b32.xlu0 %v3806_v11, %s3060_s21 }
 0x1f0   : > { %1215 = vrot.lane.b32.xlu1 %v3795_v60, %s3059_s20  ;;  %1151 = vrot.lane.b32.xlu0 %v3795_v60, %s3061_s22 }
 0x1f4   : > { %1155 = vrot.lane.b32.xlu0 %v3806_v11, %s3061_s22  ;;  %1283 = vrot.lane.b32.xlu1 %v3806_v11, %s3057_s18 }
 0x1f8   : > { %1087 = vrot.lane.b32.xlu0 %v3795_v60, %s3063_s24  ;;  %1219 = vrot.lane.b32.xlu1 %v3806_v11, %s3059_s20 }
 0x1fa   : > { %v3862_v30 = vpop.permute.xlu0 %1271 }
 0x1fc   : > { %1157 = vrot.lane.b32.xlu0 %v3829_v31, %s3061_s22  ;;  %1119 = vrot.lane.b32.xlu1 %v3795_v60, %s3062_s23 }
 0x200   : > { %1093 = vrot.lane.b32.xlu0 %v3829_v31, %s3063_s24  ;;  %1123 = vrot.lane.b32.xlu1 %v3806_v11, %s3062_s23 }
 0x204   : > { %1281 = vrot.lane.b32.xlu0 %v3840_v34, %s3057_s18  ;;  %1125 = vrot.lane.b32.xlu1 %v3829_v31, %s3062_s23 }
 0x208   : > { %1285 = vrot.lane.b32.xlu0 %v3829_v31, %s3057_s18  ;;  %1061 = vrot.lane.b32.xlu1 %v3829_v31, %s3065_s25 }
 0x20c   : > { %1217 = vrot.lane.b32.xlu0 %v3840_v34, %s3059_s20  ;;  %1249 = vrot.lane.b32.xlu1 %v3840_v34, %s3058_s19 }
 0x210   : > { %1221 = vrot.lane.b32.xlu0 %v3829_v31, %s3059_s20  ;;  %1253 = vrot.lane.b32.xlu1 %v3829_v31, %s3058_s19 }
 0x214   : > { %1091 = vrot.lane.b32.xlu0 %v3806_v11, %s3063_s24  ;;  %1055 = vrot.lane.b32.xlu1 %v3795_v60, %s3065_s25 }
 0x218   : > { %1121 = vrot.lane.b32.xlu0 %v3840_v34, %s3062_s23  ;;  %1185 = vrot.lane.b32.xlu1 %v3840_v34, %s3060_s21 }
 0x21a   : > { %v3868_v38 = vpop.permute.xlu0 %1243  ;;  %v3870_v39 = vpop.permute.xlu1 %1275 }
 0x21c   : > { %1057 = vrot.lane.b32.xlu0 %v3840_v34, %s3065_s25  ;;  %1189 = vrot.lane.b32.xlu1 %v3829_v31, %s3060_s21 }
 0x21e   : > { %v3879_v23 = vpop.permute.xlu0 %1207  ;;  %v3881_v5 = vpop.permute.xlu1 %1239 }
 0x220   : > { %1305 = vperm.xlu0 %3039, %v2850_v40   ;;  %1153 = vrot.lane.b32.xlu1 %v3840_v34, %s3061_s22 }
 0x222   : > { %v3885_v18 = vpop.permute.xlu0 %1179  ;;  %v3887_v41 = vpop.permute.xlu1 %1211 }
 0x224   : > { %1089 = vrot.lane.b32.xlu1 %v3840_v34, %s3063_s24 }
 0x226   : > { %v3891_v8 = vpop.permute.xlu0 %1143  ;;  %v3893_v2 = vpop.permute.xlu1 %1175 }
 0x228   : > { %1059 = vrot.lane.b32.xlu1 %v3806_v11, %s3065_s25 }
 0x22a   : > { %v3897_v26 = vpop.permute.xlu0 %1147  ;;  %v3899_v53 = vpop.permute.xlu1 %1111 }
 0x22e   : > { %v3901_v49 = vpop.permute.xlu0 %1079  ;;  %v3903_v50 = vpop.permute.xlu1 %1115 }
 0x232   : > { %v3905_v35 = vpop.permute.xlu0 %1083  ;;  %v3907_v61 = vpop.permute.xlu1 %1047 }
 0x236   : > { %v1278_v21 = vpop.permute.xlu0 %1277  ;;  %v3909_v54 = vpop.permute.xlu1 %1051 }
 0x23a   : > { %v1210_v46 = vpop.permute.xlu0 %1209  ;;  %v1274_v36 = vpop.permute.xlu1 %1273 }
 0x23b   : > { %v1293_v58 = vsel %vm5553_vm7, %v3862_v30, %v1274_v36  ;;  %v1292_v42 = vsel %vm5554_vm9, %v1274_v36, %v3870_v39  ;;  %vm5557_vm7 = vcmp.lt.s32.totalorder %v3239_v10, 97 }
 0x23c   : > { %2851 = vmatprep.subr.msk.mxu0 %vm3257_vm0, %v1292_v42  ;;  %v1228_v9 = vsel %vm5557_vm7, %v1210_v46, %v3887_v41  ;;  %vm5558_vm9 = vmmov %vm5557_vm7  ;;  %vm5561_vm7 = vcmp.lt.s32.totalorder %v3239_v10, 1 }
 0x23d   : > { %2852 = vmatpush1.msk.msra.mxu0 %vm3262_vm2, %v1293_v58  ;;  %v1229_v19 = vsel %vm5558_vm9, %v3879_v23, %v1210_v46  ;;  %vm5562_vm9 = vcmp.lt.s32.totalorder %v3239_v10, 95 }
 0x23e   : > { %v1214_v45 = vpop.permute.xlu0 %1213  ;;  %v1242_v14 = vpop.permute.xlu1 %1241 }
 0x23f   : > { %v1260_v63 = vsel %vm5555_vm15, %v1242_v14, %v3868_v38  ;;  %v1261_v52 = vsel %vm5556_vm12, %v3881_v5, %v1242_v14  ;;  %vm5559_vm15 = vcmp.lt.s32.totalorder %v3239_v10, 127 }
 0x240   : > { %1327 = vmatprep.subr.mxu0 %v1260_v63  ;;  %vm5560_vm12 = vmmov %vm5559_vm15 }
 0x241   : > { %1328 = vmatpush1.msra.mxu0 %v1261_v52 }
 0x242   : > { %v3933_v22 = vpop.permute.xlu0 %1113  ;;  %2853 = vmatprep.subr.msk.mxu0 %vm3292_vm5, %v1228_v9  ;;  %v1246_v28 = vpop.permute.xlu1 %1245 }
 0x243   : > { %2854 = vmatpush1.msk.msra.mxu0 %vm3303_vm6, %v1229_v19 }
 0x246   : > { %v3939_v29 = vpop.permute.xlu0 %1117  ;;  %v1178_v33 = vpop.permute.xlu1 %1177 }
 0x247   : > { %v1197_v15 = vsel %vm5559_vm15, %v3893_v2, %v1178_v33  ;;  %v1196_v40 = vsel %vm5560_vm12, %v1178_v33, %v3885_v18  ;;  %vm5563_vm15 = vmmov %vm5562_vm9  ;;  %vm5564_vm12 = vnez %v5484_v47 }
 0x248   : > { %2855 = vmatprep.subr.msk.mxu0 %vm3257_vm0, %v1196_v40 }
 0x249   : > { %2856 = vmatpush1.msk.msra.mxu0 %vm3262_vm2, %v1197_v15 }
 0x24a   : > { %v3951_v46 = vpop.permute.xlu0 %1049  ;;  %1333 = vmatprep.subr.mxu0 %v3768_v57  ;;  %v1182_v36 = vpop.permute.xlu1 %1181 }
 0x24b   : > { %1334 = vmatpush1.msra.mxu0 %v3725_v55 }
 0x24e   : > { %v3955_v58 = vpop.permute.xlu0 %1053  ;;  %v1146_v42 = vpop.permute.xlu1 %1145 }
 0x24f   : > { %v1165_v14 = vsel %vm5561_vm7, %v3891_v8, %v1146_v42  ;;  %vm5565_vm7 = vcmp.lt.s32.totalorder %v3239_v10, 96 }
 0x250   : > { %2857 = vmatprep.subr.msk.mxu0 %vm3292_vm5, %v1165_v14  ;;  %v1291_v14 = vsel %vm5563_vm15, %v3870_v39, %v1278_v21  ;;  %vm5567_vm15 = vcmp.lt.s32.totalorder %v3239_v10, 97 }
 0x251   : > { %vm5568_vm2 = vmmov %vm5567_vm15 }
 0x252   : > { %v3962_v63 = vpop.permute.xlu0 %1247  ;;  %v3964_v52 = vpop.permute.xlu1 %1149 }
 0x253   : > { %v1258_v6 = vsel %vm5565_vm7, %v1246_v28, %v3962_v63 }
 0x256   : > { %v3966_v9 = vpop.permute.xlu0 %1183  ;;  %v1082_v57 = vpop.permute.xlu1 %1081 }
 0x25a   : > { %v3968_v19 = vpop.permute.xlu0 %1251  ;;  %v3970_v55 = vpop.permute.xlu1 %1085 }
 0x25e   : > { %v3972_v33 = vpop.permute.xlu0 %1187  ;;  %v3974_v15 = vpop.permute.xlu1 %1279 }
 0x25f   : > { %v1290_v40 = vsel %vm5562_vm9, %v1278_v21, %v3974_v15  ;;  %vm5566_vm9 = vmmov %vm5565_vm7  ;;  %v1227_v21 = vsel %vm5568_vm2, %v3887_v41, %v1214_v45  ;;  %vm5569_vm7 = vnez %v5488_v1  ;;  %vm5573_vm2 = vcmp.lt.s32.totalorder %v3239_v10, 1 }
 0x260   : > { %2865 = vmatprep.subr.msk.mxu1 %vm3331_vm8, %v1290_v40  ;;  %v1259_v11 = vsel %vm5566_vm9, %v3868_v38, %v1246_v28  ;;  %vm5572_vm9 = vmmov %vm5571_vm4 }
 0x261   : > { %2866 = vmatpush1.msk.msra.mxu1 %vm5564_vm12, %v1291_v14 }
 0x262   : > { %v3989_v20 = vpop.permute.xlu0 %1151  ;;  %1398 = vmatprep.subr.mxu1 %v1258_v6  ;;  %v3991_v51 = vpop.permute.xlu1 %1215  ;;  %v1194_v6 = vsel %vm5571_vm4, %v1182_v36, %v3966_v9  ;;  %vm5574_vm4 = vmmov %vm5573_vm2 }
 0x263   : > { %1399 = vmatpush1.msra.mxu1 %v1259_v11  ;;  %v1226_v39 = vsel %vm5567_vm15, %v1214_v45, %v3991_v51  ;;  %v1195_v11 = vsel %vm5572_vm9, %v3885_v18, %v1182_v36  ;;  %v1163_v45 = vsel %vm5573_vm2, %v3897_v26, %v3964_v52  ;;  %v1164_v18 = vsel %vm5574_vm4, %v1146_v42, %v3897_v26 }
 0x264   : > { %2867 = vmatprep.subr.msk.mxu1 %vm5569_vm7, %v1226_v39  ;;  %vm5575_vm15 = vcmp.lt.s32.totalorder %v3239_v10, 31  ;;  %vm5577_vm2 = vcmp.lt.s32.totalorder %v3239_v10, 32 }
 0x265   : > { %2868 = vmatpush1.msk.msra.mxu1 %vm5570_vm10, %v1227_v21  ;;  %vm5576_vm9 = vmmov %vm5575_vm15  ;;  %v1099_v26 = vsel %vm5577_vm2, %v3905_v35, %v3970_v55  ;;  %v4069_v21 = vld [vmem:[%s5413_s1 + $0x8] sm:$0xff] }
 0x266   : > { %v4012_v38 = vpop.permute.xlu0 %1155  ;;  %2869 = vmatprep.subr.msk.mxu1 %vm3331_vm8, %v1194_v6  ;;  %v1284_v41 = vpop.permute.xlu1 %1283  ;;  %vm5578_vm4 = vmmov %vm5577_vm2 }
 0x267   : > { %2870 = vmatpush1.msk.msra.mxu1 %vm5564_vm12, %v1195_v11  ;;  %v5584_v11 = vmov 0.0  }
 0x268   : > { %1404 = vmatprep.subr.mxu1 %v3762_v24  ;;  %v1132_v24 = vsel %vm5576_vm9, %v3933_v22, %v3903_v50  ;;  %vm5580_vm9 = vcmp.lt.s32.totalorder %v3239_v10, 33 }
 0x269   : > { %1405 = vmatpush1.msra.mxu1 %v3730_v59  ;;  %v1131_v59 = vsel %vm5575_vm15, %v3903_v50, %v3939_v29  ;;  %v1100_v50 = vsel %vm5578_vm4, %v1082_v57, %v3905_v35  ;;  %vm5579_vm15 = vcmp.lt.s32.totalorder %v3239_v10, 1  ;;  %v1067_v39 = vsel %vm5580_vm9, %v3909_v54, %v3955_v58  ;;  %vm5581_vm2 = vmmov %vm5580_vm9 }
 0x26a   : > { %v4027_v28 = vpop.permute.xlu0 %1087  ;;  %2871 = vmatprep.subr.msk.mxu1 %vm5569_vm7, %v1163_v45  ;;  %v4031_v36 = vpop.permute.xlu1 %1219  ;;  %v1068_v35 = vsel %vm5581_vm2, %v3951_v46, %v3909_v54  ;;  %vm5582_vm4 = vcmp.lt.s32.totalorder %v3239_v10, 31  ;;  %vm5586_vm2 = vnez %v5486_v62 }
 0x26b   : > { %2872 = vmatpush1.msk.msra.mxu1 %vm5570_vm10, %v1164_v18  ;;  %vm5585_vm9 = vmmov %vm5582_vm4 }
 0x26c   : > { %2873 = vmatprep.subr.msk.mxu1 %vm3331_vm8, %v1131_v59 }
 0x26d   : > { %2874 = vmatpush1.msk.msra.mxu1 %vm5564_vm12, %v1132_v24  ;;  %vm5598_vm12 = vnez %v5494_v3 }
 0x26e   : > { %v4051_v42 = vpop.permute.xlu0 %1157  ;;  %1410 = vmatprep.subr.mxu1 %v1099_v26  ;;  %v4053_v40 = vpop.permute.xlu1 %1119 }
 0x26f   : > { %v1166_v14 = vsel %vm5579_vm15, %v4051_v42, %v3891_v8  ;;  %1411 = vmatpush1.msra.mxu1 %v1100_v50  ;;  %v1133_v8 = vsel %vm5582_vm4, %v3899_v53, %v3933_v22  ;;  %vm5583_vm15 = vcmask 588800   ;;  %vm5587_vm4 = vcmp.lt.s32.totalorder %v3239_v10, 32 }
 0x270   : > { %2858 = vmatpush1.msk.msra.mxu0 %vm3303_vm6, %v1166_v14  ;;  %2875 = vmatprep.subr.msk.mxu1 %vm5569_vm7, %v1067_v39  ;;  %v1101_v59 = vsel %vm5587_vm4, %v3901_v49, %v1082_v57 }
 0x271   : > { %2859 = vmatprep.subr.msk.mxu0 %vm3257_vm0, %v1133_v8  ;;  %2876 = vmatpush1.msk.msra.mxu1 %vm5570_vm10, %v1068_v35  ;;  %vm5589_vm10 = vcmp.ge.s32.totalorder %v3239_v10, 32 }
 0x272   : > { %v4087_v6 = vpop.permute.xlu0 %1093  ;;  %2877 = vmatmul.mubr.msk.f32.vlgmr.msra.gmra.mxu1 %vm5583_vm15, %v4069_v21  ;;  %v4091_v54 = vpop.permute.xlu1 %1123  ;;  %vm5588_vm15 = vmmov %vm5587_vm4 }
 0x273   : > { %1588 = vmatprep.mubr.f32.mxu1 %v5584_v11  ;;  %v1102_v24 = vsel %vm5588_vm15, %v4087_v6, %v3901_v49  ;;  %vm5594_vm15 = vnez %v5492_v37 }
 0x276   : > { %v1282_v45 = vpop.permute.xlu0 %1281  ;;  %v4094_v18 = vpop.permute.xlu1 %1125 }
 0x277   : > { %v1134_v22 = vsel %vm5585_vm9, %v4094_v18, %v3899_v53  ;;  %vm5590_vm9 = vcmp.lt.s32.totalorder %v3239_v10, 33 }
 0x278   : > { %2860 = vmatpush1.msk.msra.mxu0 %vm5586_vm2, %v1134_v22  ;;  %v1069_v53 = vsel %vm5590_vm9, %v3907_v61, %v3951_v46  ;;  %vm5591_vm2 = vcmp.lt.s32.totalorder %v3239_v10, 95  ;;  %vm5592_vm4 = vmmov %vm5590_vm9  ;;  %vm5595_vm9 = vnez %v5514_v7 }
 0x279   : > { %1339 = vmatprep.subr.mxu0 %v1101_v59  ;;  %v1288_v46 = vsel %vm5591_vm2, %v1282_v45, %v1284_v41  ;;  %vm5596_vm7 = vmmov %vm5591_vm2 }
 0x27a   : > { %v1286_v26 = vpop.permute.xlu0 %1285  ;;  %2861 = vmatpush1.msk.msra.mxu0 %vm5589_vm10, %v1102_v24  ;;  %v4111_v50 = vpop.permute.xlu1 %1061  ;;  %vm5593_vm10 = vmmov %vm5591_vm2 }
 0x27b   : > { %v1287_v57 = vsel %vm5591_vm2, %v1284_v41, %v1286_v26  ;;  %v1070_v49 = vsel %vm5592_vm4, %v4111_v50, %v3907_v61  ;;  %2862 = vmatprep.subr.msk.mxu0 %vm3292_vm5, %v1069_v53  ;;  %v1294_v14 = vsel %vm5593_vm10, %v1286_v26, %v3862_v30  ;;  %v1289_v61 = vsel %vm5596_vm7, %v3974_v15, %v1282_v45 }
 0x27c   : > { %2863 = vmatpush1.msk.msra.mxu0 %vm5594_vm15, %v1070_v49  ;;  %2891 = vmatprep.subr.msk.mxu1 %vm5595_vm9, %v1294_v14  ;;  %vm5597_vm4 = vcmask 588800   ;;  %vm5599_vm10 = vnez %v5496_v48  ;;  %vm5600_vm2 = vcmp.lt.s32.totalorder %v3239_v10, 96  ;;  %v5613_v14 = vld [vmem:[#allocation4_spill] sm:$0xff] }
 0x27d   : > { %2864 = vmatmul.mubr.msk.f32.vlgmr.msra.gmra.mxu0 %vm5597_vm4, %v4069_v21  ;;  %2878 = vmatprep.subr.msk.mxu0 %vm5598_vm12, %v1288_v46  ;;  %vm5601_vm7 = vmmov %vm5600_vm2  ;;  %vm5602_vm4 = vcmp.lt.s32.totalorder %v3239_v10, 97  ;;  %v5617_v46 = vld [vmem:[#allocation3_spill] sm:$0xff] }
 0x27e   : > { %2892 = vmatpush1.msk.msra.mxu1 %vm3594_vm13, %v1287_v57  ;;  %v1218_v30 = vpop.permute.xlu0 %1217  ;;  %2879 = vmatpush1.msk.msra.mxu0 %vm5599_vm10, %v1289_v61  ;;  %v1250_v39 = vpop.permute.xlu1 %1249  ;;  %vm5603_vm9 = vmmov %vm5602_vm4 }
 0x27f   : > { %v1256_v41 = vsel %vm5600_vm2, %v1250_v39, %v3968_v19  ;;  %v1257_v15 = vsel %vm5601_vm7, %v3962_v63, %v1250_v39  ;;  %1517 = vmatprep.mubr.f32.mxu0 %v5584_v11  ;;  %v1224_v35 = vsel %vm5602_vm4, %v1218_v30, %v4031_v36  ;;  %v1225_v8 = vsel %vm5603_vm9, %v3991_v51, %v1218_v30  ;;  %vm5604_vm7 = vmmov %vm5600_vm2 }
 0x280   : > { %1469 = vmatprep.subr.mxu0 %v1256_v41  ;;  %vm5605_vm4 = vcmp.lt.s32.totalorder %v3549_v25, 992  ;;  %vm5606_vm15 = vmmov %vm5603_vm9 }
 0x281   : > { %1470 = vmatpush1.msra.mxu0 %v1257_v15 }
 0x282   : > { %v1222_v45 = vpop.permute.xlu0 %1221  ;;  %2880 = vmatprep.subr.msk.mxu0 %vm3526_vm3, %v1224_v35  ;;  %v1254_v22 = vpop.permute.xlu1 %1253 }
 0x283   : > { %2881 = vmatpush1.msk.msra.mxu0 %vm3532_vm11, %v1225_v8  ;;  %v1262_v63 = vsel %vm5600_vm2, %v1254_v22, %v3881_v5  ;;  %v1255_v59 = vsel %vm5604_vm7, %v3968_v19, %v1254_v22  ;;  %v1230_v51 = vsel %vm5603_vm9, %v1222_v45, %v3879_v23  ;;  %v1223_v24 = vsel %vm5606_vm15, %v4031_v36, %v1222_v45 }
 0x284   : > { %2893 = vmatprep.subr.msk.mxu1 %vm5605_vm4, %v1262_v63  ;;  %vm5607_vm2 = vcmp.lt.s32.totalorder %v3239_v10, 127  ;;  %vm5611_vm9 = vnez %v5510_v43 }
 0x285   : > { %1541 = vmatpush1.msra.mxu1 %v1255_v59  ;;  %vm5608_vm7 = vmmov %vm5607_vm2 }
 0x286   : > { %2894 = vmatprep.subr.msk.mxu1 %vm3642_vm14, %v1230_v51  ;;  %v1056_v5 = vpop.permute.xlu1 %1055  ;;  %v1092_v19 = vpop.permute.xlu0 %1091  ;;  %vm5609_vm15 = vmmov %vm5607_vm2 }
 0x287   : > { %2895 = vmatpush1.msk.msra.mxu1 %vm3646_vm1, %v1223_v24  ;;  %vm5610_vm4 = vmmov %vm5607_vm2 }
 0x28a   : > { %v1186_v26 = vpop.permute.xlu1 %1185  ;;  %v1122_v49 = vpop.permute.xlu0 %1121 }
 0x28b   : > { %v1193_v53 = vsel %vm5607_vm2, %v3966_v9, %v1186_v26  ;;  %v1192_v23 = vsel %vm5608_vm7, %v1186_v26, %v3972_v33  ;;  %vm5612_vm2 = vcmp.lt.s32.totalorder %v3239_v10, 1 }
 0x28c   : > { %2882 = vmatprep.subr.msk.mxu0 %vm5598_vm12, %v1192_v23  ;;  %vm5614_vm7 = vmmov %vm5612_vm2 }
 0x28d   : > { %2883 = vmatpush1.msk.msra.mxu0 %vm5599_vm10, %v1193_v53 }
 0x28e   : > { %1475 = vmatprep.subr.mxu0 %v3840_v34  ;;  %v1190_v36 = vpop.permute.xlu1 %1189  ;;  %v1058_v61 = vpop.permute.xlu0 %1057 }
 0x28f   : > { %v1191_v57 = vsel %vm5609_vm15, %v3972_v33, %v1190_v36  ;;  %1476 = vmatpush1.msra.mxu0 %v3795_v60  ;;  %v1198_v9 = vsel %vm5610_vm4, %v1190_v36, %v3893_v2  ;;  %vm5615_vm15 = vmmov %vm5612_vm2 }
 0x290   : > { %2896 = vmatprep.subr.msk.mxu1 %vm5611_vm9, %v1198_v9  ;;  %v1159_v2 = vsel %vm5615_vm15, %v4012_v38, %v4051_v42  ;;  %vm5616_vm4 = vmmov %vm5612_vm2 }
 0x291   : > { %2897 = vmatpush1.msk.msra.mxu1 %vm3594_vm13, %v1191_v57 }
 0x292   : > { %1546 = vmatprep.subr.mxu1 %v3829_v31  ;;  %v1154_v34 = vpop.permute.xlu1 %1153  ;;  %v1162_v31 = vsel %vm5616_vm4, %v3964_v52, %v3989_v20 }
 0x293   : > { %v1160_v33 = vsel %vm5612_vm2, %v1154_v34, %v4012_v38  ;;  %1547 = vmatpush1.msra.mxu1 %v5613_v14  ;;  %v1161_v60 = vsel %vm5614_vm7, %v3989_v20, %v1154_v34  ;;  %vm5618_vm2 = vnez %v5617_v46  ;;  %vm5619_vm7 = vcmp.lt.s32.totalorder %v3239_v10, 31 }
 0x294   : > { %2884 = vmatprep.subr.msk.mxu0 %vm3526_vm3, %v1161_v60  ;;  %2898 = vmatprep.subr.msk.mxu1 %vm5618_vm2, %v1159_v2  ;;  %v1129_v38 = vsel %vm5619_vm7, %v4053_v40, %v1122_v49  ;;  %vm5620_vm15 = vmmov %vm5619_vm7 }
 0x295   : > { %2885 = vmatpush1.msk.msra.mxu0 %vm3532_vm11, %v1162_v31  ;;  %2899 = vmatpush1.msk.msra.mxu1 %vm3646_vm1, %v1160_v33  ;;  %v1127_v20 = vsel %vm5620_vm15, %v4091_v54, %v4094_v18  ;;  %vm5621_vm4 = vmmov %vm5619_vm7  ;;  %vm5623_vm7 = vcmp.lt.s32.totalorder %v3239_v10, 32 }
 0x296   : > { %v1130_v52 = vsel %vm5621_vm4, %v3939_v29, %v4053_v40  ;;  %vm5622_vm14 = vmmov %vm5621_vm4  ;;  %2886 = vmatprep.subr.msk.mxu0 %vm5598_vm12, %v1129_v38  ;;  %2900 = vmatprep.subr.msk.mxu1 %vm5611_vm9, %v1127_v20  ;;  %v1090_v30 = vpop.permute.xlu1 %1089  ;;  %vm5627_vm9 = vcmp.lt.s32.totalorder %v3239_v10, 33 }
 0x297   : > { %v1128_v42 = vsel %vm5622_vm14, %v1122_v49, %v4091_v54  ;;  %2887 = vmatpush1.msk.msra.mxu0 %vm5599_vm10, %v1130_v52  ;;  %v1097_v29 = vsel %vm5623_vm7, %v4027_v28, %v1090_v30  ;;  %vm5624_vm14 = vmmov %vm5623_vm7  ;;  %v1065_v39 = vsel %vm5627_vm9, %v1056_v5, %v1058_v61 }
 0x298   : > { %2901 = vmatpush1.msk.msra.mxu1 %vm3594_vm13, %v1128_v42  ;;  %v1095_v40 = vsel %vm5624_vm14, %v1092_v19, %v4087_v6  ;;  %vm5625_vm15 = vmmov %vm5623_vm7  ;;  %1481 = vmatprep.subr.mxu0 %v1097_v29 }
 0x299   : > { %v1096_v54 = vsel %vm5625_vm15, %v1090_v30, %v1092_v19  ;;  %1552 = vmatprep.subr.mxu1 %v1095_v40  ;;  %vm5626_vm4 = vmmov %vm5623_vm7 }
 0x29a   : > { %v1098_v18 = vsel %vm5626_vm4, %v3970_v55, %v4027_v28  ;;  %1553 = vmatpush1.msra.mxu1 %v1096_v54  ;;  %vm5628_vm7 = vmmov %vm5627_vm9  ;;  %v1060_v6 = vpop.permute.xlu1 %1059  ;;  %vm5631_vm9 = vcmask 588800  }
 0x29b   : > { %1482 = vmatpush1.msra.mxu0 %v1098_v18  ;;  %v1066_v41 = vsel %vm5628_vm7, %v3955_v58, %v1056_v5  ;;  %vm5629_vm14 = vmmov %vm5628_vm7  ;;  %v4284_v58 = vpop.permute.xlu0 %1305 }
 0x29c   : > { %2888 = vmatprep.subr.msk.mxu0 %vm3526_vm3, %v1065_v39  ;;  %v1064_v15 = vsel %vm5629_vm14, %v1058_v61, %v1060_v6  ;;  %vm5630_vm15 = vmmov %vm5628_vm7  ;;  %v2906_v61 = vld [vmem:[%s5414_s2 + $0x10] sm:$0xff]  ;;  %vm5633_vm7 = vcmp.lt.s32.totalorder %v3239_v10, 95 }
 0x29d   : > { %2889 = vmatpush1.msk.msra.mxu0 %vm3532_vm11, %v1066_v41  ;;  %v1063_v55 = vsel %vm5630_vm15, %v1060_v6, %v4111_v50  ;;  %vm5632_vm4 = vmmov %vm5631_vm9 }
 0x29e   : > { %2890 = vmatmul.mubr.msk.f32.vlgmr.msra.gmra.mxu0 %vm5631_vm9, %v4069_v21  ;;  %2902 = vmatprep.subr.msk.mxu1 %vm5618_vm2, %v1063_v55  ;;  %vm5634_vm14 = vmmov %vm5633_vm7  ;;  %vm5637_vm9 = vcmp.lt.s32.totalorder %v3239_v10, 96  ;;  %vm5651_vm2 = vnez %v5488_v1 }
 0x29f   : > { %2903 = vmatpush1.msk.msra.mxu1 %vm3646_vm1, %v1064_v15  ;;  %1935 = vmatprep.mubr.f32.mxu0 %v5584_v11  ;;  %vm5653_vm1 = vnez %v5490_v12 }
 0x2a0   : > { %2904 = vmatmul.mubr.msk.f32.vlgmr.msra.gmra.mxu1 %vm5632_vm4, %v4069_v21  ;;  %vm5638_vm4 = vmmov %vm5637_vm9 }
 0x2a1   : > { %2006 = vmatprep.mubr.f32.mxu1 %v5584_v11 }
 0x332   : > { %v1448_v22 = vpop.f32.mrf.mxu1 }
 0x333   : > { %v1449_v63 = vadd.f32 %v1448_v22, %v4284_v58 }
 0x334   : > { %v1450_v51 = vpop.f32.mrf.mxu1 }
 0x335   : > { %v4325_v59 = vmax.f32 %v1449_v63, 0.0  ;;  %v1451_v24 = vadd.f32 %v1450_v51, %v4284_v58 }
 0x337   : > { %v4336_v5 = vmax.f32 %v1451_v24, 0.0 }
 0x33d   : > { %v1377_v28 = vpop.f32.mrf.mxu0 }
 0x33e   : > { %v1378_v50 = vadd.f32 %v1377_v28, %v4284_v58 }
 0x33f   : > { %v1379_v21 = vpop.f32.mrf.mxu0 }
 0x340   : > { %v4287_v35 = vmax.f32 %v1378_v50, 0.0  ;;  %v1380_v8 = vadd.f32 %v1379_v21, %v4284_v58 }
 0x342   : > { %1799 = vrot.lane.b32.xlu0 %v4287_v35, %s3058_s19  ;;  %1831 = vrot.lane.b32.xlu1 %v4287_v35, %s3057_s18  ;;  %v4306_v45 = vmax.f32 %v1380_v8, 0.0  ;;  %v5635_v8 = vld [vmem:[#allocation2_spill] sm:$0xff] }
 0x343   : > { %vm5636_vm15 = vnez %v5635_v8 }
 0x346   : > { %1735 = vrot.lane.b32.xlu0 %v4287_v35, %s3060_s21  ;;  %1767 = vrot.lane.b32.xlu1 %v4287_v35, %s3059_s20 }
 0x34a   : > { %1671 = vrot.lane.b32.xlu0 %v4287_v35, %s3062_s23  ;;  %1703 = vrot.lane.b32.xlu1 %v4287_v35, %s3061_s22 }
 0x34e   : > { %1607 = vrot.lane.b32.xlu0 %v4287_v35, %s3065_s25  ;;  %1639 = vrot.lane.b32.xlu1 %v4287_v35, %s3063_s24 }
 0x352   : > { %1801 = vrot.lane.b32.xlu0 %v4306_v45, %s3058_s19  ;;  %1833 = vrot.lane.b32.xlu1 %v4306_v45, %s3057_s18 }
 0x356   : > { %1737 = vrot.lane.b32.xlu0 %v4306_v45, %s3060_s21  ;;  %1769 = vrot.lane.b32.xlu1 %v4306_v45, %s3059_s20 }
 0x35a   : > { %1705 = vrot.lane.b32.xlu0 %v4306_v45, %s3061_s22  ;;  %1673 = vrot.lane.b32.xlu1 %v4306_v45, %s3062_s23 }
 0x35e   : > { %1641 = vrot.lane.b32.xlu0 %v4306_v45, %s3063_s24  ;;  %1609 = vrot.lane.b32.xlu1 %v4306_v45, %s3065_s25  ;;  %v1519_v19 = vpop.f32.mrf.mxu0 }
 0x35f   : > { %v1520_v26 = vadd.f32 %v1519_v19, %v4284_v58 }
 0x360   : > { %v1521_v23 = vpop.f32.mrf.mxu0  ;;  %v1590_v57 = vpop.f32.mrf.mxu1 }
 0x361   : > { %v4363_v53 = vmax.f32 %v1520_v26, 0.0  ;;  %v1522_v36 = vadd.f32 %v1521_v23, %v4284_v58  ;;  %v1591_v49 = vadd.f32 %v1590_v57, %v4284_v58 }
 0x362   : > { %1835 = vrot.lane.b32.xlu0 %v4325_v59, %s3057_s18  ;;  %1803 = vrot.lane.b32.xlu1 %v4325_v59, %s3058_s19  ;;  %v1592_v33 = vpop.f32.mrf.mxu1 }
 0x363   : > { %v4374_v9 = vmax.f32 %v1522_v36, 0.0  ;;  %v4381_v34 = vmax.f32 %v1591_v49, 0.0  ;;  %v1593_v14 = vadd.f32 %v1592_v33, %v4284_v58 }
 0x365   : > { %v4400_v60 = vmax.f32 %v1593_v14, 0.0 }
 0x366   : > { %1771 = vrot.lane.b32.xlu0 %v4325_v59, %s3059_s20  ;;  %1739 = vrot.lane.b32.xlu1 %v4325_v59, %s3060_s21 }
 0x36a   : > { %1805 = vrot.lane.b32.xlu0 %v4336_v5, %s3058_s19  ;;  %1707 = vrot.lane.b32.xlu1 %v4325_v59, %s3061_s22 }
 0x36e   : > { %1741 = vrot.lane.b32.xlu0 %v4336_v5, %s3060_s21  ;;  %1675 = vrot.lane.b32.xlu1 %v4325_v59, %s3062_s23 }
 0x372   : > { %1709 = vrot.lane.b32.xlu0 %v4336_v5, %s3061_s22  ;;  %1643 = vrot.lane.b32.xlu1 %v4325_v59, %s3063_s24 }
 0x376   : > { %1677 = vrot.lane.b32.xlu0 %v4336_v5, %s3062_s23  ;;  %1611 = vrot.lane.b32.xlu1 %v4325_v59, %s3065_s25 }
 0x37a   : > { %1645 = vrot.lane.b32.xlu0 %v4336_v5, %s3063_s24  ;;  %1837 = vrot.lane.b32.xlu1 %v4336_v5, %s3057_s18 }
 0x37e   : > { %1613 = vrot.lane.b32.xlu0 %v4336_v5, %s3065_s25  ;;  %1773 = vrot.lane.b32.xlu1 %v4336_v5, %s3059_s20 }
 0x382   : > { %1807 = vrot.lane.b32.xlu1 %v4363_v53, %s3058_s19  ;;  %1839 = vrot.lane.b32.xlu0 %v4363_v53, %s3057_s18 }
 0x386   : > { %1743 = vrot.lane.b32.xlu1 %v4363_v53, %s3060_s21  ;;  %1775 = vrot.lane.b32.xlu0 %v4363_v53, %s3059_s20 }
 0x38a   : > { %1841 = vrot.lane.b32.xlu1 %v4374_v9, %s3057_s18  ;;  %1711 = vrot.lane.b32.xlu0 %v4363_v53, %s3061_s22 }
 0x38e   : > { %1809 = vrot.lane.b32.xlu1 %v4374_v9, %s3058_s19  ;;  %1843 = vrot.lane.b32.xlu0 %v4381_v34, %s3057_s18 }
 0x392   : > { %1777 = vrot.lane.b32.xlu1 %v4374_v9, %s3059_s20  ;;  %1811 = vrot.lane.b32.xlu0 %v4381_v34, %s3058_s19 }
 0x396   : > { %1745 = vrot.lane.b32.xlu1 %v4374_v9, %s3060_s21  ;;  %1779 = vrot.lane.b32.xlu0 %v4381_v34, %s3059_s20 }
 0x39a   : > { %1713 = vrot.lane.b32.xlu1 %v4374_v9, %s3061_s22  ;;  %1747 = vrot.lane.b32.xlu0 %v4381_v34, %s3060_s21 }
 0x39e   : > { %1717 = vrot.lane.b32.xlu1 %v4400_v60, %s3061_s22  ;;  %1685 = vrot.lane.b32.xlu0 %v4400_v60, %s3062_s23 }
 0x3a2   : > { %1653 = vrot.lane.b32.xlu1 %v4400_v60, %s3063_s24  ;;  %1621 = vrot.lane.b32.xlu0 %v4400_v60, %s3065_s25 }
 0x3a6   : > { %1679 = vrot.lane.b32.xlu1 %v4363_v53, %s3062_s23  ;;  %1681 = vrot.lane.b32.xlu0 %v4374_v9, %s3062_s23 }
 0x3aa   : > { %1649 = vrot.lane.b32.xlu1 %v4374_v9, %s3063_s24  ;;  %1647 = vrot.lane.b32.xlu0 %v4363_v53, %s3063_s24 }
 0x3ae   : > { %1845 = vrot.lane.b32.xlu1 %v4400_v60, %s3057_s18  ;;  %1813 = vrot.lane.b32.xlu0 %v4400_v60, %s3058_s19 }
 0x3b2   : > { %1781 = vrot.lane.b32.xlu1 %v4400_v60, %s3059_s20  ;;  %1749 = vrot.lane.b32.xlu0 %v4400_v60, %s3060_s21 }
 0x3b4   : > { %v4426_v2 = vpop.permute.xlu0 %1799  ;;  %v4428_v31 = vpop.permute.xlu1 %1831 }
 0x3b6   : > { %1615 = vrot.lane.b32.xlu1 %v4363_v53, %s3065_s25  ;;  %1617 = vrot.lane.b32.xlu0 %v4374_v9, %s3065_s25 }
 0x3b8   : > { %v4434_v38 = vpop.permute.xlu0 %1735  ;;  %v4436_v20 = vpop.permute.xlu1 %1767 }
 0x3ba   : > { %1715 = vrot.lane.b32.xlu1 %v4381_v34, %s3061_s22  ;;  %1683 = vrot.lane.b32.xlu0 %v4381_v34, %s3062_s23 }
 0x3bc   : > { %v4442_v52 = vpop.permute.xlu0 %1671  ;;  %v4444_v42 = vpop.permute.xlu1 %1703 }
 0x3be   : > { %1651 = vrot.lane.b32.xlu1 %v4381_v34, %s3063_s24  ;;  %1619 = vrot.lane.b32.xlu0 %v4381_v34, %s3065_s25 }
 0x3c0   : > { %v4453_v30 = vpop.permute.xlu0 %1607  ;;  %v4455_v29 = vpop.permute.xlu1 %1639 }
 0x3c2   : > { %1865 = vperm.xlu1 %3040, %v2906_v61  }
 0x3c4   : > { %v1802_v40 = vpop.permute.xlu0 %1801  ;;  %v1834_v54 = vpop.permute.xlu1 %1833 }
 0x3c5   : > { %v1853_v21 = vsel %vm5634_vm14, %v4428_v31, %v1834_v54  ;;  %v1821_v24 = vsel %vm5638_vm4, %v4426_v2, %v1802_v40 }
 0x3c8   : > { %v1738_v18 = vpop.permute.xlu0 %1737  ;;  %v1770_v39 = vpop.permute.xlu1 %1769 }
 0x3cc   : > { %v4457_v41 = vpop.permute.xlu0 %1705  ;;  %v4459_v6 = vpop.permute.xlu1 %1673 }
 0x3d0   : > { %v4461_v15 = vpop.permute.xlu0 %1641  ;;  %v4463_v55 = vpop.permute.xlu1 %1609 }
 0x3d4   : > { %v1836_v58 = vpop.permute.xlu0 %1835  ;;  %v1804_v28 = vpop.permute.xlu1 %1803 }
 0x3d5   : > { %v1852_v50 = vsel %vm5633_vm7, %v1834_v54, %v1836_v58  ;;  %v1820_v22 = vsel %vm5637_vm9, %v1802_v40, %v1804_v28  ;;  %vm5639_vm7 = vcmp.lt.s32.totalorder %v3239_v10, 97  ;;  %vm5641_vm9 = vcmp.lt.s32.totalorder %v3239_v10, 127 }
 0x3d6   : > { %2907 = vmatprep.subr.msk.mxu0 %vm3257_vm0, %v1852_v50  ;;  %vm5640_vm14 = vmmov %vm5639_vm7 }
 0x3d7   : > { %2908 = vmatpush1.msk.msra.mxu0 %vm5636_vm15, %v1853_v21  ;;  %v1789_v26 = vsel %vm5640_vm14, %v4436_v20, %v1770_v39  ;;  %vm5642_vm4 = vmmov %vm5641_vm9  ;;  %vm5644_vm14 = vcmp.lt.s32.totalorder %v3239_v10, 95 }
 0x3d8   : > { %v1772_v63 = vpop.permute.xlu0 %1771  ;;  %1887 = vmatprep.subr.mxu0 %v1820_v22  ;;  %v1740_v51 = vpop.permute.xlu1 %1739  ;;  %v1757_v36 = vsel %vm5642_vm4, %v4434_v38, %v1738_v18  ;;  %vm5646_vm4 = vnez %v5484_v47  ;;  %v5155_v47 = vld [vmem:[%s5413_s1 + $0x18] sm:$0xff] }
 0x3d9   : > { %1888 = vmatpush1.msra.mxu0 %v1821_v24  ;;  %v1788_v19 = vsel %vm5639_vm7, %v1770_v39, %v1772_v63  ;;  %v1756_v23 = vsel %vm5641_vm9, %v1738_v18, %v1740_v51  ;;  %vm5643_vm7 = vcmp.lt.s32.totalorder %v3239_v10, 1  ;;  %vm5645_vm9 = vmmov %vm5644_vm14 }
 0x3da   : > { %2909 = vmatprep.subr.msk.mxu0 %vm3292_vm5, %v1788_v19  ;;  %v1725_v33 = vsel %vm5643_vm7, %v4444_v42, %v4457_v41  ;;  %vm5647_vm7 = vcmp.lt.s32.totalorder %v3239_v10, 96 }
 0x3db   : > { %2910 = vmatpush1.msk.msra.mxu0 %vm3303_vm6, %v1789_v26 }
 0x3dc   : > { %v1806_v57 = vpop.permute.xlu0 %1805  ;;  %2911 = vmatprep.subr.msk.mxu0 %vm3257_vm0, %v1756_v23  ;;  %v1708_v49 = vpop.permute.xlu1 %1707 }
 0x3dd   : > { %2912 = vmatpush1.msk.msra.mxu0 %vm5636_vm15, %v1757_v36 }
 0x3de   : > { %1893 = vmatprep.subr.mxu0 %v4306_v45 }
 0x3df   : > { %1894 = vmatpush1.msra.mxu0 %v4287_v35 }
 0x3e0   : > { %v1742_v14 = vpop.permute.xlu0 %1741  ;;  %2913 = vmatprep.subr.msk.mxu0 %vm3292_vm5, %v1725_v33  ;;  %v1676_v61 = vpop.permute.xlu1 %1675 }
 0x3e4   : > { %v4505_v40 = vpop.permute.xlu0 %1709  ;;  %v1644_v54 = vpop.permute.xlu1 %1643 }
 0x3e8   : > { %v4507_v18 = vpop.permute.xlu0 %1677  ;;  %v1612_v39 = vpop.permute.xlu1 %1611 }
 0x3ec   : > { %v4509_v50 = vpop.permute.xlu0 %1645  ;;  %v1838_v45 = vpop.permute.xlu1 %1837 }
 0x3ed   : > { %v1851_v26 = vsel %vm5645_vm9, %v1836_v58, %v1838_v45  ;;  %vm5649_vm9 = vcmp.lt.s32.totalorder %v3239_v10, 97 }
 0x3ee   : > { %vm5650_vm15 = vmmov %vm5649_vm9 }
 0x3f0   : > { %v4511_v35 = vpop.permute.xlu0 %1613  ;;  %v1774_v21 = vpop.permute.xlu1 %1773 }
 0x3f4   : > { %v4513_v22 = vpop.permute.xlu0 %1839  ;;  %v4515_v24 = vpop.permute.xlu1 %1807 }
 0x3f5   : > { %v1850_v19 = vsel %vm5644_vm14, %v1838_v45, %v4513_v22  ;;  %v1818_v23 = vsel %vm5647_vm7, %v1806_v57, %v4515_v24  ;;  %vm5648_vm14 = vmmov %vm5647_vm7  ;;  %v1787_v45 = vsel %vm5650_vm15, %v1772_v63, %v1774_v21  ;;  %vm5652_vm7 = vcmp.lt.s32.totalorder %v3239_v10, 127 }
 0x3f6   : > { %2921 = vmatprep.subr.msk.mxu1 %vm3331_vm8, %v1850_v19  ;;  %v1819_v8 = vsel %vm5648_vm14, %v1804_v28, %v1806_v57  ;;  %vm5654_vm14 = vmmov %vm5652_vm7  ;;  %vm5655_vm15 = vcmp.lt.s32.totalorder %v3239_v10, 1 }
 0x3f7   : > { %2922 = vmatpush1.msk.msra.mxu1 %vm5646_vm4, %v1851_v26  ;;  %v1755_v28 = vsel %vm5654_vm14, %v1740_v51, %v1742_v14  ;;  %v1723_v63 = vsel %vm5655_vm15, %v1708_v49, %v4505_v40 }
 0x3f8   : > { %v4529_v36 = vpop.permute.xlu0 %1775  ;;  %1958 = vmatprep.subr.mxu1 %v1818_v23  ;;  %v4531_v33 = vpop.permute.xlu1 %1743 }
 0x3f9   : > { %v1786_v58 = vsel %vm5649_vm9, %v1774_v21, %v4529_v36  ;;  %1959 = vmatpush1.msra.mxu1 %v1819_v8  ;;  %v1754_v19 = vsel %vm5652_vm7, %v1742_v14, %v4531_v33  ;;  %vm5656_vm9 = vmmov %vm5655_vm15  ;;  %vm5657_vm7 = vcmp.lt.s32.totalorder %v3239_v10, 31  ;;  %vm5659_vm15 = vcmp.lt.s32.totalorder %v3239_v10, 32 }
 0x3fa   : > { %2923 = vmatprep.subr.msk.mxu1 %vm5651_vm2, %v1786_v58  ;;  %v1724_v51 = vsel %vm5656_vm9, %v4457_v41, %v1708_v49  ;;  %vm5658_vm14 = vmmov %vm5657_vm7  ;;  %v1659_v41 = vsel %vm5659_vm15, %v1644_v54, %v4509_v50  ;;  %v4593_v58 = vld [vmem:[%s5413_s1 + $0x10] sm:$0xff] }
 0x3fb   : > { %2924 = vmatpush1.msk.msra.mxu1 %vm5653_vm1, %v1787_v45  ;;  %vm5660_vm9 = vmmov %vm5659_vm15  ;;  %vm5663_vm15 = vcmask 588800  }
 0x3fc   : > { %v4549_v57 = vpop.permute.xlu0 %1711  ;;  %2925 = vmatprep.subr.msk.mxu1 %vm3331_vm8, %v1754_v19  ;;  %v1842_v8 = vpop.permute.xlu1 %1841  ;;  %v1660_v23 = vsel %vm5660_vm9, %v4461_v15, %v1644_v54  ;;  %vm5664_vm9 = vcmp.lt.s32.totalorder %v3239_v10, 1 }
 0x3fd   : > { %2926 = vmatpush1.msk.msra.mxu1 %vm5646_vm4, %v1755_v28 }
 0x3fe   : > { %1964 = vmatprep.subr.mxu1 %v4336_v5  ;;  %v1692_v5 = vsel %vm5658_vm14, %v4459_v6, %v1676_v61 }
 0x3ff   : > { %1965 = vmatpush1.msra.mxu1 %v4325_v59  ;;  %v1691_v59 = vsel %vm5657_vm7, %v1676_v61, %v4507_v18  ;;  %vm5661_vm7 = vcmp.lt.s32.totalorder %v3239_v10, 33 }
 0x400   : > { %v4563_v14 = vpop.permute.xlu0 %1843  ;;  %2927 = vmatprep.subr.msk.mxu1 %vm5651_vm2, %v1723_v63  ;;  %v1810_v21 = vpop.permute.xlu1 %1809  ;;  %v1627_v61 = vsel %vm5661_vm7, %v1612_v39, %v4511_v35  ;;  %vm5662_vm14 = vmmov %vm5661_vm7  ;;  %vm5665_vm7 = vcmp.lt.s32.totalorder %v3239_v10, 31 }
 0x401   : > { %2928 = vmatpush1.msk.msra.mxu1 %vm5653_vm1, %v1724_v51  ;;  %v1628_v45 = vsel %vm5662_vm14, %v4463_v55, %v1612_v39  ;;  %vm5666_vm14 = vmmov %vm5665_vm7 }
 0x402   : > { %2929 = vmatprep.subr.msk.mxu1 %vm3331_vm8, %v1691_v59 }
 0x403   : > { %2930 = vmatpush1.msk.msra.mxu1 %vm5646_vm4, %v1692_v5  ;;  %v1693_v5 = vsel %vm5665_vm7, %v4442_v52, %v4459_v6 }
 0x404   : > { %v4582_v49 = vpop.permute.xlu0 %1811  ;;  %1970 = vmatprep.subr.mxu1 %v1659_v41  ;;  %v1778_v26 = vpop.permute.xlu1 %1777 }
 0x405   : > { %1971 = vmatpush1.msra.mxu1 %v1660_v23 }
 0x406   : > { %2931 = vmatprep.subr.msk.mxu1 %vm5651_vm2, %v1627_v61 }
 0x407   : > { %2932 = vmatpush1.msk.msra.mxu1 %vm5653_vm1, %v1628_v45 }
 0x408   : > { %v4602_v54 = vpop.permute.xlu0 %1779  ;;  %v1746_v19 = vpop.permute.xlu1 %1745  ;;  %2933 = vmatmul.mubr.msk.f32.vlgmr.msra.gmra.mxu1 %vm5663_vm15, %v4593_v58  ;;  %vm5667_vm15 = vnez %v5486_v62 }
 0x409   : > { %2148 = vmatprep.mubr.f32.mxu1 %v5584_v11 }
 0x40c   : > { %v4607_v28 = vpop.permute.xlu0 %1747  ;;  %v4609_v63 = vpop.permute.xlu1 %1713 }
 0x410   : > { %v4611_v51 = vpop.permute.xlu0 %1685  ;;  %v4613_v39 = vpop.permute.xlu1 %1717 }
 0x411   : > { %v1726_v59 = vsel %vm5664_vm9, %v4613_v39, %v4444_v42  ;;  %v1694_v41 = vsel %vm5666_vm14, %v4611_v51, %v4442_v52  ;;  %vm5668_vm9 = vcmp.lt.s32.totalorder %v3239_v10, 32  ;;  %vm5670_vm14 = vcmp.ge.s32.totalorder %v3239_v10, 32 }
 0x412   : > { %2914 = vmatpush1.msk.msra.mxu0 %vm3303_vm6, %v1726_v59  ;;  %v1661_v6 = vsel %vm5668_vm9, %v4455_v29, %v4461_v15  ;;  %vm5669_vm7 = vmmov %vm5668_vm9  ;;  %vm5673_vm9 = vcmp.lt.s32.totalorder %v3239_v10, 95 }
 0x413   : > { %2915 = vmatprep.subr.msk.mxu0 %vm3257_vm0, %v1693_v5 }
 0x414   : > { %v4631_v23 = vpop.permute.xlu0 %1621  ;;  %2916 = vmatpush1.msk.msra.mxu0 %vm5667_vm15, %v1694_v41  ;;  %v4635_v42 = vpop.permute.xlu1 %1653  ;;  %vm5671_vm15 = vcmp.lt.s32.totalorder %v3239_v10, 33 }
 0x415   : > { %v1662_v52 = vsel %vm5669_vm7, %v4635_v42, %v4455_v29  ;;  %1899 = vmatprep.subr.mxu0 %v1661_v6  ;;  %v1629_v61 = vsel %vm5671_vm15, %v4453_v30, %v4463_v55  ;;  %vm5672_vm1 = vmmov %vm5671_vm15  ;;  %v1848_v29 = vsel %vm5673_vm9, %v1842_v8, %v4563_v14  ;;  %vm5674_vm7 = vnez %v5492_v37 }
 0x416   : > { %2917 = vmatpush1.msk.msra.mxu0 %vm5670_vm14, %v1662_v52  ;;  %v1630_v45 = vsel %vm5672_vm1, %v4631_v23, %v4453_v30  ;;  %vm5675_vm15 = vmmov %vm5673_vm9  ;;  %vm5676_vm14 = vcmask 588800   ;;  %vm5677_vm1 = vcmp.lt.s32.totalorder %v3239_v10, 96 }
 0x417   : > { %2918 = vmatprep.subr.msk.mxu0 %vm3292_vm5, %v1629_v61  ;;  %v1849_v55 = vsel %vm5675_vm15, %v4513_v22, %v1842_v8  ;;  %v1816_v30 = vsel %vm5677_vm1, %v1810_v21, %v4582_v49  ;;  %vm5678_vm9 = vmmov %vm5677_vm1  ;;  %vm5679_vm15 = vcmp.lt.s32.totalorder %v3239_v10, 97  ;;  %vm5681_vm1 = vcmp.lt.s32.totalorder %v3239_v10, 127 }
 0x418   : > { %v4660_v15 = vpop.permute.xlu0 %1681  ;;  %2919 = vmatpush1.msk.msra.mxu0 %vm5674_vm7, %v1630_v45  ;;  %v1680_v59 = vpop.permute.xlu1 %1679  ;;  %v1817_v5 = vsel %vm5678_vm9, %v4515_v24, %v1810_v21  ;;  %v1784_v22 = vsel %vm5679_vm15, %v1778_v26, %v4602_v54  ;;  %v1752_v24 = vsel %vm5681_vm1, %v1746_v19, %v4607_v28  ;;  %vm5682_vm9 = vmmov %vm5681_vm1  ;;  %vm5685_vm1 = vcmp.lt.s32.totalorder %v3239_v10, 1 }
 0x419   : > { %2920 = vmatmul.mubr.msk.f32.vlgmr.msra.gmra.mxu0 %vm5676_vm14, %v4593_v58  ;;  %2934 = vmatprep.subr.msk.mxu0 %vm5598_vm12, %v1848_v29  ;;  %vm5680_vm14 = vmmov %vm5679_vm15  ;;  %v1753_v21 = vsel %vm5682_vm9, %v4531_v33, %v1746_v19  ;;  %vm5683_vm15 = vcmp.lt.s32.totalorder %v3239_v10, 95  ;;  %v1721_v33 = vsel %vm5685_vm1, %v4549_v57, %v4609_v63  ;;  %vm5686_vm9 = vnez %v5514_v7 }
 0x41a   : > { %2935 = vmatpush1.msk.msra.mxu0 %vm5599_vm10, %v1849_v55  ;;  %2077 = vmatprep.mubr.f32.mxu0 %v5584_v11  ;;  %v1785_v6 = vsel %vm5680_vm14, %v4529_v36, %v1778_v26  ;;  %vm5684_vm14 = vmmov %vm5683_vm15  ;;  %vm5693_vm7 = vcmp.lt.s32.totalorder %v3239_v10, 97 }
 0x41b   : > { %2029 = vmatprep.subr.mxu0 %v1816_v30 }
 0x41c   : > { %v1648_v8 = vpop.permute.xlu0 %1647  ;;  %2030 = vmatpush1.msra.mxu0 %v1817_v5  ;;  %v4683_v41 = vpop.permute.xlu1 %1649 }
 0x41d   : > { %2936 = vmatprep.subr.msk.mxu0 %vm3526_vm3, %v1784_v22 }
 0x41e   : > { %2937 = vmatpush1.msk.msra.mxu0 %vm3532_vm11, %v1785_v6 }
 0x41f   : > { %2938 = vmatprep.subr.msk.mxu0 %vm5598_vm12, %v1752_v24 }
 0x420   : > { %v1814_v52 = vpop.permute.xlu0 %1813  ;;  %2939 = vmatpush1.msk.msra.mxu0 %vm5599_vm10, %v1753_v21  ;;  %v1846_v36 = vpop.permute.xlu1 %1845 }
 0x421   : > { %v1847_v26 = vsel %vm5683_vm15, %v4563_v14, %v1846_v36  ;;  %v1854_v61 = vsel %vm5684_vm14, %v1846_v36, %v4428_v31  ;;  %2035 = vmatprep.subr.mxu0 %v4374_v9  ;;  %vm5687_vm15 = vmmov %vm5685_vm1  ;;  %vm5688_vm14 = vcmp.lt.s32.totalorder %v3239_v10, 96  ;;  %vm5689_vm1 = vcmp.lt.s32.totalorder %v3239_v10, 31 }
 0x422   : > { %2036 = vmatpush1.msra.mxu0 %v4363_v53  ;;  %2947 = vmatprep.subr.msk.mxu1 %vm5686_vm9, %v1854_v61  ;;  %v1722_v14 = vsel %vm5687_vm15, %v4505_v40, %v4549_v57  ;;  %v1822_v31 = vsel %vm5688_vm14, %v1814_v52, %v4426_v2  ;;  %v1689_v53 = vsel %vm5689_vm1, %v1680_v59, %v4660_v15  ;;  %vm5690_vm15 = vcmp.lt.s32.totalorder %v3549_v25, 992  ;;  %vm5691_vm14 = vmmov %vm5689_vm1 }
 0x423   : > { %2940 = vmatprep.subr.msk.mxu0 %vm3526_vm3, %v1721_v33  ;;  %2948 = vmatpush1.msk.msra.mxu1 %vm3594_vm13, %v1847_v26  ;;  %v1690_v2 = vsel %vm5691_vm14, %v4507_v18, %v1680_v59  ;;  %vm5692_vm9 = vcmp.lt.s32.totalorder %v3239_v10, 96  ;;  %vm5694_vm1 = vmmov %vm5693_vm7  ;;  %vm5698_vm14 = vcmp.lt.s32.totalorder %v3239_v10, 127 }
 0x424   : > { %v1750_v9 = vpop.permute.xlu0 %1749  ;;  %2941 = vmatpush1.msk.msra.mxu0 %vm3532_vm11, %v1722_v14  ;;  %2949 = vmatprep.subr.msk.mxu1 %vm5690_vm15, %v1822_v31  ;;  %v1782_v40 = vpop.permute.xlu1 %1781  ;;  %v1815_v57 = vsel %vm5692_vm9, %v4582_v49, %v1814_v52  ;;  %vm5695_vm15 = vcmp.lt.s32.totalorder %v3239_v10, 32 }
 0x425   : > { %v1783_v19 = vsel %vm5693_vm7, %v4602_v54, %v1782_v40  ;;  %v1790_v45 = vsel %vm5694_vm1, %v1782_v40, %v4436_v20  ;;  %2942 = vmatprep.subr.msk.mxu0 %vm5598_vm12, %v1689_v53  ;;  %2101 = vmatpush1.msra.mxu1 %v1815_v57  ;;  %v1657_v18 = vsel %vm5695_vm15, %v1648_v8, %v4683_v41  ;;  %vm5696_vm9 = vmmov %vm5695_vm15 }
 0x426   : > { %2943 = vmatpush1.msk.msra.mxu0 %vm5599_vm10, %v1690_v2  ;;  %v1658_v49 = vsel %vm5696_vm9, %v4509_v50, %v1648_v8  ;;  %vm5697_vm7 = vnez %v5531_v13  ;;  %v1758_v20 = vsel %vm5698_vm14, %v1750_v9, %v4434_v38  ;;  %vm5699_vm1 = vnez %v5533_v0  ;;  %vm5700_vm15 = vmmov %vm5698_vm14  ;;  %v3041_v0 = vld [vmem:[%s3103_s17 + $0x10] sm:$0xff] }
 0x427   : > { %2950 = vmatprep.subr.msk.mxu1 %vm5697_vm7, %v1790_v45  ;;  %2041 = vmatprep.subr.mxu0 %v1657_v18  ;;  %v1751_v59 = vsel %vm5700_vm15, %v4607_v28, %v1750_v9  ;;  %vm5701_vm9 = vnez %v5510_v43  ;;  %vm5702_vm7 = vcmp.lt.s32.totalorder %v3239_v10, 33  ;;  %vm5707_vm15 = vnez %v5617_v46 }
 0x428   : > { %2951 = vmatpush1.msk.msra.mxu1 %vm5699_vm1, %v1783_v19  ;;  %v1618_v54 = vpop.permute.xlu0 %1617  ;;  %2042 = vmatpush1.msra.mxu0 %v1658_v49  ;;  %v1616_v29 = vpop.permute.xlu1 %1615  ;;  %vm5703_vm10 = vmmov %vm5702_vm7 }
 0x429   : > { %2952 = vmatprep.subr.msk.mxu1 %vm5701_vm9, %v1758_v20  ;;  %v1625_v50 = vsel %vm5702_vm7, %v1616_v29, %v1618_v54  ;;  %v1626_v38 = vsel %vm5703_vm10, %v4511_v35, %v1616_v29  ;;  %vm5704_vm7 = vcmask 588800   ;;  %vm5705_vm10 = vcmp.lt.s32.totalorder %v3239_v10, 1 }
 0x42a   : > { %2953 = vmatpush1.msk.msra.mxu1 %vm3594_vm13, %v1751_v59  ;;  %2944 = vmatprep.subr.msk.mxu0 %vm3526_vm3, %v1625_v50  ;;  %vm5706_vm14 = vmmov %vm5705_vm10 }
 0x42b   : > { %2106 = vmatprep.subr.mxu1 %v4400_v60  ;;  %2945 = vmatpush1.msk.msra.mxu0 %vm3532_vm11, %v1626_v38  ;;  %vm5708_vm11 = vcmp.lt.s32.totalorder %v3239_v10, 31 }
 0x42c   : > { %2107 = vmatpush1.msra.mxu1 %v4381_v34  ;;  %v1684_v28 = vpop.permute.xlu0 %1683  ;;  %2946 = vmatmul.mubr.msk.f32.vlgmr.msra.gmra.mxu0 %vm5704_vm7, %v4593_v58  ;;  %v1716_v55 = vpop.permute.xlu1 %1715  ;;  %vm5709_vm7 = vmmov %vm5708_vm11 }
 0x42d   : > { %v1719_v35 = vsel %vm5705_vm10, %v1716_v55, %v4613_v39  ;;  %v1720_v30 = vsel %vm5706_vm14, %v4609_v63, %v1716_v55  ;;  %2495 = vmatprep.mubr.f32.mxu0 %v5584_v11  ;;  %v1687_v34 = vsel %vm5708_vm11, %v1684_v28, %v4611_v51  ;;  %v1688_v60 = vsel %vm5709_vm7, %v4660_v15, %v1684_v28 }
 0x42e   : > { %2954 = vmatprep.subr.msk.mxu1 %vm5707_vm15, %v1719_v35  ;;  %vm5710_vm10 = vcmp.lt.s32.totalorder %v3239_v10, 32  ;;  %vm5712_vm14 = vcmp.lt.s32.totalorder %v3239_v10, 33  ;;  %v2962_v35 = vld [vmem:[%s5414_s2 + $0x18] sm:$0xff] }
 0x42f   : > { %2955 = vmatpush1.msk.msra.mxu1 %vm5699_vm1, %v1720_v30  ;;  %vm5711_vm11 = vmmov %vm5710_vm10 }
 0x430   : > { %v1620_v39 = vpop.permute.xlu0 %1619  ;;  %2956 = vmatprep.subr.msk.mxu1 %vm5701_vm9, %v1687_v34  ;;  %v1652_v63 = vpop.permute.xlu1 %1651  ;;  %vm5713_vm7 = vmmov %vm5712_vm14 }
 0x431   : > { %v1656_v5 = vsel %vm5710_vm10, %v4683_v41, %v1652_v63  ;;  %2957 = vmatpush1.msk.msra.mxu1 %vm3594_vm13, %v1688_v60  ;;  %v1655_v51 = vsel %vm5711_vm11, %v1652_v63, %v4635_v42  ;;  %v1623_v15 = vsel %vm5712_vm14, %v1620_v39, %v4631_v23  ;;  %v1624_v22 = vsel %vm5713_vm7, %v1618_v54, %v1620_v39 }
 0x432   : > { %2112 = vmatprep.subr.mxu1 %v1655_v51  ;;  %vm5714_vm10 = vcmask 588800   ;;  %vm5715_vm11 = vcmp.lt.s32.totalorder %v3239_v10, 95 }
 0x433   : > { %2113 = vmatpush1.msra.mxu1 %v1656_v5  ;;  %vm5716_vm14 = vmmov %vm5715_vm11 }
 0x434   : > { %2958 = vmatprep.subr.msk.mxu1 %vm5707_vm15, %v1623_v15 }
 0x435   : > { %2959 = vmatpush1.msk.msra.mxu1 %vm5699_vm1, %v1624_v22 }
 0x436   : > { %2960 = vmatmul.mubr.msk.f32.vlgmr.msra.gmra.mxu1 %vm5714_vm10, %v4593_v58  ;;  %vm5719_vm10 = vcmp.lt.s32.totalorder %v3239_v10, 96 }
 0x437   : > { %2566 = vmatprep.mubr.f32.mxu1 %v5584_v11  ;;  %vm5720_vm15 = vmmov %vm5719_vm10 }
 0x43d   : > { %v4822_v42 = vpop.permute.xlu1 %1865 }
 0x4c8   : > { %v2008_v8 = vpop.f32.mrf.mxu1 }
 0x4c9   : > { %v2009_v23 = vadd.f32 %v2008_v8, %v4822_v42 }
 0x4ca   : > { %v2010_v36 = vpop.f32.mrf.mxu1 }
 0x4cb   : > { %v4825_v41 = vmax.f32 %v2009_v23, 0.0  ;;  %v2011_v26 = vadd.f32 %v2010_v36, %v4822_v42 }
 0x4cd   : > { %2395 = vrot.lane.b32.xlu1 %v4825_v41, %s3057_s18  ;;  %v4868_v33 = vmax.f32 %v2011_v26, 0.0 }
 0x4d9   : > { %v1937_v6 = vpop.f32.mrf.mxu0 }
 0x4da   : > { %v1938_v24 = vadd.f32 %v1937_v6, %v4822_v42 }
 0x4db   : > { %v1939_v58 = vpop.f32.mrf.mxu0 }
 0x4dc   : > { %v4830_v21 = vmax.f32 %v1938_v24, 0.0  ;;  %v1940_v52 = vadd.f32 %v1939_v58, %v4822_v42  ;;  %v5717_v58 = vld [vmem:[#allocation2_spill] sm:$0xff] }
 0x4dd   : > { %vm5718_vm7 = vnez %v5717_v58 }
 0x4de   : > { %2359 = vrot.lane.b32.xlu1 %v4830_v21, %s3058_s19  ;;  %2391 = vrot.lane.b32.xlu0 %v4830_v21, %s3057_s18  ;;  %v4862_v61 = vmax.f32 %v1940_v52, 0.0 }
 0x4e2   : > { %2331 = vrot.lane.b32.xlu1 %v4825_v41, %s3059_s20  ;;  %2363 = vrot.lane.b32.xlu0 %v4825_v41, %s3058_s19 }
 0x4e6   : > { %2295 = vrot.lane.b32.xlu1 %v4830_v21, %s3060_s21  ;;  %2327 = vrot.lane.b32.xlu0 %v4830_v21, %s3059_s20 }
 0x4ea   : > { %2231 = vrot.lane.b32.xlu1 %v4830_v21, %s3062_s23  ;;  %2299 = vrot.lane.b32.xlu0 %v4825_v41, %s3060_s21 }
 0x4ec   : > { %v2079_v14 = vpop.f32.mrf.mxu0 }
 0x4ed   : > { %v2080_v31 = vadd.f32 %v2079_v14, %v4822_v42 }
 0x4ee   : > { %2235 = vrot.lane.b32.xlu1 %v4825_v41, %s3062_s23  ;;  %2263 = vrot.lane.b32.xlu0 %v4830_v21, %s3061_s22  ;;  %v2081_v18 = vpop.f32.mrf.mxu0 }
 0x4ef   : > { %v4899_v53 = vmax.f32 %v2080_v31, 0.0  ;;  %v2082_v49 = vadd.f32 %v2081_v18, %v4822_v42 }
 0x4f1   : > { %v4940_v20 = vmax.f32 %v2082_v49, 0.0 }
 0x4f2   : > { %2167 = vrot.lane.b32.xlu1 %v4830_v21, %s3065_s25  ;;  %2267 = vrot.lane.b32.xlu0 %v4825_v41, %s3061_s22 }
 0x4f6   : > { %2171 = vrot.lane.b32.xlu1 %v4825_v41, %s3065_s25  ;;  %2199 = vrot.lane.b32.xlu0 %v4830_v21, %s3063_s24  ;;  %v2150_v9 = vpop.f32.mrf.mxu1 }
 0x4f7   : > { %v2151_v40 = vadd.f32 %v2150_v9, %v4822_v42 }
 0x4f8   : > { %v2152_v57 = vpop.f32.mrf.mxu1 }
 0x4f9   : > { %v4910_v2 = vmax.f32 %v2151_v40, 0.0  ;;  %v2153_v19 = vadd.f32 %v2152_v57, %v4822_v42 }
 0x4fa   : > { %2361 = vrot.lane.b32.xlu1 %v4862_v61, %s3058_s19  ;;  %2203 = vrot.lane.b32.xlu0 %v4825_v41, %s3063_s24 }
 0x4fb   : > { %v4929_v45 = vmax.f32 %v2153_v19, 0.0 }
 0x4fe   : > { %2365 = vrot.lane.b32.xlu1 %v4868_v33, %s3058_s19  ;;  %2393 = vrot.lane.b32.xlu0 %v4862_v61, %s3057_s18 }
 0x502   : > { %2297 = vrot.lane.b32.xlu1 %v4862_v61, %s3060_s21  ;;  %2397 = vrot.lane.b32.xlu0 %v4868_v33, %s3057_s18 }
 0x506   : > { %2301 = vrot.lane.b32.xlu1 %v4868_v33, %s3060_s21  ;;  %2329 = vrot.lane.b32.xlu0 %v4862_v61, %s3059_s20 }
 0x50a   : > { %2265 = vrot.lane.b32.xlu1 %v4862_v61, %s3061_s22  ;;  %2333 = vrot.lane.b32.xlu0 %v4868_v33, %s3059_s20 }
 0x50e   : > { %2269 = vrot.lane.b32.xlu1 %v4868_v33, %s3061_s22  ;;  %2233 = vrot.lane.b32.xlu0 %v4862_v61, %s3062_s23 }
 0x512   : > { %2201 = vrot.lane.b32.xlu1 %v4862_v61, %s3063_s24  ;;  %2237 = vrot.lane.b32.xlu0 %v4868_v33, %s3062_s23 }
 0x516   : > { %2205 = vrot.lane.b32.xlu1 %v4868_v33, %s3063_s24  ;;  %2169 = vrot.lane.b32.xlu0 %v4862_v61, %s3065_s25 }
 0x51a   : > { %2399 = vrot.lane.b32.xlu1 %v4899_v53, %s3057_s18  ;;  %2173 = vrot.lane.b32.xlu0 %v4868_v33, %s3065_s25 }
 0x51e   : > { %2335 = vrot.lane.b32.xlu1 %v4899_v53, %s3059_s20  ;;  %2367 = vrot.lane.b32.xlu0 %v4899_v53, %s3058_s19 }
 0x522   : > { %2403 = vrot.lane.b32.xlu1 %v4910_v2, %s3057_s18  ;;  %2303 = vrot.lane.b32.xlu0 %v4899_v53, %s3060_s21 }
 0x526   : > { %2339 = vrot.lane.b32.xlu1 %v4910_v2, %s3059_s20  ;;  %2371 = vrot.lane.b32.xlu0 %v4910_v2, %s3058_s19 }
 0x52a   : > { %2239 = vrot.lane.b32.xlu1 %v4899_v53, %s3062_s23  ;;  %2307 = vrot.lane.b32.xlu0 %v4910_v2, %s3060_s21 }
 0x52e   : > { %2243 = vrot.lane.b32.xlu1 %v4910_v2, %s3062_s23  ;;  %2271 = vrot.lane.b32.xlu0 %v4899_v53, %s3061_s22 }
 0x532   : > { %2245 = vrot.lane.b32.xlu1 %v4929_v45, %s3062_s23  ;;  %2275 = vrot.lane.b32.xlu0 %v4910_v2, %s3061_s22 }
 0x536   : > { %2181 = vrot.lane.b32.xlu1 %v4929_v45, %s3065_s25  ;;  %2207 = vrot.lane.b32.xlu0 %v4899_v53, %s3063_s24 }
 0x53a   : > { %2369 = vrot.lane.b32.xlu1 %v4940_v20, %s3058_s19  ;;  %2277 = vrot.lane.b32.xlu0 %v4929_v45, %s3061_s22 }
 0x53e   : > { %2373 = vrot.lane.b32.xlu1 %v4929_v45, %s3058_s19  ;;  %2213 = vrot.lane.b32.xlu0 %v4929_v45, %s3063_s24 }
 0x53f   : > { %v4962_v54 = vpop.permute.xlu1 %2395 }
 0x542   : > { %2175 = vrot.lane.b32.xlu1 %v4899_v53, %s3065_s25  ;;  %2401 = vrot.lane.b32.xlu0 %v4940_v20, %s3057_s18 }
 0x546   : > { %2305 = vrot.lane.b32.xlu1 %v4940_v20, %s3060_s21  ;;  %2405 = vrot.lane.b32.xlu0 %v4929_v45, %s3057_s18 }
 0x54a   : > { %2309 = vrot.lane.b32.xlu1 %v4929_v45, %s3060_s21  ;;  %2337 = vrot.lane.b32.xlu0 %v4940_v20, %s3059_s20  ;;  %s5391_s21 = scalar_lea.vmem %s5415_s3, %s3019_s14 }
 0x54e   : > { %2273 = vrot.lane.b32.xlu1 %v4940_v20, %s3061_s22  ;;  %2341 = vrot.lane.b32.xlu0 %v4929_v45, %s3059_s20 }
 0x550   : > { %v4968_v29 = vpop.permute.xlu1 %2359  ;;  %v4970_v59 = vpop.permute.xlu0 %2391 }
 0x552   : > { %2209 = vrot.lane.b32.xlu1 %v4940_v20, %s3063_s24  ;;  %2211 = vrot.lane.b32.xlu0 %v4910_v2, %s3063_s24 }
 0x554   : > { %v4976_v50 = vpop.permute.xlu1 %2331  ;;  %v2364_v38 = vpop.permute.xlu0 %2363 }
 0x556   : > { %2179 = vrot.lane.b32.xlu1 %v4910_v2, %s3065_s25  ;;  %2241 = vrot.lane.b32.xlu0 %v4940_v20, %s3062_s23 }
 0x558   : > { %v4982_v28 = vpop.permute.xlu1 %2295  ;;  %v4984_v55 = vpop.permute.xlu0 %2327 }
 0x55a   : > { %2177 = vrot.lane.b32.xlu0 %v4940_v20, %s3065_s25 }
 0x55c   : > { %v4991_v30 = vpop.permute.xlu1 %2231  ;;  %v4993_v34 = vpop.permute.xlu0 %2299 }
 0x55e   : > { %2425 = vperm.xlu0 %3039, %v2962_v35  }
 0x560   : > { %v4995_v60 = vpop.permute.xlu1 %2235  ;;  %v4997_v39 = vpop.permute.xlu0 %2263 }
 0x564   : > { %v4999_v63 = vpop.permute.xlu1 %2167  ;;  %v5001_v5 = vpop.permute.xlu0 %2267 }
 0x568   : > { %v5003_v51 = vpop.permute.xlu1 %2171  ;;  %v5005_v15 = vpop.permute.xlu0 %2199 }
 0x56c   : > { %v2362_v22 = vpop.permute.xlu1 %2361  ;;  %v5007_v42 = vpop.permute.xlu0 %2203 }
 0x56d   : > { %v2380_v52 = vsel %vm5719_vm10, %v2362_v22, %v2364_v38  ;;  %v2381_v36 = vsel %vm5720_vm15, %v4968_v29, %v2362_v22  ;;  %vm5723_vm15 = vcmp.lt.s32.totalorder %v3239_v10, 127 }
 0x56e   : > { %vm5724_vm10 = vmmov %vm5723_vm15 }
 0x570   : > { %v2366_v8 = vpop.permute.xlu1 %2365  ;;  %v2394_v23 = vpop.permute.xlu0 %2393 }
 0x571   : > { %v2412_v6 = vsel %vm5715_vm11, %v2394_v23, %v4962_v54  ;;  %v2413_v24 = vsel %vm5716_vm14, %v4970_v59, %v2394_v23  ;;  %vm5721_vm11 = vcmp.lt.s32.totalorder %v3239_v10, 97 }
 0x572   : > { %2963 = vmatprep.subr.msk.mxu0 %vm3257_vm0, %v2412_v6  ;;  %vm5722_vm14 = vmmov %vm5721_vm11 }
 0x573   : > { %2964 = vmatpush1.msk.msra.mxu0 %vm5718_vm7, %v2413_v24 }
 0x574   : > { %v2298_v26 = vpop.permute.xlu1 %2297  ;;  %2447 = vmatprep.subr.mxu0 %v2380_v52  ;;  %v2398_v14 = vpop.permute.xlu0 %2397 }
 0x575   : > { %2448 = vmatpush1.msra.mxu0 %v2381_v36  ;;  %v2316_v19 = vsel %vm5723_vm15, %v2298_v26, %v4993_v34  ;;  %v2317_v18 = vsel %vm5724_vm10, %v4982_v28, %v2298_v26  ;;  %vm5728_vm15 = vcmp.lt.s32.totalorder %v3239_v10, 96 }
 0x576   : > { %vm5729_vm10 = vmmov %vm5728_vm15 }
 0x578   : > { %v2302_v31 = vpop.permute.xlu1 %2301  ;;  %v2330_v9 = vpop.permute.xlu0 %2329 }
 0x579   : > { %v2348_v40 = vsel %vm5721_vm11, %v2330_v9, %v4976_v50  ;;  %v2349_v57 = vsel %vm5722_vm14, %v4984_v55, %v2330_v9  ;;  %vm5725_vm11 = vcmp.lt.s32.totalorder %v3239_v10, 1 }
 0x57a   : > { %2965 = vmatprep.subr.msk.mxu0 %vm3292_vm5, %v2348_v40 }
 0x57b   : > { %2966 = vmatpush1.msk.msra.mxu0 %vm3303_vm6, %v2349_v57 }
 0x57c   : > { %v2266_v49 = vpop.permute.xlu1 %2265  ;;  %2967 = vmatprep.subr.msk.mxu0 %vm3257_vm0, %v2316_v19  ;;  %v2334_v35 = vpop.permute.xlu0 %2333 }
 0x57d   : > { %2968 = vmatpush1.msk.msra.mxu0 %vm5718_vm7, %v2317_v18  ;;  %v2285_v22 = vsel %vm5725_vm11, %v4997_v39, %v2266_v49  ;;  %vm5726_vm7 = vcmp.lt.s32.totalorder %v3239_v10, 95  ;;  %v2379_v18 = vsel %vm5729_vm10, %v2364_v38, %v2366_v8  ;;  %vm5730_vm11 = vcmp.lt.s32.totalorder %v3239_v10, 97 }
 0x57e   : > { %2453 = vmatprep.subr.mxu0 %v4862_v61  ;;  %vm5727_vm14 = vmmov %vm5726_vm7 }
 0x57f   : > { %2454 = vmatpush1.msra.mxu0 %v4830_v21  ;;  %v2411_v9 = vsel %vm5727_vm14, %v4962_v54, %v2398_v14  ;;  %vm5732_vm14 = vcmp.lt.s32.totalorder %v3239_v10, 127 }
 0x580   : > { %v5049_v23 = vpop.permute.xlu1 %2269  ;;  %2969 = vmatprep.subr.msk.mxu0 %vm3292_vm5, %v2285_v22  ;;  %v2234_v6 = vpop.permute.xlu0 %2233  ;;  %vm5734_vm10 = vmmov %vm5732_vm14 }
 0x584   : > { %v5053_v24 = vpop.permute.xlu1 %2201  ;;  %v5055_v52 = vpop.permute.xlu0 %2237 }
 0x588   : > { %v5057_v58 = vpop.permute.xlu1 %2205  ;;  %v5059_v36 = vpop.permute.xlu0 %2169 }
 0x58c   : > { %v5061_v61 = vpop.permute.xlu1 %2399  ;;  %v5063_v26 = vpop.permute.xlu0 %2173 }
 0x58d   : > { %v2410_v21 = vsel %vm5726_vm7, %v2398_v14, %v5061_v61  ;;  %vm5731_vm7 = vmmov %vm5730_vm11 }
 0x58e   : > { %2977 = vmatprep.subr.msk.mxu1 %vm3331_vm8, %v2410_v21  ;;  %v2347_v14 = vsel %vm5731_vm7, %v4976_v50, %v2334_v35 }
 0x58f   : > { %2978 = vmatpush1.msk.msra.mxu1 %vm5646_vm4, %v2411_v9 }
 0x590   : > { %v5075_v40 = vpop.permute.xlu1 %2335  ;;  %v5077_v57 = vpop.permute.xlu0 %2367 }
 0x591   : > { %v2378_v19 = vsel %vm5728_vm15, %v2366_v8, %v5077_v57  ;;  %v2346_v54 = vsel %vm5730_vm11, %v2334_v35, %v5075_v40  ;;  %vm5733_vm15 = vnez %v5490_v12  ;;  %v2315_v8 = vsel %vm5734_vm10, %v4993_v34, %v2302_v31 }
 0x592   : > { %2518 = vmatprep.subr.mxu1 %v2378_v19  ;;  %vm5735_vm11 = vcmp.lt.s32.totalorder %v3239_v10, 1 }
 0x593   : > { %2519 = vmatpush1.msra.mxu1 %v2379_v18  ;;  %v2283_v9 = vsel %vm5735_vm11, %v5001_v5, %v5049_v23  ;;  %vm5736_vm7 = vmmov %vm5735_vm11  ;;  %vm5739_vm11 = vcmp.lt.s32.totalorder %v3239_v10, 32 }
 0x594   : > { %v5090_v22 = vpop.permute.xlu1 %2403  ;;  %2979 = vmatprep.subr.msk.mxu1 %vm5651_vm2, %v2346_v54  ;;  %v5094_v21 = vpop.permute.xlu0 %2303  ;;  %v2284_v34 = vsel %vm5736_vm7, %v2266_v49, %v5001_v5  ;;  %v2219_v49 = vsel %vm5739_vm11, %v5007_v42, %v5057_v58  ;;  %vm5740_vm7 = vmmov %vm5739_vm11  ;;  %vm5746_vm11 = vnez %v5486_v62 }
 0x595   : > { %v2314_v38 = vsel %vm5732_vm14, %v2302_v31, %v5094_v21  ;;  %2980 = vmatpush1.msk.msra.mxu1 %vm5733_vm15, %v2347_v14  ;;  %vm5737_vm14 = vcmp.lt.s32.totalorder %v3239_v10, 31  ;;  %v2221_v32 = vsel %vm5740_vm7, %v5005_v15, %v5053_v24 }
 0x596   : > { %2981 = vmatprep.subr.msk.mxu1 %vm3331_vm8, %v2314_v38  ;;  %vm5738_vm10 = vmmov %vm5737_vm14 }
 0x597   : > { %2982 = vmatpush1.msk.msra.mxu1 %vm5646_vm4, %v2315_v8  ;;  %v2252_v31 = vsel %vm5738_vm10, %v2234_v6, %v4995_v60 }
 0x598   : > { %v5108_v50 = vpop.permute.xlu1 %2339  ;;  %2524 = vmatprep.subr.mxu1 %v4868_v33  ;;  %v5111_v35 = vpop.permute.xlu0 %2371  ;;  %v2251_v33 = vsel %vm5737_vm14, %v4995_v60, %v5055_v52  ;;  %v2220_v60 = vsel %vm5740_vm7, %v5053_v24, %v5007_v42  ;;  %vm5743_vm14 = vcmask 588800  }
 0x599   : > { %2525 = vmatpush1.msra.mxu1 %v4825_v41 }
 0x59a   : > { %2983 = vmatprep.subr.msk.mxu1 %vm5651_vm2, %v2283_v9 }
 0x59b   : > { %2984 = vmatpush1.msk.msra.mxu1 %vm5733_vm15, %v2284_v34 }
 0x59c   : > { %v5132_v41 = vpop.permute.xlu1 %2239  ;;  %2985 = vmatprep.subr.msk.mxu1 %vm3331_vm8, %v2251_v33  ;;  %v5136_v5 = vpop.permute.xlu0 %2307  ;;  %vm5741_vm8 = vcmp.lt.s32.totalorder %v3239_v10, 33 }
 0x59d   : > { %2986 = vmatpush1.msk.msra.mxu1 %vm5646_vm4, %v2252_v31  ;;  %v2187_v44 = vsel %vm5741_vm8, %v5003_v51, %v5063_v26  ;;  %vm5742_vm4 = vmmov %vm5741_vm8  ;;  %vm5749_vm8 = vcmp.ge.s32.totalorder %v3239_v10, 32 }
 0x59e   : > { %2530 = vmatprep.subr.mxu1 %v2219_v49  ;;  %v2188_v19 = vsel %vm5742_vm4, %v5059_v36, %v5003_v51 }
 0x59f   : > { %2531 = vmatpush1.msra.mxu1 %v2220_v60 }
 0x5a0   : > { %v5161_v18 = vpop.permute.xlu1 %2243  ;;  %2987 = vmatprep.subr.msk.mxu1 %vm5651_vm2, %v2187_v44  ;;  %v5165_v42 = vpop.permute.xlu0 %2271  ;;  %vm5744_vm2 = vcmp.lt.s32.totalorder %v3239_v10, 1 }
 0x5a1   : > { %2988 = vmatpush1.msk.msra.mxu1 %vm5733_vm15, %v2188_v19  ;;  %vm5745_vm15 = vmmov %vm5738_vm10 }
 0x5a2   : > { %2989 = vmatmul.mubr.msk.f32.vlgmr.msra.gmra.mxu1 %vm5743_vm14, %v5155_v47  ;;  %v2253_v9 = vsel %vm5745_vm15, %v4991_v30, %v2234_v6  ;;  %vm5751_vm14 = vnez %v5492_v37 }
 0x5a3   : > { %2708 = vmatprep.mubr.f32.mxu1 %v5584_v11 }
 0x5a4   : > { %v5172_v54 = vpop.permute.xlu1 %2245  ;;  %v5174_v14 = vpop.permute.xlu0 %2275 }
 0x5a5   : > { %v2254_v34 = vsel %vm5738_vm10, %v5172_v54, %v4991_v30  ;;  %vm5754_vm10 = vcmask 588800  }
 0x5a8   : > { %v5176_v51 = vpop.permute.xlu1 %2181  ;;  %v5178_v38 = vpop.permute.xlu0 %2207 }
 0x5ac   : > { %v2370_v1 = vpop.permute.xlu1 %2369  ;;  %v5180_v8 = vpop.permute.xlu0 %2277 }
 0x5ad   : > { %v2286_v12 = vsel %vm5744_vm2, %v5180_v8, %v4997_v39  ;;  %vm5752_vm2 = vcmp.lt.s32.totalorder %v3239_v10, 95 }
 0x5ae   : > { %2970 = vmatpush1.msk.msra.mxu0 %vm3303_vm6, %v2286_v12  ;;  %vm5747_vm6 = vmmov %vm5740_vm7 }
 0x5af   : > { %2971 = vmatprep.subr.msk.mxu0 %vm3257_vm0, %v2253_v9  ;;  %vm5748_vm0 = vmmov %vm5742_vm4 }
 0x5b0   : > { %v2374_v33 = vpop.permute.xlu1 %2373  ;;  %2972 = vmatpush1.msk.msra.mxu0 %vm5746_vm11, %v2254_v34  ;;  %v5199_v39 = vpop.permute.xlu0 %2213  ;;  %v2189_v16 = vsel %vm5748_vm0, %v4999_v63, %v5059_v36  ;;  %vm5750_vm4 = vmmov %vm5748_vm0  ;;  %vm5756_vm11 = vcmp.lt.s32.totalorder %v3239_v10, 96  ;;  %v3043_v34 = vld [vmem:[%s3103_s17] sm:$0xff] }
 0x5b1   : > { %v2222_v6 = vsel %vm5747_vm6, %v5199_v39, %v5005_v15  ;;  %2459 = vmatprep.subr.mxu0 %v2221_v32  ;;  %v2190_v62 = vsel %vm5750_vm4, %v5176_v51, %v4999_v63  ;;  %vm5753_vm15 = vmmov %vm5752_vm2  ;;  %v2376_v27 = vsel %vm5756_vm11, %v2370_v1, %v5111_v35  ;;  %v3044_v32 = vld [vmem:[%s3103_s17 + $0x8] sm:$0xff] }
 0x5b2   : > { %2973 = vmatpush1.msk.msra.mxu0 %vm5749_vm8, %v2222_v6  ;;  %vm5757_vm7 = vmmov %vm5756_vm11  ;;  %vm5760_vm8 = vnez %v5514_v7  ;;  %vm5766_vm11 = vcmp.lt.s32.totalorder %v3239_v10, 127 }
 0x5b3   : > { %2974 = vmatprep.subr.msk.mxu0 %vm3292_vm5, %v2189_v16  ;;  %vm5755_vm5 = vnez %v5496_v48  ;;  %v2377_v37 = vsel %vm5757_vm7, %v5077_v57, %v2370_v1  ;;  %vm5758_vm6 = vmmov %vm5752_vm2 }
 0x5b4   : > { %v5221_v30 = vpop.permute.xlu1 %2175  ;;  %2975 = vmatpush1.msk.msra.mxu0 %vm5751_vm14, %v2190_v62  ;;  %v2402_v15 = vpop.permute.xlu0 %2401  ;;  %vm5759_vm0 = vmmov %vm5752_vm2 }
 0x5b5   : > { %v2408_v24 = vsel %vm5752_vm2, %v2402_v15, %v5090_v22  ;;  %v2409_v36 = vsel %vm5753_vm15, %v5061_v61, %v2402_v15  ;;  %2976 = vmatmul.mubr.msk.f32.vlgmr.msra.gmra.mxu0 %vm5754_vm10, %v5155_v47  ;;  %vm5761_vm4 = vmmov %vm5757_vm7  ;;  %vm5763_vm2 = vcmp.lt.s32.totalorder %v3549_v25, 992  ;;  %vm5764_vm15 = vcmp.lt.s32.totalorder %v3239_v10, 97 }
 0x5b6   : > { %2990 = vmatprep.subr.msk.mxu0 %vm5598_vm12, %v2408_v24  ;;  %2637 = vmatprep.mubr.f32.mxu0 %v5584_v11  ;;  %v2382_v49 = vsel %vm5761_vm4, %v2374_v33, %v4968_v29  ;;  %vm5762_vm14 = vmmov %vm5761_vm4  ;;  %vm5767_vm7 = vnez %v5502_v17  ;;  %vm5771_vm4 = vnez %v5531_v13 }
 0x5b7   : > { %2991 = vmatpush1.msk.msra.mxu0 %vm5755_vm5, %v2409_v36  ;;  %v2375_v57 = vsel %vm5762_vm14, %v5111_v35, %v2374_v33  ;;  %vm5765_vm10 = vmmov %vm5764_vm15 }
 0x5b8   : > { %v2306_v63 = vpop.permute.xlu1 %2305  ;;  %2589 = vmatprep.subr.mxu0 %v2376_v27  ;;  %v2406_v61 = vpop.permute.xlu0 %2405  ;;  %v3045_v27 = vld [vmem:[%s3103_s17 + $0x20] sm:$0xff] }
 0x5b9   : > { %v2407_v31 = vsel %vm5758_vm6, %v5090_v22, %v2406_v61  ;;  %v2414_v11 = vsel %vm5759_vm0, %v2406_v61, %v4970_v59  ;;  %2590 = vmatpush1.msra.mxu0 %v2377_v37  ;;  %v2312_v35 = vsel %vm5766_vm11, %v2306_v63, %v5136_v5  ;;  %vm5768_vm6 = vmmov %vm5766_vm11 }
 0x5ba   : > { %3003 = vmatprep.subr.msk.mxu1 %vm5760_vm8, %v2414_v11  ;;  %v2313_v25 = vsel %vm5768_vm6, %v5094_v21, %v2306_v63  ;;  %vm5769_vm0 = vmmov %vm5765_vm10  ;;  %v3046_v63 = vld [vmem:[%s3103_s17 + $0x30] sm:$0xff] }
 0x5bb   : > { %3004 = vmatpush1.msk.msra.mxu1 %vm3594_vm13, %v2407_v31  ;;  %vm5770_vm8 = vmmov %vm5769_vm0 }
 0x5bc   : > { %v2310_v22 = vpop.permute.xlu1 %2309  ;;  %3005 = vmatprep.subr.msk.mxu1 %vm5763_vm2, %v2382_v49  ;;  %v2338_v59 = vpop.permute.xlu0 %2337  ;;  %vm5772_vm14 = vmmov %vm5768_vm6  ;;  %vm5773_vm2 = vcmp.lt.s32.totalorder %v3239_v10, 1  ;;  %v3047_v49 = vld [vmem:[%s3103_s17 + $0x28] sm:$0xff] }
 0x5bd   : > { %v2344_v7 = vsel %vm5764_vm15, %v2338_v59, %v5108_v50  ;;  %v2345_v29 = vsel %vm5765_vm10, %v5075_v40, %v2338_v59  ;;  %2661 = vmatpush1.msra.mxu1 %v2375_v57  ;;  %v2318_v21 = vsel %vm5772_vm14, %v2310_v22, %v4982_v28  ;;  %vm5774_vm15 = vmmov %vm5773_vm2 }
 0x5be   : > { %2992 = vmatprep.subr.msk.mxu0 %vm3526_vm3, %v2344_v7  ;;  %vm5775_vm10 = vmmov %vm5768_vm6 }
 0x5bf   : > { %2993 = vmatpush1.msk.msra.mxu0 %vm5767_vm7, %v2345_v29  ;;  %v2311_v13 = vsel %vm5775_vm10, %v5136_v5, %v2310_v22  ;;  %vm5776_vm11 = vmmov %vm5773_vm2  ;;  %v3048_v22 = vld [vmem:[%s3103_s17 + $0x38] sm:$0xff] }
 0x5c0   : > { %v2274_v60 = vpop.permute.xlu1 %2273  ;;  %2994 = vmatprep.subr.msk.mxu0 %vm5598_vm12, %v2312_v35  ;;  %v2342_v40 = vpop.permute.xlu0 %2341  ;;  %v2279_v28 = vsel %vm5776_vm11, %v5174_v14, %v5180_v8  ;;  %vm5777_vm6 = vmmov %vm5773_vm2 }
 0x5c1   : > { %v2343_v44 = vsel %vm5769_vm0, %v5108_v50, %v2342_v40  ;;  %v2350_v19 = vsel %vm5770_vm8, %v2342_v40, %v4984_v55  ;;  %2995 = vmatpush1.msk.msra.mxu0 %vm5755_vm5, %v2313_v25  ;;  %v2281_v50 = vsel %vm5773_vm2, %v5165_v42, %v2274_v60  ;;  %vm5778_vm0 = vnez %v5617_v46 }
 0x5c2   : > { %2595 = vmatprep.subr.mxu0 %v4940_v20  ;;  %3006 = vmatprep.subr.msk.mxu1 %vm5771_vm4, %v2350_v19  ;;  %v2282_v20 = vsel %vm5774_vm15, %v5049_v23, %v5165_v42  ;;  %v2280_v23 = vsel %vm5777_vm6, %v2274_v60, %v5174_v14  ;;  %vm5779_vm8 = vcmp.lt.s32.totalorder %v3239_v10, 31  ;;  %vm5783_vm15 = vcmp.lt.s32.totalorder %v3239_v10, 32 }
 0x5c3   : > { %2596 = vmatpush1.msra.mxu0 %v4899_v53  ;;  %3007 = vmatpush1.msk.msra.mxu1 %vm5699_vm1, %v2343_v44  ;;  %vm5780_vm4 = vmmov %vm5779_vm8 }
 0x5c4   : > { %v2210_v55 = vpop.permute.xlu1 %2209  ;;  %2996 = vmatprep.subr.msk.mxu0 %vm3526_vm3, %v2281_v50  ;;  %3008 = vmatprep.subr.msk.mxu1 %vm5701_vm9, %v2318_v21  ;;  %v2212_v53 = vpop.permute.xlu0 %2211  ;;  %vm5781_vm14 = vmmov %vm5780_vm4 }
 0x5c5   : > { %2997 = vmatpush1.msk.msra.mxu0 %vm5767_vm7, %v2282_v20  ;;  %3009 = vmatpush1.msk.msra.mxu1 %vm3594_vm13, %v2311_v13  ;;  %vm5782_vm2 = vmmov %vm5780_vm4 }
 0x5c6   : > { %2666 = vmatprep.subr.mxu1 %v4929_v45  ;;  %v2247_v45 = vsel %vm5779_vm8, %v5161_v18, %v5172_v54  ;;  %v2250_v14 = vsel %vm5782_vm2, %v5055_v52, %v5132_v41  ;;  %vm5784_vm10 = vmmov %vm5783_vm15  ;;  %vm5791_vm8 = vcmask 588800  }
 0x5c7   : > { %2667 = vmatpush1.msra.mxu1 %v4910_v2  ;;  %v2215_v52 = vsel %vm5784_vm10, %v2212_v53, %v5199_v39 }
 0x5c8   : > { %3010 = vmatprep.subr.msk.mxu1 %vm5778_vm0, %v2279_v28  ;;  %v2242_v5 = vpop.permute.xlu0 %2241  ;;  %v2180_v1 = vpop.permute.xlu1 %2179 }
 0x5c9   : > { %v2248_v42 = vsel %vm5780_vm4, %v2242_v5, %v5161_v18  ;;  %v2249_v2 = vsel %vm5781_vm14, %v5132_v41, %v2242_v5  ;;  %3011 = vmatpush1.msk.msra.mxu1 %vm5699_vm1, %v2280_v23  ;;  %v2217_v18 = vsel %vm5783_vm15, %v5178_v38, %v2210_v55  ;;  %vm5792_vm4 = vmmov %vm5791_vm8 }
 0x5ca   : > { %2998 = vmatprep.subr.msk.mxu0 %vm5598_vm12, %v2249_v2  ;;  %3012 = vmatprep.subr.msk.mxu1 %vm5701_vm9, %v2247_v45  ;;  %vm5785_vm12 = vmmov %vm5784_vm10 }
 0x5cb   : > { %2999 = vmatpush1.msk.msra.mxu0 %vm5755_vm5, %v2250_v14  ;;  %3013 = vmatpush1.msk.msra.mxu1 %vm3594_vm13, %v2248_v42  ;;  %v2218_v3 = vsel %vm5785_vm12, %v5057_v58, %v5178_v38  ;;  %vm5786_vm9 = vmmov %vm5784_vm10  ;;  %vm5787_vm13 = vcmp.lt.s32.totalorder %v3239_v10, 33 }
 0x5cc   : > { %v2216_v48 = vsel %vm5786_vm9, %v2210_v55, %v2212_v53  ;;  %2601 = vmatprep.subr.mxu0 %v2217_v18  ;;  %2672 = vmatprep.subr.mxu1 %v2215_v52  ;;  %v2178_v43 = vpop.permute.xlu0 %2177  ;;  %v2183_v4 = vsel %vm5787_vm13, %v2180_v1, %v5176_v51  ;;  %vm5788_vm5 = vmmov %vm5787_vm13 }
 0x5cd   : > { %v2184_v41 = vsel %vm5788_vm5, %v2178_v43, %v2180_v1  ;;  %vm5789_vm11 = vmmov %vm5788_vm5  ;;  %2602 = vmatpush1.msra.mxu0 %v2218_v3  ;;  %2673 = vmatpush1.msra.mxu1 %v2216_v48 }
 0x5ce   : > { %v2185_v54 = vsel %vm5789_vm11, %v5221_v30, %v2178_v43  ;;  %vm5790_vm6 = vmmov %vm5788_vm5  ;;  %3014 = vmatprep.subr.msk.mxu1 %vm5778_vm0, %v2183_v4 }
 0x5cf   : > { %v2186_v58 = vsel %vm5790_vm6, %v5063_v26, %v5221_v30  ;;  %3000 = vmatprep.subr.msk.mxu0 %vm3526_vm3, %v2185_v54  ;;  %3015 = vmatpush1.msk.msra.mxu1 %vm5699_vm1, %v2184_v41 }
 0x5d0   : > { %3001 = vmatpush1.msk.msra.mxu0 %vm5767_vm7, %v2186_v58  ;;  %3016 = vmatmul.mubr.msk.f32.vlgmr.msra.gmra.mxu1 %vm5792_vm4, %v5155_v47 }
 0x5d1   : > { %3002 = vmatmul.mubr.msk.f32.vlgmr.msra.gmra.mxu0 %vm5791_vm8, %v5155_v47  ;;  %v3042_v47 = vld [vmem:[%s3103_s17 + $0x18] sm:$0xff] }
 0x5d9   : > { %v2426_v10 = vpop.permute.xlu0 %2425 }
 0x662   : > { %v2568_v56 = vpop.f32.mrf.mxu1 }
 0x663   : > { %v2569_v26 = vadd.f32 %v2568_v56, %v2426_v10 }
 0x664   : > { %v2570_v17 = vpop.f32.mrf.mxu1 }
 0x665   : > { %v2717_v46 = vsub.f32 %v3041_v0, %v2569_v26  ;;  %v2571_v51 = vadd.f32 %v2570_v17, %v2426_v10 }
 0x667   : > { %2725 = vst [vmem:[%s5391_s21 + $0x10] sm:$0xff] %v2717_v46  ;;  %v2718_v38 = vsub.f32 %v3042_v47, %v2571_v51 }
 0x669   : > { %2726 = vst [vmem:[%s5391_s21 + $0x18] sm:$0xff] %v2718_v38 }
 0x675   : > { %v2497_v8 = vpop.f32.mrf.mxu0 }
 0x676   : > { %v2498_v12 = vadd.f32 %v2497_v8, %v2426_v10 }
 0x677   : > { %v2499_v9 = vpop.f32.mrf.mxu0 }
 0x678   : > { %v2715_v33 = vsub.f32 %v3043_v34, %v2498_v12  ;;  %v2500_v39 = vadd.f32 %v2499_v9, %v2426_v10 }
 0x67a   : > { %2723 = vst [vmem:[%s5391_s21] sm:$0xff] %v2715_v33  ;;  %v2716_v6 = vsub.f32 %v3044_v32, %v2500_v39 }
 0x67c   : > { %2724 = vst [vmem:[%s5391_s21 + $0x8] sm:$0xff] %v2716_v6 }
 0x690   : > { %v2710_v62 = vpop.f32.mrf.mxu1 }
 0x691   : > { %v2639_v16 = vpop.f32.mrf.mxu0  ;;  %v2711_v15 = vadd.f32 %v2710_v62, %v2426_v10 }
 0x692   : > { %v2640_v30 = vadd.f32 %v2639_v16, %v2426_v10  ;;  %v2712_v36 = vpop.f32.mrf.mxu1 }
 0x693   : > { %v2641_v24 = vpop.f32.mrf.mxu0  ;;  %v2721_v61 = vsub.f32 %v3046_v63, %v2711_v15  ;;  %v2713_v11 = vadd.f32 %v2712_v36, %v2426_v10 }
 0x694   : > { %v2719_v37 = vsub.f32 %v3045_v27, %v2640_v30  ;;  %v2642_v31 = vadd.f32 %v2641_v24, %v2426_v10 }
 0x695   : > { %2729 = vst [vmem:[%s5391_s21 + $0x30] sm:$0xff] %v2721_v61  ;;  %v2722_v59 = vsub.f32 %v3048_v22, %v2713_v11 }
 0x696   : > { %2727 = vst [vmem:[%s5391_s21 + $0x20] sm:$0xff] %v2719_v37  ;;  %v2720_v57 = vsub.f32 %v3047_v49, %v2642_v31 }
 0x697   : > { %2730 = vst [vmem:[%s5391_s21 + $0x38] sm:$0xff] %v2722_v59 }
 0x698   : > { %2728 = vst [vmem:[%s5391_s21 + $0x28] sm:$0xff] %v2720_v57 }
 0x699 PF: > { %s13_s12 = sadd.s32 1, %s3055_s12  }
 0x69a   : > { %p10_p4 = scmp.ge.s32.totalorder %s13_s12, 4  }
 0x69c   :  { %12 = sbr.rel (!%p10_p4) target bundleno = 1 (0x1), region = 68 }

</bundles_post_ra>
